<compile_context>
chip_gen: v5e
topology: v5e:2x2
jax: 0.10.0
libtpu: 0.0.40
codegen_flags: <defaults>
</compile_context>

<pallas_src>
import jax
import jax.numpy as jnp
from jax.experimental import pallas as pl
from jax.experimental.pallas import tpu as pltpu

KTAP = 64        # Conv2d kernel width (1, 64)
POOL = 8         # AvgPool2d (1, 8)
NFEAT = 32       # conv output features / LSTM input size
NHID = 2         # LSTM hidden size (= number of classes)
UNROLL_MAX = 32  # fully unroll the LSTM recurrence up to this many steps


def cnnlstm_kernel(xp_ref, cw_ref, cb_ref, gamma_ref, beta_ref,
                   wih_ref, whh_ref, bias_ref, pool_ref,
                   out_ref, col_ref, conv_ref, z_ref):
    K, W = col_ref.shape
    B, F, _ = conv_ref.shape
    S = z_ref.shape[0]
    H = out_ref.shape[0]                 # NHID (classes / hidden)
    G = 4 * H                            # gate rows

    cw = cw_ref[...]                     # (F, K)
    cb = cb_ref[...]                     # (F, 1)

    # ---- Pass 1: Conv2d(1, F, (1, K)) per batch.  Taps are built in VMEM from
    # the padded raw signal (no HBM im2col), then one MXU matmul per batch.
    n = jnp.float32(B * W)
    s1 = jnp.zeros((F, 1), jnp.float32)
    for b in range(B):
        for k in range(K):               # 64 small (1, W) copies (VMEM only)
            col_ref[k:k + 1, :] = xp_ref[b:b + 1, k:k + W]
        conv_b = jnp.dot(cw, col_ref[...],
                         preferred_element_type=jnp.float32) + cb     # (F, W)
        conv_ref[b] = conv_b
        s1 = s1 + jnp.sum(conv_b, axis=1, keepdims=True)
    mean = s1 / n                                                      # (F, 1)

    # ---- Pass 2: Batchlayer stats, centered two-pass variance.
    s2 = jnp.zeros((F, 1), jnp.float32)
    for b in range(B):
        a_b = conv_ref[b] - mean
        conv_ref[b] = a_b                # store the centered conv for pass 3
        s2 = s2 + jnp.sum(a_b * a_b, axis=1, keepdims=True)
    var = s2 / n
    scale = gamma_ref[...] * jax.lax.rsqrt(var + 1e-5)                 # (F, 1)
    beta = beta_ref[...]

    # ---- Pass 3: BN + ELU + LSTM input projection + AvgPool (all hoisted out
    # of the recurrence).  z lands in a leading-axis (S, G, B) scratch.
    wih = wih_ref[...]                   # (G, F)   (g-gate rows pre-scaled x2)
    pool = pool_ref[...]                 # (W, S)   compact pooling matrix
    bias = bias_ref[...]                 # (G, 1)   b_ih + b_hh (g rows x2)
    z_cols = []
    for b in range(B):
        a_b = conv_ref[b]                                              # (F, W)
        bn_b = a_b * scale + beta
        act_b = jnp.where(bn_b > 0, bn_b,
                          jnp.exp(jnp.minimum(bn_b, 0.0)) - 1.0)       # ELU
        proj_b = jnp.dot(wih, act_b,
                         preferred_element_type=jnp.float32)           # (G, W)
        z_b = jnp.dot(proj_b, pool,
                      preferred_element_type=jnp.float32) + bias       # (G, S)
        z_cols.append(z_b)
    for s in range(S):                   # one-time fill, outside the recurrence
        z_ref[s] = jnp.concatenate([zb[:, s:s + 1] for zb in z_cols], axis=1)

    # ---- LSTM recurrence: tiny VPU work + 2 EUP pushes per step.
    whh = whh_ref[...]                                                 # (G, H)
    whh_b = [jnp.broadcast_to(whh[:, j:j + 1], (G, B)) for j in range(H)]

    def lstm_step(s, carry):
        h, c = carry                                                   # (H, B)
        z = z_ref[s]                                                   # (G, B)
        for j in range(H):               # recurrent term: 2 broadcast FMAs
            z = z + whh_b[j] * h[j:j + 1, :]
        t = jnp.tanh(0.5 * z)            # ONE tanh push for all four gates
        i_g = 0.5 * (t[0:H, :] + 1.0)            # sigmoid(z_i)
        f_g = 0.5 * (t[H:2 * H, :] + 1.0)        # sigmoid(z_f)
        g_g = t[2 * H:3 * H, :]                  # tanh(z_g)  (rows pre-scaled)
        o_g = 0.5 * (t[3 * H:4 * H, :] + 1.0)    # sigmoid(z_o)
        c = f_g * c + i_g * g_g
        h = o_g * jnp.tanh(c)
        return h, c

    h0 = jnp.zeros((H, B), jnp.float32)
    c0 = jnp.zeros((H, B), jnp.float32)
    unroll = True if S <= UNROLL_MAX else 1
    h, _ = jax.lax.fori_loop(0, S, lstm_step, (h0, c0), unroll=unroll)

    # ---- LogSoftmax over the class axis (axis 0 in the (H, B) layout).
    m = jnp.max(h, axis=0, keepdims=True)
    e = jnp.exp(h - m)
    lse = m + jnp.log(jnp.sum(e, axis=0, keepdims=True))
    out_ref[...] = h - lse


def cnnlstm_forward(x, params):
    """x: (B, 1, 1, W) float32, NCHW as in PyTorch."""
    cw, cb, gamma, beta, w_ih, w_hh, b_ih, b_hh = params
    B, _, _, W = x.shape
    S = W // POOL
    assert S >= 1, "time axis too short for AvgPool2d((1, 8))"
    x2 = x.reshape(B, W).astype(jnp.float32)
    # ReplicationPad2d((31, 32, 0, 0)): pad the time axis with edge values.
    x_pad = jnp.pad(x2, ((0, 0), (31, 32)), mode="edge")              # (B, W+63)

    # Compact (W, S) pool matrix: P[w, s] = 1/POOL if w // POOL == s.
    # (Linear in W; also truncates a ragged tail exactly like AvgPool2d.)
    pool_ws = ((jnp.arange(W)[:, None] // POOL)
               == jnp.arange(S)[None, :]).astype(jnp.float32) / POOL

    # Pre-scale the g-gate rows by 2 so the kernel needs a single tanh(0.5*z).
    gate_scale = jnp.concatenate(
        [jnp.ones((2 * NHID,), jnp.float32),
         2.0 * jnp.ones((NHID,), jnp.float32),
         jnp.ones((NHID,), jnp.float32)])[:, None]
    wih_s = (w_ih * gate_scale).astype(jnp.float32)
    whh_s = (w_hh * gate_scale).astype(jnp.float32)
    bias_s = ((b_ih + b_hh)[:, None] * gate_scale).astype(jnp.float32)

    flops = int(2 * NFEAT * KTAP * B * W            # conv matmuls
                + 2 * 4 * NHID * NFEAT * B * W      # input projection
                + 2 * 4 * NHID * W * S * B          # pooling matmuls
                + 10 * NFEAT * B * W                # BN / ELU elementwise
                + 30 * 4 * NHID * B * S)            # recurrence
    transcendentals = int(NFEAT * B * W + 2 * S * 4 * NHID * B)
    bytes_accessed = int(4 * (B * (W + KTAP - 1) + NFEAT * KTAP + 6 * NFEAT
                              + 4 * NHID * (NFEAT + NHID + 1)
                              + W * S + NHID * B))

    args = (x_pad, cw, cb, gamma, beta, wih_s, whh_s, bias_s, pool_ws)
    vmem = pl.BlockSpec(memory_space=pltpu.MemorySpace.VMEM)
    out_t = pl.pallas_call(
        cnnlstm_kernel,
        out_shape=jax.ShapeDtypeStruct((NHID, B), jnp.float32),
        in_specs=[vmem] * len(args),
        out_specs=vmem,
        scratch_shapes=[
            pltpu.VMEM((KTAP, W), jnp.float32),         # per-batch im2col taps
            pltpu.VMEM((B, NFEAT, W), jnp.float32),     # (centered) conv store
            pltpu.VMEM((S, 4 * NHID, B), jnp.float32),  # gate pre-activations
        ],
        cost_estimate=pl.CostEstimate(flops=flops,
                                      transcendentals=transcendentals,
                                      bytes_accessed=bytes_accessed),
    )(*args)
    # Kernel works in class-major (H, B) layout; transpose back in the wrapper.
    return out_t.T


def cnnlstm_reference(x, params):
    """Pure-JAX reference of the same forward pass (correctness check)."""
    cw, cb, gamma, beta, w_ih, w_hh, b_ih, b_hh = params
    B, _, _, W = x.shape
    hi = jax.lax.Precision.HIGHEST
    x2 = x.reshape(B, W).astype(jnp.float32)
    xp = jnp.pad(x2, ((0, 0), (31, 32)), mode="edge")
    cols = jnp.stack([xp[:, k:k + W] for k in range(KTAP)], axis=-1)  # (B, W, K)
    conv = jnp.einsum("bwk,fk->bfw", cols, cw, precision=hi) + cb[None, :, :]
    mean = conv.mean(axis=(0, 2), keepdims=True)
    a = conv - mean
    var = (a * a).mean(axis=(0, 2), keepdims=True)
    bn = a / jnp.sqrt(var + 1e-5) * gamma[None, :, :] + beta[None, :, :]
    act = jnp.where(bn > 0, bn, jnp.exp(bn) - 1.0)
    S = W // POOL
    pooled = act[:, :, :S * POOL].reshape(B, NFEAT, S, POOL).mean(-1)  # (B, F, S)
    h = jnp.zeros((B, NHID), jnp.float32)
    c = jnp.zeros((B, NHID), jnp.float32)
    for s in range(S):
        x_s = pooled[:, :, s]
        z = (jnp.dot(x_s, w_ih.T, precision=hi)
             + jnp.dot(h, w_hh.T, precision=hi) + b_ih + b_hh)
        i_g = jax.nn.sigmoid(z[:, 0:NHID])
        f_g = jax.nn.sigmoid(z[:, NHID:2 * NHID])
        g_g = jnp.tanh(z[:, 2 * NHID:3 * NHID])
        o_g = jax.nn.sigmoid(z[:, 3 * NHID:4 * NHID])
        c = f_g * c + i_g * g_g
        h = o_g * jnp.tanh(c)
    return jax.nn.log_softmax(h, axis=1)


if __name__ == "__main__":
    key = jax.random.PRNGKey(0)
    k = jax.random.split(key, 9)

    # Deterministic parameter init (shapes match the PyTorch module).
    bound_c = 1.0 / (KTAP ** 0.5)                     # conv fan_in = 1*1*64
    cw = jax.random.uniform(k[0], (NFEAT, KTAP), jnp.float32, -bound_c, bound_c)
    cb = jax.random.uniform(k[1], (NFEAT, 1), jnp.float32, -bound_c, bound_c)
    gamma = jax.random.uniform(k[2], (NFEAT, 1), jnp.float32, -0.1, 0.1)
    beta = jax.random.uniform(k[3], (NFEAT, 1), jnp.float32, -0.1, 0.1)
    bound_l = 1.0 / (NHID ** 0.5)                     # PyTorch LSTM init bound
    w_ih = jax.random.uniform(k[4], (4 * NHID, NFEAT), jnp.float32, -bound_l, bound_l)
    w_hh = jax.random.uniform(k[5], (4 * NHID, NHID), jnp.float32, -bound_l, bound_l)
    b_ih = jax.random.uniform(k[6], (4 * NHID,), jnp.float32, -bound_l, bound_l)
    b_hh = jax.random.uniform(k[7], (4 * NHID,), jnp.float32, -bound_l, bound_l)
    # NOTE: self.fc and self.softmax1 in the PyTorch module are unused in forward.
    params = (cw, cb, gamma, beta, w_ih, w_hh, b_ih, b_hh)

    # Small input: batch=2, 1 channel, height=1, time=64 -> LSTM seq len = 8.
    x = jax.random.normal(k[8], (2, 1, 1, 64), jnp.float32)

    out = jax.block_until_ready(cnnlstm_forward(x, params))
    ref = cnnlstm_reference(x, params)
    assert out.shape == (2, 2), out.shape
    assert jnp.allclose(out, ref, atol=2e-3, rtol=2e-3), (out, ref)
    print("KERNEL_OK")
</pallas_src>

<mosaic_0001>
module attributes {stable_mosaic.version = 11 : i64} {
  func.func @cnnlstm_kernel(%arg0: memref<2x127xf32, #tpu.memory_space<vmem>>, %arg1: memref<32x64xf32, #tpu.memory_space<vmem>>, %arg2: memref<32x1xf32, #tpu.memory_space<vmem>>, %arg3: memref<32x1xf32, #tpu.memory_space<vmem>>, %arg4: memref<32x1xf32, #tpu.memory_space<vmem>>, %arg5: memref<8x32xf32, #tpu.memory_space<vmem>>, %arg6: memref<8x2xf32, #tpu.memory_space<vmem>>, %arg7: memref<8x1xf32, #tpu.memory_space<vmem>>, %arg8: memref<64x8xf32, #tpu.memory_space<vmem>>, %arg9: memref<2x2xf32, #tpu.memory_space<vmem>>, %arg10: memref<64x64xf32, #tpu.memory_space<vmem>>, %arg11: memref<2x32x64xf32, #tpu.memory_space<vmem>>, %arg12: memref<8x8x2xf32, #tpu.memory_space<vmem>>) attributes {dimension_semantics = [], scalar_prefetch = 0 : i64, scratch_operands = 3 : i64, tpu.core_type = #tpu.core_type<tc>} {
    %c0 = arith.constant 0 : index
    %c0_0 = arith.constant 0 : index
    %0 = vector.load %arg1[%c0, %c0_0] : memref<32x64xf32, #tpu.memory_space<vmem>>, vector<32x64xf32>
    %c0_1 = arith.constant 0 : index
    %c0_2 = arith.constant 0 : index
    %1 = vector.load %arg2[%c0_1, %c0_2] : memref<32x1xf32, #tpu.memory_space<vmem>>, vector<32x1xf32>
    %cst = arith.constant 0.000000e+00 : f32
    %2 = vector.broadcast %cst : f32 to vector<32x1xf32>
    %c0_3 = arith.constant 0 : index
    %c0_4 = arith.constant 0 : index
    %3 = vector.load %arg0[%c0_3, %c0_4] : memref<2x127xf32, #tpu.memory_space<vmem>>, vector<1x64xf32>
    %c0_5 = arith.constant 0 : index
    %c0_6 = arith.constant 0 : index
    %4 = vector.load %arg10[%c0_5, %c0_6] : memref<64x64xf32, #tpu.memory_space<vmem>>, vector<1x64xf32>
    tpu.vector_store %arg10[%c0_5, %c0_6], %3 {strides = array<i32>} : memref<64x64xf32, #tpu.memory_space<vmem>>, vector<1x64xf32>,
    %c0_7 = arith.constant 0 : index
    %c1 = arith.constant 1 : index
    %5 = vector.load %arg0[%c0_7, %c1] : memref<2x127xf32, #tpu.memory_space<vmem>>, vector<1x64xf32>
    %c1_8 = arith.constant 1 : index
    %c0_9 = arith.constant 0 : index
    %6 = vector.load %arg10[%c1_8, %c0_9] : memref<64x64xf32, #tpu.memory_space<vmem>>, vector<1x64xf32>
    tpu.vector_store %arg10[%c1_8, %c0_9], %5 {strides = array<i32>} : memref<64x64xf32, #tpu.memory_space<vmem>>, vector<1x64xf32>,
    %c0_10 = arith.constant 0 : index
    %c2 = arith.constant 2 : index
    %7 = vector.load %arg0[%c0_10, %c2] : memref<2x127xf32, #tpu.memory_space<vmem>>, vector<1x64xf32>
    %c2_11 = arith.constant 2 : index
    %c0_12 = arith.constant 0 : index
    %8 = vector.load %arg10[%c2_11, %c0_12] : memref<64x64xf32, #tpu.memory_space<vmem>>, vector<1x64xf32>
    tpu.vector_store %arg10[%c2_11, %c0_12], %7 {strides = array<i32>} : memref<64x64xf32, #tpu.memory_space<vmem>>, vector<1x64xf32>,
    %c0_13 = arith.constant 0 : index
    %c3 = arith.constant 3 : index
    %9 = vector.load %arg0[%c0_13, %c3] : memref<2x127xf32, #tpu.memory_space<vmem>>, vector<1x64xf32>
    %c3_14 = arith.constant 3 : index
    %c0_15 = arith.constant 0 : index
    %10 = vector.load %arg10[%c3_14, %c0_15] : memref<64x64xf32, #tpu.memory_space<vmem>>, vector<1x64xf32>
    tpu.vector_store %arg10[%c3_14, %c0_15], %9 {strides = array<i32>} : memref<64x64xf32, #tpu.memory_space<vmem>>, vector<1x64xf32>,
    %c0_16 = arith.constant 0 : index
    %c4 = arith.constant 4 : index
    %11 = vector.load %arg0[%c0_16, %c4] : memref<2x127xf32, #tpu.memory_space<vmem>>, vector<1x64xf32>
    %c4_17 = arith.constant 4 : index
    %c0_18 = arith.constant 0 : index
    %12 = vector.load %arg10[%c4_17, %c0_18] : memref<64x64xf32, #tpu.memory_space<vmem>>, vector<1x64xf32>
    tpu.vector_store %arg10[%c4_17, %c0_18], %11 {strides = array<i32>} : memref<64x64xf32, #tpu.memory_space<vmem>>, vector<1x64xf32>,
    %c0_19 = arith.constant 0 : index
    %c5 = arith.constant 5 : index
    %13 = vector.load %arg0[%c0_19, %c5] : memref<2x127xf32, #tpu.memory_space<vmem>>, vector<1x64xf32>
    %c5_20 = arith.constant 5 : index
    %c0_21 = arith.constant 0 : index
    %14 = vector.load %arg10[%c5_20, %c0_21] : memref<64x64xf32, #tpu.memory_space<vmem>>, vector<1x64xf32>
    tpu.vector_store %arg10[%c5_20, %c0_21], %13 {strides = array<i32>} : memref<64x64xf32, #tpu.memory_space<vmem>>, vector<1x64xf32>,
    %c0_22 = arith.constant 0 : index
    %c6 = arith.constant 6 : index
    %15 = vector.load %arg0[%c0_22, %c6] : memref<2x127xf32, #tpu.memory_space<vmem>>, vector<1x64xf32>
    %c6_23 = arith.constant 6 : index
    %c0_24 = arith.constant 0 : index
    %16 = vector.load %arg10[%c6_23, %c0_24] : memref<64x64xf32, #tpu.memory_space<vmem>>, vector<1x64xf32>
    tpu.vector_store %arg10[%c6_23, %c0_24], %15 {strides = array<i32>} : memref<64x64xf32, #tpu.memory_space<vmem>>, vector<1x64xf32>,
    %c0_25 = arith.constant 0 : index
    %c7 = arith.constant 7 : index
    %17 = vector.load %arg0[%c0_25, %c7] : memref<2x127xf32, #tpu.memory_space<vmem>>, vector<1x64xf32>
    %c7_26 = arith.constant 7 : index
    %c0_27 = arith.constant 0 : index
    %18 = vector.load %arg10[%c7_26, %c0_27] : memref<64x64xf32, #tpu.memory_space<vmem>>, vector<1x64xf32>
    tpu.vector_store %arg10[%c7_26, %c0_27], %17 {strides = array<i32>} : memref<64x64xf32, #tpu.memory_space<vmem>>, vector<1x64xf32>,
    %c0_28 = arith.constant 0 : index
    %c8 = arith.constant 8 : index
    %19 = vector.load %arg0[%c0_28, %c8] : memref<2x127xf32, #tpu.memory_space<vmem>>, vector<1x64xf32>
    %c8_29 = arith.constant 8 : index
    %c0_30 = arith.constant 0 : index
    %20 = vector.load %arg10[%c8_29, %c0_30] : memref<64x64xf32, #tpu.memory_space<vmem>>, vector<1x64xf32>
    tpu.vector_store %arg10[%c8_29, %c0_30], %19 {strides = array<i32>} : memref<64x64xf32, #tpu.memory_space<vmem>>, vector<1x64xf32>,
    %c0_31 = arith.constant 0 : index
    %c9 = arith.constant 9 : index
    %21 = vector.load %arg0[%c0_31, %c9] : memref<2x127xf32, #tpu.memory_space<vmem>>, vector<1x64xf32>
    %c9_32 = arith.constant 9 : index
    %c0_33 = arith.constant 0 : index
    %22 = vector.load %arg10[%c9_32, %c0_33] : memref<64x64xf32, #tpu.memory_space<vmem>>, vector<1x64xf32>
    tpu.vector_store %arg10[%c9_32, %c0_33], %21 {strides = array<i32>} : memref<64x64xf32, #tpu.memory_space<vmem>>, vector<1x64xf32>,
    %c0_34 = arith.constant 0 : index
    %c10 = arith.constant 10 : index
    %23 = vector.load %arg0[%c0_34, %c10] : memref<2x127xf32, #tpu.memory_space<vmem>>, vector<1x64xf32>
    %c10_35 = arith.constant 10 : index
    %c0_36 = arith.constant 0 : index
    %24 = vector.load %arg10[%c10_35, %c0_36] : memref<64x64xf32, #tpu.memory_space<vmem>>, vector<1x64xf32>
    tpu.vector_store %arg10[%c10_35, %c0_36], %23 {strides = array<i32>} : memref<64x64xf32, #tpu.memory_space<vmem>>, vector<1x64xf32>,
    %c0_37 = arith.constant 0 : index
    %c11 = arith.constant 11 : index
    %25 = vector.load %arg0[%c0_37, %c11] : memref<2x127xf32, #tpu.memory_space<vmem>>, vector<1x64xf32>
    %c11_38 = arith.constant 11 : index
    %c0_39 = arith.constant 0 : index
    %26 = vector.load %arg10[%c11_38, %c0_39] : memref<64x64xf32, #tpu.memory_space<vmem>>, vector<1x64xf32>
    tpu.vector_store %arg10[%c11_38, %c0_39], %25 {strides = array<i32>} : memref<64x64xf32, #tpu.memory_space<vmem>>, vector<1x64xf32>,
    %c0_40 = arith.constant 0 : index
    %c12 = arith.constant 12 : index
    %27 = vector.load %arg0[%c0_40, %c12] : memref<2x127xf32, #tpu.memory_space<vmem>>, vector<1x64xf32>
    %c12_41 = arith.constant 12 : index
    %c0_42 = arith.constant 0 : index
    %28 = vector.load %arg10[%c12_41, %c0_42] : memref<64x64xf32, #tpu.memory_space<vmem>>, vector<1x64xf32>
    tpu.vector_store %arg10[%c12_41, %c0_42], %27 {strides = array<i32>} : memref<64x64xf32, #tpu.memory_space<vmem>>, vector<1x64xf32>,
    %c0_43 = arith.constant 0 : index
    %c13 = arith.constant 13 : index
    %29 = vector.load %arg0[%c0_43, %c13] : memref<2x127xf32, #tpu.memory_space<vmem>>, vector<1x64xf32>
    %c13_44 = arith.constant 13 : index
    %c0_45 = arith.constant 0 : index
    %30 = vector.load %arg10[%c13_44, %c0_45] : memref<64x64xf32, #tpu.memory_space<vmem>>, vector<1x64xf32>
    tpu.vector_store %arg10[%c13_44, %c0_45], %29 {strides = array<i32>} : memref<64x64xf32, #tpu.memory_space<vmem>>, vector<1x64xf32>,
    %c0_46 = arith.constant 0 : index
    %c14 = arith.constant 14 : index
    %31 = vector.load %arg0[%c0_46, %c14] : memref<2x127xf32, #tpu.memory_space<vmem>>, vector<1x64xf32>
    %c14_47 = arith.constant 14 : index
    %c0_48 = arith.constant 0 : index
    %32 = vector.load %arg10[%c14_47, %c0_48] : memref<64x64xf32, #tpu.memory_space<vmem>>, vector<1x64xf32>
    tpu.vector_store %arg10[%c14_47, %c0_48], %31 {strides = array<i32>} : memref<64x64xf32, #tpu.memory_space<vmem>>, vector<1x64xf32>,
    %c0_49 = arith.constant 0 : index
    %c15 = arith.constant 15 : index
    %33 = vector.load %arg0[%c0_49, %c15] : memref<2x127xf32, #tpu.memory_space<vmem>>, vector<1x64xf32>
    %c15_50 = arith.constant 15 : index
    %c0_51 = arith.constant 0 : index
    %34 = vector.load %arg10[%c15_50, %c0_51] : memref<64x64xf32, #tpu.memory_space<vmem>>, vector<1x64xf32>
    tpu.vector_store %arg10[%c15_50, %c0_51], %33 {strides = array<i32>} : memref<64x64xf32, #tpu.memory_space<vmem>>, vector<1x64xf32>,
    %c0_52 = arith.constant 0 : index
    %c16 = arith.constant 16 : index
    %35 = vector.load %arg0[%c0_52, %c16] : memref<2x127xf32, #tpu.memory_space<vmem>>, vector<1x64xf32>
    %c16_53 = arith.constant 16 : index
    %c0_54 = arith.constant 0 : index
    %36 = vector.load %arg10[%c16_53, %c0_54] : memref<64x64xf32, #tpu.memory_space<vmem>>, vector<1x64xf32>
    tpu.vector_store %arg10[%c16_53, %c0_54], %35 {strides = array<i32>} : memref<64x64xf32, #tpu.memory_space<vmem>>, vector<1x64xf32>,
    %c0_55 = arith.constant 0 : index
    %c17 = arith.constant 17 : index
    %37 = vector.load %arg0[%c0_55, %c17] : memref<2x127xf32, #tpu.memory_space<vmem>>, vector<1x64xf32>
    %c17_56 = arith.constant 17 : index
    %c0_57 = arith.constant 0 : index
    %38 = vector.load %arg10[%c17_56, %c0_57] : memref<64x64xf32, #tpu.memory_space<vmem>>, vector<1x64xf32>
    tpu.vector_store %arg10[%c17_56, %c0_57], %37 {strides = array<i32>} : memref<64x64xf32, #tpu.memory_space<vmem>>, vector<1x64xf32>,
    %c0_58 = arith.constant 0 : index
    %c18 = arith.constant 18 : index
    %39 = vector.load %arg0[%c0_58, %c18] : memref<2x127xf32, #tpu.memory_space<vmem>>, vector<1x64xf32>
    %c18_59 = arith.constant 18 : index
    %c0_60 = arith.constant 0 : index
    %40 = vector.load %arg10[%c18_59, %c0_60] : memref<64x64xf32, #tpu.memory_space<vmem>>, vector<1x64xf32>
    tpu.vector_store %arg10[%c18_59, %c0_60], %39 {strides = array<i32>} : memref<64x64xf32, #tpu.memory_space<vmem>>, vector<1x64xf32>,
    %c0_61 = arith.constant 0 : index
    %c19 = arith.constant 19 : index
    %41 = vector.load %arg0[%c0_61, %c19] : memref<2x127xf32, #tpu.memory_space<vmem>>, vector<1x64xf32>
    %c19_62 = arith.constant 19 : index
    %c0_63 = arith.constant 0 : index
    %42 = vector.load %arg10[%c19_62, %c0_63] : memref<64x64xf32, #tpu.memory_space<vmem>>, vector<1x64xf32>
    tpu.vector_store %arg10[%c19_62, %c0_63], %41 {strides = array<i32>} : memref<64x64xf32, #tpu.memory_space<vmem>>, vector<1x64xf32>,
    %c0_64 = arith.constant 0 : index
    %c20 = arith.constant 20 : index
    %43 = vector.load %arg0[%c0_64, %c20] : memref<2x127xf32, #tpu.memory_space<vmem>>, vector<1x64xf32>
    %c20_65 = arith.constant 20 : index
    %c0_66 = arith.constant 0 : index
    %44 = vector.load %arg10[%c20_65, %c0_66] : memref<64x64xf32, #tpu.memory_space<vmem>>, vector<1x64xf32>
    tpu.vector_store %arg10[%c20_65, %c0_66], %43 {strides = array<i32>} : memref<64x64xf32, #tpu.memory_space<vmem>>, vector<1x64xf32>,
    %c0_67 = arith.constant 0 : index
    %c21 = arith.constant 21 : index
    %45 = vector.load %arg0[%c0_67, %c21] : memref<2x127xf32, #tpu.memory_space<vmem>>, vector<1x64xf32>
    %c21_68 = arith.constant 21 : index
    %c0_69 = arith.constant 0 : index
    %46 = vector.load %arg10[%c21_68, %c0_69] : memref<64x64xf32, #tpu.memory_space<vmem>>, vector<1x64xf32>
    tpu.vector_store %arg10[%c21_68, %c0_69], %45 {strides = array<i32>} : memref<64x64xf32, #tpu.memory_space<vmem>>, vector<1x64xf32>,
    %c0_70 = arith.constant 0 : index
    %c22 = arith.constant 22 : index
    %47 = vector.load %arg0[%c0_70, %c22] : memref<2x127xf32, #tpu.memory_space<vmem>>, vector<1x64xf32>
    %c22_71 = arith.constant 22 : index
    %c0_72 = arith.constant 0 : index
    %48 = vector.load %arg10[%c22_71, %c0_72] : memref<64x64xf32, #tpu.memory_space<vmem>>, vector<1x64xf32>
    tpu.vector_store %arg10[%c22_71, %c0_72], %47 {strides = array<i32>} : memref<64x64xf32, #tpu.memory_space<vmem>>, vector<1x64xf32>,
    %c0_73 = arith.constant 0 : index
    %c23 = arith.constant 23 : index
    %49 = vector.load %arg0[%c0_73, %c23] : memref<2x127xf32, #tpu.memory_space<vmem>>, vector<1x64xf32>
    %c23_74 = arith.constant 23 : index
    %c0_75 = arith.constant 0 : index
    %50 = vector.load %arg10[%c23_74, %c0_75] : memref<64x64xf32, #tpu.memory_space<vmem>>, vector<1x64xf32>
    tpu.vector_store %arg10[%c23_74, %c0_75], %49 {strides = array<i32>} : memref<64x64xf32, #tpu.memory_space<vmem>>, vector<1x64xf32>,
    %c0_76 = arith.constant 0 : index
    %c24 = arith.constant 24 : index
    %51 = vector.load %arg0[%c0_76, %c24] : memref<2x127xf32, #tpu.memory_space<vmem>>, vector<1x64xf32>
    %c24_77 = arith.constant 24 : index
    %c0_78 = arith.constant 0 : index
    %52 = vector.load %arg10[%c24_77, %c0_78] : memref<64x64xf32, #tpu.memory_space<vmem>>, vector<1x64xf32>
    tpu.vector_store %arg10[%c24_77, %c0_78], %51 {strides = array<i32>} : memref<64x64xf32, #tpu.memory_space<vmem>>, vector<1x64xf32>,
    %c0_79 = arith.constant 0 : index
    %c25 = arith.constant 25 : index
    %53 = vector.load %arg0[%c0_79, %c25] : memref<2x127xf32, #tpu.memory_space<vmem>>, vector<1x64xf32>
    %c25_80 = arith.constant 25 : index
    %c0_81 = arith.constant 0 : index
    %54 = vector.load %arg10[%c25_80, %c0_81] : memref<64x64xf32, #tpu.memory_space<vmem>>, vector<1x64xf32>
    tpu.vector_store %arg10[%c25_80, %c0_81], %53 {strides = array<i32>} : memref<64x64xf32, #tpu.memory_space<vmem>>, vector<1x64xf32>,
    %c0_82 = arith.constant 0 : index
    %c26 = arith.constant 26 : index
    %55 = vector.load %arg0[%c0_82, %c26] : memref<2x127xf32, #tpu.memory_space<vmem>>, vector<1x64xf32>
    %c26_83 = arith.constant 26 : index
    %c0_84 = arith.constant 0 : index
    %56 = vector.load %arg10[%c26_83, %c0_84] : memref<64x64xf32, #tpu.memory_space<vmem>>, vector<1x64xf32>
    tpu.vector_store %arg10[%c26_83, %c0_84], %55 {strides = array<i32>} : memref<64x64xf32, #tpu.memory_space<vmem>>, vector<1x64xf32>,
    %c0_85 = arith.constant 0 : index
    %c27 = arith.constant 27 : index
    %57 = vector.load %arg0[%c0_85, %c27] : memref<2x127xf32, #tpu.memory_space<vmem>>, vector<1x64xf32>
    %c27_86 = arith.constant 27 : index
    %c0_87 = arith.constant 0 : index
    %58 = vector.load %arg10[%c27_86, %c0_87] : memref<64x64xf32, #tpu.memory_space<vmem>>, vector<1x64xf32>
    tpu.vector_store %arg10[%c27_86, %c0_87], %57 {strides = array<i32>} : memref<64x64xf32, #tpu.memory_space<vmem>>, vector<1x64xf32>,
    %c0_88 = arith.constant 0 : index
    %c28 = arith.constant 28 : index
    %59 = vector.load %arg0[%c0_88, %c28] : memref<2x127xf32, #tpu.memory_space<vmem>>, vector<1x64xf32>
    %c28_89 = arith.constant 28 : index
    %c0_90 = arith.constant 0 : index
    %60 = vector.load %arg10[%c28_89, %c0_90] : memref<64x64xf32, #tpu.memory_space<vmem>>, vector<1x64xf32>
    tpu.vector_store %arg10[%c28_89, %c0_90], %59 {strides = array<i32>} : memref<64x64xf32, #tpu.memory_space<vmem>>, vector<1x64xf32>,
    %c0_91 = arith.constant 0 : index
    %c29 = arith.constant 29 : index
    %61 = vector.load %arg0[%c0_91, %c29] : memref<2x127xf32, #tpu.memory_space<vmem>>, vector<1x64xf32>
    %c29_92 = arith.constant 29 : index
    %c0_93 = arith.constant 0 : index
    %62 = vector.load %arg10[%c29_92, %c0_93] : memref<64x64xf32, #tpu.memory_space<vmem>>, vector<1x64xf32>
    tpu.vector_store %arg10[%c29_92, %c0_93], %61 {strides = array<i32>} : memref<64x64xf32, #tpu.memory_space<vmem>>, vector<1x64xf32>,
    %c0_94 = arith.constant 0 : index
    %c30 = arith.constant 30 : index
    %63 = vector.load %arg0[%c0_94, %c30] : memref<2x127xf32, #tpu.memory_space<vmem>>, vector<1x64xf32>
    %c30_95 = arith.constant 30 : index
    %c0_96 = arith.constant 0 : index
    %64 = vector.load %arg10[%c30_95, %c0_96] : memref<64x64xf32, #tpu.memory_space<vmem>>, vector<1x64xf32>
    tpu.vector_store %arg10[%c30_95, %c0_96], %63 {strides = array<i32>} : memref<64x64xf32, #tpu.memory_space<vmem>>, vector<1x64xf32>,
    %c0_97 = arith.constant 0 : index
    %c31 = arith.constant 31 : index
    %65 = vector.load %arg0[%c0_97, %c31] : memref<2x127xf32, #tpu.memory_space<vmem>>, vector<1x64xf32>
    %c31_98 = arith.constant 31 : index
    %c0_99 = arith.constant 0 : index
    %66 = vector.load %arg10[%c31_98, %c0_99] : memref<64x64xf32, #tpu.memory_space<vmem>>, vector<1x64xf32>
    tpu.vector_store %arg10[%c31_98, %c0_99], %65 {strides = array<i32>} : memref<64x64xf32, #tpu.memory_space<vmem>>, vector<1x64xf32>,
    %c0_100 = arith.constant 0 : index
    %c32 = arith.constant 32 : index
    %67 = vector.load %arg0[%c0_100, %c32] : memref<2x127xf32, #tpu.memory_space<vmem>>, vector<1x64xf32>
    %c32_101 = arith.constant 32 : index
    %c0_102 = arith.constant 0 : index
    %68 = vector.load %arg10[%c32_101, %c0_102] : memref<64x64xf32, #tpu.memory_space<vmem>>, vector<1x64xf32>
    tpu.vector_store %arg10[%c32_101, %c0_102], %67 {strides = array<i32>} : memref<64x64xf32, #tpu.memory_space<vmem>>, vector<1x64xf32>,
    %c0_103 = arith.constant 0 : index
    %c33 = arith.constant 33 : index
    %69 = vector.load %arg0[%c0_103, %c33] : memref<2x127xf32, #tpu.memory_space<vmem>>, vector<1x64xf32>
    %c33_104 = arith.constant 33 : index
    %c0_105 = arith.constant 0 : index
    %70 = vector.load %arg10[%c33_104, %c0_105] : memref<64x64xf32, #tpu.memory_space<vmem>>, vector<1x64xf32>
    tpu.vector_store %arg10[%c33_104, %c0_105], %69 {strides = array<i32>} : memref<64x64xf32, #tpu.memory_space<vmem>>, vector<1x64xf32>,
    %c0_106 = arith.constant 0 : index
    %c34 = arith.constant 34 : index
    %71 = vector.load %arg0[%c0_106, %c34] : memref<2x127xf32, #tpu.memory_space<vmem>>, vector<1x64xf32>
    %c34_107 = arith.constant 34 : index
    %c0_108 = arith.constant 0 : index
    %72 = vector.load %arg10[%c34_107, %c0_108] : memref<64x64xf32, #tpu.memory_space<vmem>>, vector<1x64xf32>
    tpu.vector_store %arg10[%c34_107, %c0_108], %71 {strides = array<i32>} : memref<64x64xf32, #tpu.memory_space<vmem>>, vector<1x64xf32>,
    %c0_109 = arith.constant 0 : index
    %c35 = arith.constant 35 : index
    %73 = vector.load %arg0[%c0_109, %c35] : memref<2x127xf32, #tpu.memory_space<vmem>>, vector<1x64xf32>
    %c35_110 = arith.constant 35 : index
    %c0_111 = arith.constant 0 : index
    %74 = vector.load %arg10[%c35_110, %c0_111] : memref<64x64xf32, #tpu.memory_space<vmem>>, vector<1x64xf32>
    tpu.vector_store %arg10[%c35_110, %c0_111], %73 {strides = array<i32>} : memref<64x64xf32, #tpu.memory_space<vmem>>, vector<1x64xf32>,
    %c0_112 = arith.constant 0 : index
    %c36 = arith.constant 36 : index
    %75 = vector.load %arg0[%c0_112, %c36] : memref<2x127xf32, #tpu.memory_space<vmem>>, vector<1x64xf32>
    %c36_113 = arith.constant 36 : index
    %c0_114 = arith.constant 0 : index
    %76 = vector.load %arg10[%c36_113, %c0_114] : memref<64x64xf32, #tpu.memory_space<vmem>>, vector<1x64xf32>
    tpu.vector_store %arg10[%c36_113, %c0_114], %75 {strides = array<i32>} : memref<64x64xf32, #tpu.memory_space<vmem>>, vector<1x64xf32>,
    %c0_115 = arith.constant 0 : index
    %c37 = arith.constant 37 : index
    %77 = vector.load %arg0[%c0_115, %c37] : memref<2x127xf32, #tpu.memory_space<vmem>>, vector<1x64xf32>
    %c37_116 = arith.constant 37 : index
    %c0_117 = arith.constant 0 : index
    %78 = vector.load %arg10[%c37_116, %c0_117] : memref<64x64xf32, #tpu.memory_space<vmem>>, vector<1x64xf32>
    tpu.vector_store %arg10[%c37_116, %c0_117], %77 {strides = array<i32>} : memref<64x64xf32, #tpu.memory_space<vmem>>, vector<1x64xf32>,
    %c0_118 = arith.constant 0 : index
    %c38 = arith.constant 38 : index
    %79 = vector.load %arg0[%c0_118, %c38] : memref<2x127xf32, #tpu.memory_space<vmem>>, vector<1x64xf32>
    %c38_119 = arith.constant 38 : index
    %c0_120 = arith.constant 0 : index
    %80 = vector.load %arg10[%c38_119, %c0_120] : memref<64x64xf32, #tpu.memory_space<vmem>>, vector<1x64xf32>
    tpu.vector_store %arg10[%c38_119, %c0_120], %79 {strides = array<i32>} : memref<64x64xf32, #tpu.memory_space<vmem>>, vector<1x64xf32>,
    %c0_121 = arith.constant 0 : index
    %c39 = arith.constant 39 : index
    %81 = vector.load %arg0[%c0_121, %c39] : memref<2x127xf32, #tpu.memory_space<vmem>>, vector<1x64xf32>
    %c39_122 = arith.constant 39 : index
    %c0_123 = arith.constant 0 : index
    %82 = vector.load %arg10[%c39_122, %c0_123] : memref<64x64xf32, #tpu.memory_space<vmem>>, vector<1x64xf32>
    tpu.vector_store %arg10[%c39_122, %c0_123], %81 {strides = array<i32>} : memref<64x64xf32, #tpu.memory_space<vmem>>, vector<1x64xf32>,
    %c0_124 = arith.constant 0 : index
    %c40 = arith.constant 40 : index
    %83 = vector.load %arg0[%c0_124, %c40] : memref<2x127xf32, #tpu.memory_space<vmem>>, vector<1x64xf32>
    %c40_125 = arith.constant 40 : index
    %c0_126 = arith.constant 0 : index
    %84 = vector.load %arg10[%c40_125, %c0_126] : memref<64x64xf32, #tpu.memory_space<vmem>>, vector<1x64xf32>
    tpu.vector_store %arg10[%c40_125, %c0_126], %83 {strides = array<i32>} : memref<64x64xf32, #tpu.memory_space<vmem>>, vector<1x64xf32>,
    %c0_127 = arith.constant 0 : index
    %c41 = arith.constant 41 : index
    %85 = vector.load %arg0[%c0_127, %c41] : memref<2x127xf32, #tpu.memory_space<vmem>>, vector<1x64xf32>
    %c41_128 = arith.constant 41 : index
    %c0_129 = arith.constant 0 : index
    %86 = vector.load %arg10[%c41_128, %c0_129] : memref<64x64xf32, #tpu.memory_space<vmem>>, vector<1x64xf32>
    tpu.vector_store %arg10[%c41_128, %c0_129], %85 {strides = array<i32>} : memref<64x64xf32, #tpu.memory_space<vmem>>, vector<1x64xf32>,
    %c0_130 = arith.constant 0 : index
    %c42 = arith.constant 42 : index
    %87 = vector.load %arg0[%c0_130, %c42] : memref<2x127xf32, #tpu.memory_space<vmem>>, vector<1x64xf32>
    %c42_131 = arith.constant 42 : index
    %c0_132 = arith.constant 0 : index
    %88 = vector.load %arg10[%c42_131, %c0_132] : memref<64x64xf32, #tpu.memory_space<vmem>>, vector<1x64xf32>
    tpu.vector_store %arg10[%c42_131, %c0_132], %87 {strides = array<i32>} : memref<64x64xf32, #tpu.memory_space<vmem>>, vector<1x64xf32>,
    %c0_133 = arith.constant 0 : index
    %c43 = arith.constant 43 : index
    %89 = vector.load %arg0[%c0_133, %c43] : memref<2x127xf32, #tpu.memory_space<vmem>>, vector<1x64xf32>
    %c43_134 = arith.constant 43 : index
    %c0_135 = arith.constant 0 : index
    %90 = vector.load %arg10[%c43_134, %c0_135] : memref<64x64xf32, #tpu.memory_space<vmem>>, vector<1x64xf32>
    tpu.vector_store %arg10[%c43_134, %c0_135], %89 {strides = array<i32>} : memref<64x64xf32, #tpu.memory_space<vmem>>, vector<1x64xf32>,
    %c0_136 = arith.constant 0 : index
    %c44 = arith.constant 44 : index
    %91 = vector.load %arg0[%c0_136, %c44] : memref<2x127xf32, #tpu.memory_space<vmem>>, vector<1x64xf32>
    %c44_137 = arith.constant 44 : index
    %c0_138 = arith.constant 0 : index
    %92 = vector.load %arg10[%c44_137, %c0_138] : memref<64x64xf32, #tpu.memory_space<vmem>>, vector<1x64xf32>
    tpu.vector_store %arg10[%c44_137, %c0_138], %91 {strides = array<i32>} : memref<64x64xf32, #tpu.memory_space<vmem>>, vector<1x64xf32>,
    %c0_139 = arith.constant 0 : index
    %c45 = arith.constant 45 : index
    %93 = vector.load %arg0[%c0_139, %c45] : memref<2x127xf32, #tpu.memory_space<vmem>>, vector<1x64xf32>
    %c45_140 = arith.constant 45 : index
    %c0_141 = arith.constant 0 : index
    %94 = vector.load %arg10[%c45_140, %c0_141] : memref<64x64xf32, #tpu.memory_space<vmem>>, vector<1x64xf32>
    tpu.vector_store %arg10[%c45_140, %c0_141], %93 {strides = array<i32>} : memref<64x64xf32, #tpu.memory_space<vmem>>, vector<1x64xf32>,
    %c0_142 = arith.constant 0 : index
    %c46 = arith.constant 46 : index
    %95 = vector.load %arg0[%c0_142, %c46] : memref<2x127xf32, #tpu.memory_space<vmem>>, vector<1x64xf32>
    %c46_143 = arith.constant 46 : index
    %c0_144 = arith.constant 0 : index
    %96 = vector.load %arg10[%c46_143, %c0_144] : memref<64x64xf32, #tpu.memory_space<vmem>>, vector<1x64xf32>
    tpu.vector_store %arg10[%c46_143, %c0_144], %95 {strides = array<i32>} : memref<64x64xf32, #tpu.memory_space<vmem>>, vector<1x64xf32>,
    %c0_145 = arith.constant 0 : index
    %c47 = arith.constant 47 : index
    %97 = vector.load %arg0[%c0_145, %c47] : memref<2x127xf32, #tpu.memory_space<vmem>>, vector<1x64xf32>
    %c47_146 = arith.constant 47 : index
    %c0_147 = arith.constant 0 : index
    %98 = vector.load %arg10[%c47_146, %c0_147] : memref<64x64xf32, #tpu.memory_space<vmem>>, vector<1x64xf32>
    tpu.vector_store %arg10[%c47_146, %c0_147], %97 {strides = array<i32>} : memref<64x64xf32, #tpu.memory_space<vmem>>, vector<1x64xf32>,
    %c0_148 = arith.constant 0 : index
    %c48 = arith.constant 48 : index
    %99 = vector.load %arg0[%c0_148, %c48] : memref<2x127xf32, #tpu.memory_space<vmem>>, vector<1x64xf32>
    %c48_149 = arith.constant 48 : index
    %c0_150 = arith.constant 0 : index
    %100 = vector.load %arg10[%c48_149, %c0_150] : memref<64x64xf32, #tpu.memory_space<vmem>>, vector<1x64xf32>
    tpu.vector_store %arg10[%c48_149, %c0_150], %99 {strides = array<i32>} : memref<64x64xf32, #tpu.memory_space<vmem>>, vector<1x64xf32>,
    %c0_151 = arith.constant 0 : index
    %c49 = arith.constant 49 : index
    %101 = vector.load %arg0[%c0_151, %c49] : memref<2x127xf32, #tpu.memory_space<vmem>>, vector<1x64xf32>
    %c49_152 = arith.constant 49 : index
    %c0_153 = arith.constant 0 : index
    %102 = vector.load %arg10[%c49_152, %c0_153] : memref<64x64xf32, #tpu.memory_space<vmem>>, vector<1x64xf32>
    tpu.vector_store %arg10[%c49_152, %c0_153], %101 {strides = array<i32>} : memref<64x64xf32, #tpu.memory_space<vmem>>, vector<1x64xf32>,
    %c0_154 = arith.constant 0 : index
    %c50 = arith.constant 50 : index
    %103 = vector.load %arg0[%c0_154, %c50] : memref<2x127xf32, #tpu.memory_space<vmem>>, vector<1x64xf32>
    %c50_155 = arith.constant 50 : index
    %c0_156 = arith.constant 0 : index
    %104 = vector.load %arg10[%c50_155, %c0_156] : memref<64x64xf32, #tpu.memory_space<vmem>>, vector<1x64xf32>
    tpu.vector_store %arg10[%c50_155, %c0_156], %103 {strides = array<i32>} : memref<64x64xf32, #tpu.memory_space<vmem>>, vector<1x64xf32>,
    %c0_157 = arith.constant 0 : index
    %c51 = arith.constant 51 : index
    %105 = vector.load %arg0[%c0_157, %c51] : memref<2x127xf32, #tpu.memory_space<vmem>>, vector<1x64xf32>
    %c51_158 = arith.constant 51 : index
    %c0_159 = arith.constant 0 : index
    %106 = vector.load %arg10[%c51_158, %c0_159] : memref<64x64xf32, #tpu.memory_space<vmem>>, vector<1x64xf32>
    tpu.vector_store %arg10[%c51_158, %c0_159], %105 {strides = array<i32>} : memref<64x64xf32, #tpu.memory_space<vmem>>, vector<1x64xf32>,
    %c0_160 = arith.constant 0 : index
    %c52 = arith.constant 52 : index
    %107 = vector.load %arg0[%c0_160, %c52] : memref<2x127xf32, #tpu.memory_space<vmem>>, vector<1x64xf32>
    %c52_161 = arith.constant 52 : index
    %c0_162 = arith.constant 0 : index
    %108 = vector.load %arg10[%c52_161, %c0_162] : memref<64x64xf32, #tpu.memory_space<vmem>>, vector<1x64xf32>
    tpu.vector_store %arg10[%c52_161, %c0_162], %107 {strides = array<i32>} : memref<64x64xf32, #tpu.memory_space<vmem>>, vector<1x64xf32>,
    %c0_163 = arith.constant 0 : index
    %c53 = arith.constant 53 : index
    %109 = vector.load %arg0[%c0_163, %c53] : memref<2x127xf32, #tpu.memory_space<vmem>>, vector<1x64xf32>
    %c53_164 = arith.constant 53 : index
    %c0_165 = arith.constant 0 : index
    %110 = vector.load %arg10[%c53_164, %c0_165] : memref<64x64xf32, #tpu.memory_space<vmem>>, vector<1x64xf32>
    tpu.vector_store %arg10[%c53_164, %c0_165], %109 {strides = array<i32>} : memref<64x64xf32, #tpu.memory_space<vmem>>, vector<1x64xf32>,
    %c0_166 = arith.constant 0 : index
    %c54 = arith.constant 54 : index
    %111 = vector.load %arg0[%c0_166, %c54] : memref<2x127xf32, #tpu.memory_space<vmem>>, vector<1x64xf32>
    %c54_167 = arith.constant 54 : index
    %c0_168 = arith.constant 0 : index
    %112 = vector.load %arg10[%c54_167, %c0_168] : memref<64x64xf32, #tpu.memory_space<vmem>>, vector<1x64xf32>
    tpu.vector_store %arg10[%c54_167, %c0_168], %111 {strides = array<i32>} : memref<64x64xf32, #tpu.memory_space<vmem>>, vector<1x64xf32>,
    %c0_169 = arith.constant 0 : index
    %c55 = arith.constant 55 : index
    %113 = vector.load %arg0[%c0_169, %c55] : memref<2x127xf32, #tpu.memory_space<vmem>>, vector<1x64xf32>
    %c55_170 = arith.constant 55 : index
    %c0_171 = arith.constant 0 : index
    %114 = vector.load %arg10[%c55_170, %c0_171] : memref<64x64xf32, #tpu.memory_space<vmem>>, vector<1x64xf32>
    tpu.vector_store %arg10[%c55_170, %c0_171], %113 {strides = array<i32>} : memref<64x64xf32, #tpu.memory_space<vmem>>, vector<1x64xf32>,
    %c0_172 = arith.constant 0 : index
    %c56 = arith.constant 56 : index
    %115 = vector.load %arg0[%c0_172, %c56] : memref<2x127xf32, #tpu.memory_space<vmem>>, vector<1x64xf32>
    %c56_173 = arith.constant 56 : index
    %c0_174 = arith.constant 0 : index
    %116 = vector.load %arg10[%c56_173, %c0_174] : memref<64x64xf32, #tpu.memory_space<vmem>>, vector<1x64xf32>
    tpu.vector_store %arg10[%c56_173, %c0_174], %115 {strides = array<i32>} : memref<64x64xf32, #tpu.memory_space<vmem>>, vector<1x64xf32>,
    %c0_175 = arith.constant 0 : index
    %c57 = arith.constant 57 : index
    %117 = vector.load %arg0[%c0_175, %c57] : memref<2x127xf32, #tpu.memory_space<vmem>>, vector<1x64xf32>
    %c57_176 = arith.constant 57 : index
    %c0_177 = arith.constant 0 : index
    %118 = vector.load %arg10[%c57_176, %c0_177] : memref<64x64xf32, #tpu.memory_space<vmem>>, vector<1x64xf32>
    tpu.vector_store %arg10[%c57_176, %c0_177], %117 {strides = array<i32>} : memref<64x64xf32, #tpu.memory_space<vmem>>, vector<1x64xf32>,
    %c0_178 = arith.constant 0 : index
    %c58 = arith.constant 58 : index
    %119 = vector.load %arg0[%c0_178, %c58] : memref<2x127xf32, #tpu.memory_space<vmem>>, vector<1x64xf32>
    %c58_179 = arith.constant 58 : index
    %c0_180 = arith.constant 0 : index
    %120 = vector.load %arg10[%c58_179, %c0_180] : memref<64x64xf32, #tpu.memory_space<vmem>>, vector<1x64xf32>
    tpu.vector_store %arg10[%c58_179, %c0_180], %119 {strides = array<i32>} : memref<64x64xf32, #tpu.memory_space<vmem>>, vector<1x64xf32>,
    %c0_181 = arith.constant 0 : index
    %c59 = arith.constant 59 : index
    %121 = vector.load %arg0[%c0_181, %c59] : memref<2x127xf32, #tpu.memory_space<vmem>>, vector<1x64xf32>
    %c59_182 = arith.constant 59 : index
    %c0_183 = arith.constant 0 : index
    %122 = vector.load %arg10[%c59_182, %c0_183] : memref<64x64xf32, #tpu.memory_space<vmem>>, vector<1x64xf32>
    tpu.vector_store %arg10[%c59_182, %c0_183], %121 {strides = array<i32>} : memref<64x64xf32, #tpu.memory_space<vmem>>, vector<1x64xf32>,
    %c0_184 = arith.constant 0 : index
    %c60 = arith.constant 60 : index
    %123 = vector.load %arg0[%c0_184, %c60] : memref<2x127xf32, #tpu.memory_space<vmem>>, vector<1x64xf32>
    %c60_185 = arith.constant 60 : index
    %c0_186 = arith.constant 0 : index
    %124 = vector.load %arg10[%c60_185, %c0_186] : memref<64x64xf32, #tpu.memory_space<vmem>>, vector<1x64xf32>
    tpu.vector_store %arg10[%c60_185, %c0_186], %123 {strides = array<i32>} : memref<64x64xf32, #tpu.memory_space<vmem>>, vector<1x64xf32>,
    %c0_187 = arith.constant 0 : index
    %c61 = arith.constant 61 : index
    %125 = vector.load %arg0[%c0_187, %c61] : memref<2x127xf32, #tpu.memory_space<vmem>>, vector<1x64xf32>
    %c61_188 = arith.constant 61 : index
    %c0_189 = arith.constant 0 : index
    %126 = vector.load %arg10[%c61_188, %c0_189] : memref<64x64xf32, #tpu.memory_space<vmem>>, vector<1x64xf32>
    tpu.vector_store %arg10[%c61_188, %c0_189], %125 {strides = array<i32>} : memref<64x64xf32, #tpu.memory_space<vmem>>, vector<1x64xf32>,
    %c0_190 = arith.constant 0 : index
    %c62 = arith.constant 62 : index
    %127 = vector.load %arg0[%c0_190, %c62] : memref<2x127xf32, #tpu.memory_space<vmem>>, vector<1x64xf32>
    %c62_191 = arith.constant 62 : index
    %c0_192 = arith.constant 0 : index
    %128 = vector.load %arg10[%c62_191, %c0_192] : memref<64x64xf32, #tpu.memory_space<vmem>>, vector<1x64xf32>
    tpu.vector_store %arg10[%c62_191, %c0_192], %127 {strides = array<i32>} : memref<64x64xf32, #tpu.memory_space<vmem>>, vector<1x64xf32>,
    %c0_193 = arith.constant 0 : index
    %c63 = arith.constant 63 : index
    %129 = vector.load %arg0[%c0_193, %c63] : memref<2x127xf32, #tpu.memory_space<vmem>>, vector<1x64xf32>
    %c63_194 = arith.constant 63 : index
    %c0_195 = arith.constant 0 : index
    %130 = vector.load %arg10[%c63_194, %c0_195] : memref<64x64xf32, #tpu.memory_space<vmem>>, vector<1x64xf32>
    tpu.vector_store %arg10[%c63_194, %c0_195], %129 {strides = array<i32>} : memref<64x64xf32, #tpu.memory_space<vmem>>, vector<1x64xf32>,
    %c0_196 = arith.constant 0 : index
    %c0_197 = arith.constant 0 : index
    %131 = vector.load %arg10[%c0_196, %c0_197] : memref<64x64xf32, #tpu.memory_space<vmem>>, vector<64x64xf32>
    %cst_198 = arith.constant dense<0.000000e+00> : vector<32x64xf32>
    %132 = tpu.matmul %0, %131, %cst_198 {dimension_numbers = #tpu.dot_dimension_numbers<[1], [0], [0], [1], [0, 0, 1, 1], [], []>} : vector<32x64xf32>, vector<64x64xf32>, vector<32x64xf32> -> vector<32x64xf32>
    %133 = vector.broadcast %1 : vector<32x1xf32> to vector<32x64xf32>
    %134 = arith.addf %132, %133 : vector<32x64xf32>
    %c0_199 = arith.constant 0 : index
    %c0_200 = arith.constant 0 : index
    %c0_201 = arith.constant 0 : index
    %135 = vector.load %arg11[%c0_199, %c0_200, %c0_201] : memref<2x32x64xf32, #tpu.memory_space<vmem>>, vector<1x32x64xf32>
    %136 = vector.shape_cast %135 : vector<1x32x64xf32> to vector<32x64xf32>
    %137 = vector.shape_cast %134 : vector<32x64xf32> to vector<1x32x64xf32>
    tpu.vector_store %arg11[%c0_199, %c0_200, %c0_201], %137 {strides = array<i32>} : memref<2x32x64xf32, #tpu.memory_space<vmem>>, vector<1x32x64xf32>,
    %cst_202 = arith.constant dense<0.000000e+00> : vector<32xf32>
    %138 = vector.multi_reduction <add>, %134, %cst_202 [1] : vector<32x64xf32> to vector<32xf32>
    %139 = vector.shape_cast %138 : vector<32xf32> to vector<32x1xf32>
    %140 = arith.addf %2, %139 : vector<32x1xf32>
    %c1_203 = arith.constant 1 : index
    %c0_204 = arith.constant 0 : index
    %141 = vector.load %arg0[%c1_203, %c0_204] : memref<2x127xf32, #tpu.memory_space<vmem>>, vector<1x64xf32>
    %c0_205 = arith.constant 0 : index
    %c0_206 = arith.constant 0 : index
    %142 = vector.load %arg10[%c0_205, %c0_206] : memref<64x64xf32, #tpu.memory_space<vmem>>, vector<1x64xf32>
    tpu.vector_store %arg10[%c0_205, %c0_206], %141 {strides = array<i32>} : memref<64x64xf32, #tpu.memory_space<vmem>>, vector<1x64xf32>,
    %c1_207 = arith.constant 1 : index
    %c1_208 = arith.constant 1 : index
    %143 = vector.load %arg0[%c1_207, %c1_208] : memref<2x127xf32, #tpu.memory_space<vmem>>, vector<1x64xf32>
    %c1_209 = arith.constant 1 : index
    %c0_210 = arith.constant 0 : index
    %144 = vector.load %arg10[%c1_209, %c0_210] : memref<64x64xf32, #tpu.memory_space<vmem>>, vector<1x64xf32>
    tpu.vector_store %arg10[%c1_209, %c0_210], %143 {strides = array<i32>} : memref<64x64xf32, #tpu.memory_space<vmem>>, vector<1x64xf32>,
    %c1_211 = arith.constant 1 : index
    %c2_212 = arith.constant 2 : index
    %145 = vector.load %arg0[%c1_211, %c2_212] : memref<2x127xf32, #tpu.memory_space<vmem>>, vector<1x64xf32>
    %c2_213 = arith.constant 2 : index
    %c0_214 = arith.constant 0 : index
    %146 = vector.load %arg10[%c2_213, %c0_214] : memref<64x64xf32, #tpu.memory_space<vmem>>, vector<1x64xf32>
    tpu.vector_store %arg10[%c2_213, %c0_214], %145 {strides = array<i32>} : memref<64x64xf32, #tpu.memory_space<vmem>>, vector<1x64xf32>,
    %c1_215 = arith.constant 1 : index
    %c3_216 = arith.constant 3 : index
    %147 = vector.load %arg0[%c1_215, %c3_216] : memref<2x127xf32, #tpu.memory_space<vmem>>, vector<1x64xf32>
    %c3_217 = arith.constant 3 : index
    %c0_218 = arith.constant 0 : index
    %148 = vector.load %arg10[%c3_217, %c0_218] : memref<64x64xf32, #tpu.memory_space<vmem>>, vector<1x64xf32>
    tpu.vector_store %arg10[%c3_217, %c0_218], %147 {strides = array<i32>} : memref<64x64xf32, #tpu.memory_space<vmem>>, vector<1x64xf32>,
    %c1_219 = arith.constant 1 : index
    %c4_220 = arith.constant 4 : index
    %149 = vector.load %arg0[%c1_219, %c4_220] : memref<2x127xf32, #tpu.memory_space<vmem>>, vector<1x64xf32>
    %c4_221 = arith.constant 4 : index
    %c0_222 = arith.constant 0 : index
    %150 = vector.load %arg10[%c4_221, %c0_222] : memref<64x64xf32, #tpu.memory_space<vmem>>, vector<1x64xf32>
    tpu.vector_store %arg10[%c4_221, %c0_222], %149 {strides = array<i32>} : memref<64x64xf32, #tpu.memory_space<vmem>>, vector<1x64xf32>,
    %c1_223 = arith.constant 1 : index
    %c5_224 = arith.constant 5 : index
    %151 = vector.load %arg0[%c1_223, %c5_224] : memref<2x127xf32, #tpu.memory_space<vmem>>, vector<1x64xf32>
    %c5_225 = arith.constant 5 : index
    %c0_226 = arith.constant 0 : index
    %152 = vector.load %arg10[%c5_225, %c0_226] : memref<64x64xf32, #tpu.memory_space<vmem>>, vector<1x64xf32>
    tpu.vector_store %arg10[%c5_225, %c0_226], %151 {strides = array<i32>} : memref<64x64xf32, #tpu.memory_space<vmem>>, vector<1x64xf32>,
    %c1_227 = arith.constant 1 : index
    %c6_228 = arith.constant 6 : index
    %153 = vector.load %arg0[%c1_227, %c6_228] : memref<2x127xf32, #tpu.memory_space<vmem>>, vector<1x64xf32>
    %c6_229 = arith.constant 6 : index
    %c0_230 = arith.constant 0 : index
    %154 = vector.load %arg10[%c6_229, %c0_230] : memref<64x64xf32, #tpu.memory_space<vmem>>, vector<1x64xf32>
    tpu.vector_store %arg10[%c6_229, %c0_230], %153 {strides = array<i32>} : memref<64x64xf32, #tpu.memory_space<vmem>>, vector<1x64xf32>,
    %c1_231 = arith.constant 1 : index
    %c7_232 = arith.constant 7 : index
    %155 = vector.load %arg0[%c1_231, %c7_232] : memref<2x127xf32, #tpu.memory_space<vmem>>, vector<1x64xf32>
    %c7_233 = arith.constant 7 : index
    %c0_234 = arith.constant 0 : index
    %156 = vector.load %arg10[%c7_233, %c0_234] : memref<64x64xf32, #tpu.memory_space<vmem>>, vector<1x64xf32>
    tpu.vector_store %arg10[%c7_233, %c0_234], %155 {strides = array<i32>} : memref<64x64xf32, #tpu.memory_space<vmem>>, vector<1x64xf32>,
    %c1_235 = arith.constant 1 : index
    %c8_236 = arith.constant 8 : index
    %157 = vector.load %arg0[%c1_235, %c8_236] : memref<2x127xf32, #tpu.memory_space<vmem>>, vector<1x64xf32>
    %c8_237 = arith.constant 8 : index
    %c0_238 = arith.constant 0 : index
    %158 = vector.load %arg10[%c8_237, %c0_238] : memref<64x64xf32, #tpu.memory_space<vmem>>, vector<1x64xf32>
    tpu.vector_store %arg10[%c8_237, %c0_238], %157 {strides = array<i32>} : memref<64x64xf32, #tpu.memory_space<vmem>>, vector<1x64xf32>,
    %c1_239 = arith.constant 1 : index
    %c9_240 = arith.constant 9 : index
    %159 = vector.load %arg0[%c1_239, %c9_240] : memref<2x127xf32, #tpu.memory_space<vmem>>, vector<1x64xf32>
    %c9_241 = arith.constant 9 : index
    %c0_242 = arith.constant 0 : index
    %160 = vector.load %arg10[%c9_241, %c0_242] : memref<64x64xf32, #tpu.memory_space<vmem>>, vector<1x64xf32>
    tpu.vector_store %arg10[%c9_241, %c0_242], %159 {strides = array<i32>} : memref<64x64xf32, #tpu.memory_space<vmem>>, vector<1x64xf32>,
    %c1_243 = arith.constant 1 : index
    %c10_244 = arith.constant 10 : index
    %161 = vector.load %arg0[%c1_243, %c10_244] : memref<2x127xf32, #tpu.memory_space<vmem>>, vector<1x64xf32>
    %c10_245 = arith.constant 10 : index
    %c0_246 = arith.constant 0 : index
    %162 = vector.load %arg10[%c10_245, %c0_246] : memref<64x64xf32, #tpu.memory_space<vmem>>, vector<1x64xf32>
    tpu.vector_store %arg10[%c10_245, %c0_246], %161 {strides = array<i32>} : memref<64x64xf32, #tpu.memory_space<vmem>>, vector<1x64xf32>,
    %c1_247 = arith.constant 1 : index
    %c11_248 = arith.constant 11 : index
    %163 = vector.load %arg0[%c1_247, %c11_248] : memref<2x127xf32, #tpu.memory_space<vmem>>, vector<1x64xf32>
    %c11_249 = arith.constant 11 : index
    %c0_250 = arith.constant 0 : index
    %164 = vector.load %arg10[%c11_249, %c0_250] : memref<64x64xf32, #tpu.memory_space<vmem>>, vector<1x64xf32>
    tpu.vector_store %arg10[%c11_249, %c0_250], %163 {strides = array<i32>} : memref<64x64xf32, #tpu.memory_space<vmem>>, vector<1x64xf32>,
    %c1_251 = arith.constant 1 : index
    %c12_252 = arith.constant 12 : index
    %165 = vector.load %arg0[%c1_251, %c12_252] : memref<2x127xf32, #tpu.memory_space<vmem>>, vector<1x64xf32>
    %c12_253 = arith.constant 12 : index
    %c0_254 = arith.constant 0 : index
    %166 = vector.load %arg10[%c12_253, %c0_254] : memref<64x64xf32, #tpu.memory_space<vmem>>, vector<1x64xf32>
    tpu.vector_store %arg10[%c12_253, %c0_254], %165 {strides = array<i32>} : memref<64x64xf32, #tpu.memory_space<vmem>>, vector<1x64xf32>,
    %c1_255 = arith.constant 1 : index
    %c13_256 = arith.constant 13 : index
    %167 = vector.load %arg0[%c1_255, %c13_256] : memref<2x127xf32, #tpu.memory_space<vmem>>, vector<1x64xf32>
    %c13_257 = arith.constant 13 : index
    %c0_258 = arith.constant 0 : index
    %168 = vector.load %arg10[%c13_257, %c0_258] : memref<64x64xf32, #tpu.memory_space<vmem>>, vector<1x64xf32>
    tpu.vector_store %arg10[%c13_257, %c0_258], %167 {strides = array<i32>} : memref<64x64xf32, #tpu.memory_space<vmem>>, vector<1x64xf32>,
    %c1_259 = arith.constant 1 : index
    %c14_260 = arith.constant 14 : index
    %169 = vector.load %arg0[%c1_259, %c14_260] : memref<2x127xf32, #tpu.memory_space<vmem>>, vector<1x64xf32>
    %c14_261 = arith.constant 14 : index
    %c0_262 = arith.constant 0 : index
    %170 = vector.load %arg10[%c14_261, %c0_262] : memref<64x64xf32, #tpu.memory_space<vmem>>, vector<1x64xf32>
    tpu.vector_store %arg10[%c14_261, %c0_262], %169 {strides = array<i32>} : memref<64x64xf32, #tpu.memory_space<vmem>>, vector<1x64xf32>,
    %c1_263 = arith.constant 1 : index
    %c15_264 = arith.constant 15 : index
    %171 = vector.load %arg0[%c1_263, %c15_264] : memref<2x127xf32, #tpu.memory_space<vmem>>, vector<1x64xf32>
    %c15_265 = arith.constant 15 : index
    %c0_266 = arith.constant 0 : index
    %172 = vector.load %arg10[%c15_265, %c0_266] : memref<64x64xf32, #tpu.memory_space<vmem>>, vector<1x64xf32>
    tpu.vector_store %arg10[%c15_265, %c0_266], %171 {strides = array<i32>} : memref<64x64xf32, #tpu.memory_space<vmem>>, vector<1x64xf32>,
    %c1_267 = arith.constant 1 : index
    %c16_268 = arith.constant 16 : index
    %173 = vector.load %arg0[%c1_267, %c16_268] : memref<2x127xf32, #tpu.memory_space<vmem>>, vector<1x64xf32>
    %c16_269 = arith.constant 16 : index
    %c0_270 = arith.constant 0 : index
    %174 = vector.load %arg10[%c16_269, %c0_270] : memref<64x64xf32, #tpu.memory_space<vmem>>, vector<1x64xf32>
    tpu.vector_store %arg10[%c16_269, %c0_270], %173 {strides = array<i32>} : memref<64x64xf32, #tpu.memory_space<vmem>>, vector<1x64xf32>,
    %c1_271 = arith.constant 1 : index
    %c17_272 = arith.constant 17 : index
    %175 = vector.load %arg0[%c1_271, %c17_272] : memref<2x127xf32, #tpu.memory_space<vmem>>, vector<1x64xf32>
    %c17_273 = arith.constant 17 : index
    %c0_274 = arith.constant 0 : index
    %176 = vector.load %arg10[%c17_273, %c0_274] : memref<64x64xf32, #tpu.memory_space<vmem>>, vector<1x64xf32>
    tpu.vector_store %arg10[%c17_273, %c0_274], %175 {strides = array<i32>} : memref<64x64xf32, #tpu.memory_space<vmem>>, vector<1x64xf32>,
    %c1_275 = arith.constant 1 : index
    %c18_276 = arith.constant 18 : index
    %177 = vector.load %arg0[%c1_275, %c18_276] : memref<2x127xf32, #tpu.memory_space<vmem>>, vector<1x64xf32>
    %c18_277 = arith.constant 18 : index
    %c0_278 = arith.constant 0 : index
    %178 = vector.load %arg10[%c18_277, %c0_278] : memref<64x64xf32, #tpu.memory_space<vmem>>, vector<1x64xf32>
    tpu.vector_store %arg10[%c18_277, %c0_278], %177 {strides = array<i32>} : memref<64x64xf32, #tpu.memory_space<vmem>>, vector<1x64xf32>,
    %c1_279 = arith.constant 1 : index
    %c19_280 = arith.constant 19 : index
    %179 = vector.load %arg0[%c1_279, %c19_280] : memref<2x127xf32, #tpu.memory_space<vmem>>, vector<1x64xf32>
    %c19_281 = arith.constant 19 : index
    %c0_282 = arith.constant 0 : index
    %180 = vector.load %arg10[%c19_281, %c0_282] : memref<64x64xf32, #tpu.memory_space<vmem>>, vector<1x64xf32>
    tpu.vector_store %arg10[%c19_281, %c0_282], %179 {strides = array<i32>} : memref<64x64xf32, #tpu.memory_space<vmem>>, vector<1x64xf32>,
    %c1_283 = arith.constant 1 : index
    %c20_284 = arith.constant 20 : index
    %181 = vector.load %arg0[%c1_283, %c20_284] : memref<2x127xf32, #tpu.memory_space<vmem>>, vector<1x64xf32>
    %c20_285 = arith.constant 20 : index
    %c0_286 = arith.constant 0 : index
    %182 = vector.load %arg10[%c20_285, %c0_286] : memref<64x64xf32, #tpu.memory_space<vmem>>, vector<1x64xf32>
    tpu.vector_store %arg10[%c20_285, %c0_286], %181 {strides = array<i32>} : memref<64x64xf32, #tpu.memory_space<vmem>>, vector<1x64xf32>,
    %c1_287 = arith.constant 1 : index
    %c21_288 = arith.constant 21 : index
    %183 = vector.load %arg0[%c1_287, %c21_288] : memref<2x127xf32, #tpu.memory_space<vmem>>, vector<1x64xf32>
    %c21_289 = arith.constant 21 : index
    %c0_290 = arith.constant 0 : index
    %184 = vector.load %arg10[%c21_289, %c0_290] : memref<64x64xf32, #tpu.memory_space<vmem>>, vector<1x64xf32>
    tpu.vector_store %arg10[%c21_289, %c0_290], %183 {strides = array<i32>} : memref<64x64xf32, #tpu.memory_space<vmem>>, vector<1x64xf32>,
    %c1_291 = arith.constant 1 : index
    %c22_292 = arith.constant 22 : index
    %185 = vector.load %arg0[%c1_291, %c22_292] : memref<2x127xf32, #tpu.memory_space<vmem>>, vector<1x64xf32>
    %c22_293 = arith.constant 22 : index
    %c0_294 = arith.constant 0 : index
    %186 = vector.load %arg10[%c22_293, %c0_294] : memref<64x64xf32, #tpu.memory_space<vmem>>, vector<1x64xf32>
    tpu.vector_store %arg10[%c22_293, %c0_294], %185 {strides = array<i32>} : memref<64x64xf32, #tpu.memory_space<vmem>>, vector<1x64xf32>,
    %c1_295 = arith.constant 1 : index
    %c23_296 = arith.constant 23 : index
    %187 = vector.load %arg0[%c1_295, %c23_296] : memref<2x127xf32, #tpu.memory_space<vmem>>, vector<1x64xf32>
    %c23_297 = arith.constant 23 : index
    %c0_298 = arith.constant 0 : index
    %188 = vector.load %arg10[%c23_297, %c0_298] : memref<64x64xf32, #tpu.memory_space<vmem>>, vector<1x64xf32>
    tpu.vector_store %arg10[%c23_297, %c0_298], %187 {strides = array<i32>} : memref<64x64xf32, #tpu.memory_space<vmem>>, vector<1x64xf32>,
    %c1_299 = arith.constant 1 : index
    %c24_300 = arith.constant 24 : index
    %189 = vector.load %arg0[%c1_299, %c24_300] : memref<2x127xf32, #tpu.memory_space<vmem>>, vector<1x64xf32>
    %c24_301 = arith.constant 24 : index
    %c0_302 = arith.constant 0 : index
    %190 = vector.load %arg10[%c24_301, %c0_302] : memref<64x64xf32, #tpu.memory_space<vmem>>, vector<1x64xf32>
    tpu.vector_store %arg10[%c24_301, %c0_302], %189 {strides = array<i32>} : memref<64x64xf32, #tpu.memory_space<vmem>>, vector<1x64xf32>,
    %c1_303 = arith.constant 1 : index
    %c25_304 = arith.constant 25 : index
    %191 = vector.load %arg0[%c1_303, %c25_304] : memref<2x127xf32, #tpu.memory_space<vmem>>, vector<1x64xf32>
    %c25_305 = arith.constant 25 : index
    %c0_306 = arith.constant 0 : index
    %192 = vector.load %arg10[%c25_305, %c0_306] : memref<64x64xf32, #tpu.memory_space<vmem>>, vector<1x64xf32>
    tpu.vector_store %arg10[%c25_305, %c0_306], %191 {strides = array<i32>} : memref<64x64xf32, #tpu.memory_space<vmem>>, vector<1x64xf32>,
    %c1_307 = arith.constant 1 : index
    %c26_308 = arith.constant 26 : index
    %193 = vector.load %arg0[%c1_307, %c26_308] : memref<2x127xf32, #tpu.memory_space<vmem>>, vector<1x64xf32>
    %c26_309 = arith.constant 26 : index
    %c0_310 = arith.constant 0 : index
    %194 = vector.load %arg10[%c26_309, %c0_310] : memref<64x64xf32, #tpu.memory_space<vmem>>, vector<1x64xf32>
    tpu.vector_store %arg10[%c26_309, %c0_310], %193 {strides = array<i32>} : memref<64x64xf32, #tpu.memory_space<vmem>>, vector<1x64xf32>,
    %c1_311 = arith.constant 1 : index
    %c27_312 = arith.constant 27 : index
    %195 = vector.load %arg0[%c1_311, %c27_312] : memref<2x127xf32, #tpu.memory_space<vmem>>, vector<1x64xf32>
    %c27_313 = arith.constant 27 : index
    %c0_314 = arith.constant 0 : index
    %196 = vector.load %arg10[%c27_313, %c0_314] : memref<64x64xf32, #tpu.memory_space<vmem>>, vector<1x64xf32>
    tpu.vector_store %arg10[%c27_313, %c0_314], %195 {strides = array<i32>} : memref<64x64xf32, #tpu.memory_space<vmem>>, vector<1x64xf32>,
    %c1_315 = arith.constant 1 : index
    %c28_316 = arith.constant 28 : index
    %197 = vector.load %arg0[%c1_315, %c28_316] : memref<2x127xf32, #tpu.memory_space<vmem>>, vector<1x64xf32>
    %c28_317 = arith.constant 28 : index
    %c0_318 = arith.constant 0 : index
    %198 = vector.load %arg10[%c28_317, %c0_318] : memref<64x64xf32, #tpu.memory_space<vmem>>, vector<1x64xf32>
    tpu.vector_store %arg10[%c28_317, %c0_318], %197 {strides = array<i32>} : memref<64x64xf32, #tpu.memory_space<vmem>>, vector<1x64xf32>,
    %c1_319 = arith.constant 1 : index
    %c29_320 = arith.constant 29 : index
    %199 = vector.load %arg0[%c1_319, %c29_320] : memref<2x127xf32, #tpu.memory_space<vmem>>, vector<1x64xf32>
    %c29_321 = arith.constant 29 : index
    %c0_322 = arith.constant 0 : index
    %200 = vector.load %arg10[%c29_321, %c0_322] : memref<64x64xf32, #tpu.memory_space<vmem>>, vector<1x64xf32>
    tpu.vector_store %arg10[%c29_321, %c0_322], %199 {strides = array<i32>} : memref<64x64xf32, #tpu.memory_space<vmem>>, vector<1x64xf32>,
    %c1_323 = arith.constant 1 : index
    %c30_324 = arith.constant 30 : index
    %201 = vector.load %arg0[%c1_323, %c30_324] : memref<2x127xf32, #tpu.memory_space<vmem>>, vector<1x64xf32>
    %c30_325 = arith.constant 30 : index
    %c0_326 = arith.constant 0 : index
    %202 = vector.load %arg10[%c30_325, %c0_326] : memref<64x64xf32, #tpu.memory_space<vmem>>, vector<1x64xf32>
    tpu.vector_store %arg10[%c30_325, %c0_326], %201 {strides = array<i32>} : memref<64x64xf32, #tpu.memory_space<vmem>>, vector<1x64xf32>,
    %c1_327 = arith.constant 1 : index
    %c31_328 = arith.constant 31 : index
    %203 = vector.load %arg0[%c1_327, %c31_328] : memref<2x127xf32, #tpu.memory_space<vmem>>, vector<1x64xf32>
    %c31_329 = arith.constant 31 : index
    %c0_330 = arith.constant 0 : index
    %204 = vector.load %arg10[%c31_329, %c0_330] : memref<64x64xf32, #tpu.memory_space<vmem>>, vector<1x64xf32>
    tpu.vector_store %arg10[%c31_329, %c0_330], %203 {strides = array<i32>} : memref<64x64xf32, #tpu.memory_space<vmem>>, vector<1x64xf32>,
    %c1_331 = arith.constant 1 : index
    %c32_332 = arith.constant 32 : index
    %205 = vector.load %arg0[%c1_331, %c32_332] : memref<2x127xf32, #tpu.memory_space<vmem>>, vector<1x64xf32>
    %c32_333 = arith.constant 32 : index
    %c0_334 = arith.constant 0 : index
    %206 = vector.load %arg10[%c32_333, %c0_334] : memref<64x64xf32, #tpu.memory_space<vmem>>, vector<1x64xf32>
    tpu.vector_store %arg10[%c32_333, %c0_334], %205 {strides = array<i32>} : memref<64x64xf32, #tpu.memory_space<vmem>>, vector<1x64xf32>,
    %c1_335 = arith.constant 1 : index
    %c33_336 = arith.constant 33 : index
    %207 = vector.load %arg0[%c1_335, %c33_336] : memref<2x127xf32, #tpu.memory_space<vmem>>, vector<1x64xf32>
    %c33_337 = arith.constant 33 : index
    %c0_338 = arith.constant 0 : index
    %208 = vector.load %arg10[%c33_337, %c0_338] : memref<64x64xf32, #tpu.memory_space<vmem>>, vector<1x64xf32>
    tpu.vector_store %arg10[%c33_337, %c0_338], %207 {strides = array<i32>} : memref<64x64xf32, #tpu.memory_space<vmem>>, vector<1x64xf32>,
    %c1_339 = arith.constant 1 : index
    %c34_340 = arith.constant 34 : index
    %209 = vector.load %arg0[%c1_339, %c34_340] : memref<2x127xf32, #tpu.memory_space<vmem>>, vector<1x64xf32>
    %c34_341 = arith.constant 34 : index
    %c0_342 = arith.constant 0 : index
    %210 = vector.load %arg10[%c34_341, %c0_342] : memref<64x64xf32, #tpu.memory_space<vmem>>, vector<1x64xf32>
    tpu.vector_store %arg10[%c34_341, %c0_342], %209 {strides = array<i32>} : memref<64x64xf32, #tpu.memory_space<vmem>>, vector<1x64xf32>,
    %c1_343 = arith.constant 1 : index
    %c35_344 = arith.constant 35 : index
    %211 = vector.load %arg0[%c1_343, %c35_344] : memref<2x127xf32, #tpu.memory_space<vmem>>, vector<1x64xf32>
    %c35_345 = arith.constant 35 : index
    %c0_346 = arith.constant 0 : index
    %212 = vector.load %arg10[%c35_345, %c0_346] : memref<64x64xf32, #tpu.memory_space<vmem>>, vector<1x64xf32>
    tpu.vector_store %arg10[%c35_345, %c0_346], %211 {strides = array<i32>} : memref<64x64xf32, #tpu.memory_space<vmem>>, vector<1x64xf32>,
    %c1_347 = arith.constant 1 : index
    %c36_348 = arith.constant 36 : index
    %213 = vector.load %arg0[%c1_347, %c36_348] : memref<2x127xf32, #tpu.memory_space<vmem>>, vector<1x64xf32>
    %c36_349 = arith.constant 36 : index
    %c0_350 = arith.constant 0 : index
    %214 = vector.load %arg10[%c36_349, %c0_350] : memref<64x64xf32, #tpu.memory_space<vmem>>, vector<1x64xf32>
    tpu.vector_store %arg10[%c36_349, %c0_350], %213 {strides = array<i32>} : memref<64x64xf32, #tpu.memory_space<vmem>>, vector<1x64xf32>,
    %c1_351 = arith.constant 1 : index
    %c37_352 = arith.constant 37 : index
    %215 = vector.load %arg0[%c1_351, %c37_352] : memref<2x127xf32, #tpu.memory_space<vmem>>, vector<1x64xf32>
    %c37_353 = arith.constant 37 : index
    %c0_354 = arith.constant 0 : index
    %216 = vector.load %arg10[%c37_353, %c0_354] : memref<64x64xf32, #tpu.memory_space<vmem>>, vector<1x64xf32>
    tpu.vector_store %arg10[%c37_353, %c0_354], %215 {strides = array<i32>} : memref<64x64xf32, #tpu.memory_space<vmem>>, vector<1x64xf32>,
    %c1_355 = arith.constant 1 : index
    %c38_356 = arith.constant 38 : index
    %217 = vector.load %arg0[%c1_355, %c38_356] : memref<2x127xf32, #tpu.memory_space<vmem>>, vector<1x64xf32>
    %c38_357 = arith.constant 38 : index
    %c0_358 = arith.constant 0 : index
    %218 = vector.load %arg10[%c38_357, %c0_358] : memref<64x64xf32, #tpu.memory_space<vmem>>, vector<1x64xf32>
    tpu.vector_store %arg10[%c38_357, %c0_358], %217 {strides = array<i32>} : memref<64x64xf32, #tpu.memory_space<vmem>>, vector<1x64xf32>,
    %c1_359 = arith.constant 1 : index
    %c39_360 = arith.constant 39 : index
    %219 = vector.load %arg0[%c1_359, %c39_360] : memref<2x127xf32, #tpu.memory_space<vmem>>, vector<1x64xf32>
    %c39_361 = arith.constant 39 : index
    %c0_362 = arith.constant 0 : index
    %220 = vector.load %arg10[%c39_361, %c0_362] : memref<64x64xf32, #tpu.memory_space<vmem>>, vector<1x64xf32>
    tpu.vector_store %arg10[%c39_361, %c0_362], %219 {strides = array<i32>} : memref<64x64xf32, #tpu.memory_space<vmem>>, vector<1x64xf32>,
    %c1_363 = arith.constant 1 : index
    %c40_364 = arith.constant 40 : index
    %221 = vector.load %arg0[%c1_363, %c40_364] : memref<2x127xf32, #tpu.memory_space<vmem>>, vector<1x64xf32>
    %c40_365 = arith.constant 40 : index
    %c0_366 = arith.constant 0 : index
    %222 = vector.load %arg10[%c40_365, %c0_366] : memref<64x64xf32, #tpu.memory_space<vmem>>, vector<1x64xf32>
    tpu.vector_store %arg10[%c40_365, %c0_366], %221 {strides = array<i32>} : memref<64x64xf32, #tpu.memory_space<vmem>>, vector<1x64xf32>,
    %c1_367 = arith.constant 1 : index
    %c41_368 = arith.constant 41 : index
    %223 = vector.load %arg0[%c1_367, %c41_368] : memref<2x127xf32, #tpu.memory_space<vmem>>, vector<1x64xf32>
    %c41_369 = arith.constant 41 : index
    %c0_370 = arith.constant 0 : index
    %224 = vector.load %arg10[%c41_369, %c0_370] : memref<64x64xf32, #tpu.memory_space<vmem>>, vector<1x64xf32>
    tpu.vector_store %arg10[%c41_369, %c0_370], %223 {strides = array<i32>} : memref<64x64xf32, #tpu.memory_space<vmem>>, vector<1x64xf32>,
    %c1_371 = arith.constant 1 : index
    %c42_372 = arith.constant 42 : index
    %225 = vector.load %arg0[%c1_371, %c42_372] : memref<2x127xf32, #tpu.memory_space<vmem>>, vector<1x64xf32>
    %c42_373 = arith.constant 42 : index
    %c0_374 = arith.constant 0 : index
    %226 = vector.load %arg10[%c42_373, %c0_374] : memref<64x64xf32, #tpu.memory_space<vmem>>, vector<1x64xf32>
    tpu.vector_store %arg10[%c42_373, %c0_374], %225 {strides = array<i32>} : memref<64x64xf32, #tpu.memory_space<vmem>>, vector<1x64xf32>,
    %c1_375 = arith.constant 1 : index
    %c43_376 = arith.constant 43 : index
    %227 = vector.load %arg0[%c1_375, %c43_376] : memref<2x127xf32, #tpu.memory_space<vmem>>, vector<1x64xf32>
    %c43_377 = arith.constant 43 : index
    %c0_378 = arith.constant 0 : index
    %228 = vector.load %arg10[%c43_377, %c0_378] : memref<64x64xf32, #tpu.memory_space<vmem>>, vector<1x64xf32>
    tpu.vector_store %arg10[%c43_377, %c0_378], %227 {strides = array<i32>} : memref<64x64xf32, #tpu.memory_space<vmem>>, vector<1x64xf32>,
    %c1_379 = arith.constant 1 : index
    %c44_380 = arith.constant 44 : index
    %229 = vector.load %arg0[%c1_379, %c44_380] : memref<2x127xf32, #tpu.memory_space<vmem>>, vector<1x64xf32>
    %c44_381 = arith.constant 44 : index
    %c0_382 = arith.constant 0 : index
    %230 = vector.load %arg10[%c44_381, %c0_382] : memref<64x64xf32, #tpu.memory_space<vmem>>, vector<1x64xf32>
    tpu.vector_store %arg10[%c44_381, %c0_382], %229 {strides = array<i32>} : memref<64x64xf32, #tpu.memory_space<vmem>>, vector<1x64xf32>,
    %c1_383 = arith.constant 1 : index
    %c45_384 = arith.constant 45 : index
    %231 = vector.load %arg0[%c1_383, %c45_384] : memref<2x127xf32, #tpu.memory_space<vmem>>, vector<1x64xf32>
    %c45_385 = arith.constant 45 : index
    %c0_386 = arith.constant 0 : index
    %232 = vector.load %arg10[%c45_385, %c0_386] : memref<64x64xf32, #tpu.memory_space<vmem>>, vector<1x64xf32>
    tpu.vector_store %arg10[%c45_385, %c0_386], %231 {strides = array<i32>} : memref<64x64xf32, #tpu.memory_space<vmem>>, vector<1x64xf32>,
    %c1_387 = arith.constant 1 : index
    %c46_388 = arith.constant 46 : index
    %233 = vector.load %arg0[%c1_387, %c46_388] : memref<2x127xf32, #tpu.memory_space<vmem>>, vector<1x64xf32>
    %c46_389 = arith.constant 46 : index
    %c0_390 = arith.constant 0 : index
    %234 = vector.load %arg10[%c46_389, %c0_390] : memref<64x64xf32, #tpu.memory_space<vmem>>, vector<1x64xf32>
    tpu.vector_store %arg10[%c46_389, %c0_390], %233 {strides = array<i32>} : memref<64x64xf32, #tpu.memory_space<vmem>>, vector<1x64xf32>,
    %c1_391 = arith.constant 1 : index
    %c47_392 = arith.constant 47 : index
    %235 = vector.load %arg0[%c1_391, %c47_392] : memref<2x127xf32, #tpu.memory_space<vmem>>, vector<1x64xf32>
    %c47_393 = arith.constant 47 : index
    %c0_394 = arith.constant 0 : index
    %236 = vector.load %arg10[%c47_393, %c0_394] : memref<64x64xf32, #tpu.memory_space<vmem>>, vector<1x64xf32>
    tpu.vector_store %arg10[%c47_393, %c0_394], %235 {strides = array<i32>} : memref<64x64xf32, #tpu.memory_space<vmem>>, vector<1x64xf32>,
    %c1_395 = arith.constant 1 : index
    %c48_396 = arith.constant 48 : index
    %237 = vector.load %arg0[%c1_395, %c48_396] : memref<2x127xf32, #tpu.memory_space<vmem>>, vector<1x64xf32>
    %c48_397 = arith.constant 48 : index
    %c0_398 = arith.constant 0 : index
    %238 = vector.load %arg10[%c48_397, %c0_398] : memref<64x64xf32, #tpu.memory_space<vmem>>, vector<1x64xf32>
    tpu.vector_store %arg10[%c48_397, %c0_398], %237 {strides = array<i32>} : memref<64x64xf32, #tpu.memory_space<vmem>>, vector<1x64xf32>,
    %c1_399 = arith.constant 1 : index
    %c49_400 = arith.constant 49 : index
    %239 = vector.load %arg0[%c1_399, %c49_400] : memref<2x127xf32, #tpu.memory_space<vmem>>, vector<1x64xf32>
    %c49_401 = arith.constant 49 : index
    %c0_402 = arith.constant 0 : index
    %240 = vector.load %arg10[%c49_401, %c0_402] : memref<64x64xf32, #tpu.memory_space<vmem>>, vector<1x64xf32>
    tpu.vector_store %arg10[%c49_401, %c0_402], %239 {strides = array<i32>} : memref<64x64xf32, #tpu.memory_space<vmem>>, vector<1x64xf32>,
    %c1_403 = arith.constant 1 : index
    %c50_404 = arith.constant 50 : index
    %241 = vector.load %arg0[%c1_403, %c50_404] : memref<2x127xf32, #tpu.memory_space<vmem>>, vector<1x64xf32>
    %c50_405 = arith.constant 50 : index
    %c0_406 = arith.constant 0 : index
    %242 = vector.load %arg10[%c50_405, %c0_406] : memref<64x64xf32, #tpu.memory_space<vmem>>, vector<1x64xf32>
    tpu.vector_store %arg10[%c50_405, %c0_406], %241 {strides = array<i32>} : memref<64x64xf32, #tpu.memory_space<vmem>>, vector<1x64xf32>,
    %c1_407 = arith.constant 1 : index
    %c51_408 = arith.constant 51 : index
    %243 = vector.load %arg0[%c1_407, %c51_408] : memref<2x127xf32, #tpu.memory_space<vmem>>, vector<1x64xf32>
    %c51_409 = arith.constant 51 : index
    %c0_410 = arith.constant 0 : index
    %244 = vector.load %arg10[%c51_409, %c0_410] : memref<64x64xf32, #tpu.memory_space<vmem>>, vector<1x64xf32>
    tpu.vector_store %arg10[%c51_409, %c0_410], %243 {strides = array<i32>} : memref<64x64xf32, #tpu.memory_space<vmem>>, vector<1x64xf32>,
    %c1_411 = arith.constant 1 : index
    %c52_412 = arith.constant 52 : index
    %245 = vector.load %arg0[%c1_411, %c52_412] : memref<2x127xf32, #tpu.memory_space<vmem>>, vector<1x64xf32>
    %c52_413 = arith.constant 52 : index
    %c0_414 = arith.constant 0 : index
    %246 = vector.load %arg10[%c52_413, %c0_414] : memref<64x64xf32, #tpu.memory_space<vmem>>, vector<1x64xf32>
    tpu.vector_store %arg10[%c52_413, %c0_414], %245 {strides = array<i32>} : memref<64x64xf32, #tpu.memory_space<vmem>>, vector<1x64xf32>,
    %c1_415 = arith.constant 1 : index
    %c53_416 = arith.constant 53 : index
    %247 = vector.load %arg0[%c1_415, %c53_416] : memref<2x127xf32, #tpu.memory_space<vmem>>, vector<1x64xf32>
    %c53_417 = arith.constant 53 : index
    %c0_418 = arith.constant 0 : index
    %248 = vector.load %arg10[%c53_417, %c0_418] : memref<64x64xf32, #tpu.memory_space<vmem>>, vector<1x64xf32>
    tpu.vector_store %arg10[%c53_417, %c0_418], %247 {strides = array<i32>} : memref<64x64xf32, #tpu.memory_space<vmem>>, vector<1x64xf32>,
    %c1_419 = arith.constant 1 : index
    %c54_420 = arith.constant 54 : index
    %249 = vector.load %arg0[%c1_419, %c54_420] : memref<2x127xf32, #tpu.memory_space<vmem>>, vector<1x64xf32>
    %c54_421 = arith.constant 54 : index
    %c0_422 = arith.constant 0 : index
    %250 = vector.load %arg10[%c54_421, %c0_422] : memref<64x64xf32, #tpu.memory_space<vmem>>, vector<1x64xf32>
    tpu.vector_store %arg10[%c54_421, %c0_422], %249 {strides = array<i32>} : memref<64x64xf32, #tpu.memory_space<vmem>>, vector<1x64xf32>,
    %c1_423 = arith.constant 1 : index
    %c55_424 = arith.constant 55 : index
    %251 = vector.load %arg0[%c1_423, %c55_424] : memref<2x127xf32, #tpu.memory_space<vmem>>, vector<1x64xf32>
    %c55_425 = arith.constant 55 : index
    %c0_426 = arith.constant 0 : index
    %252 = vector.load %arg10[%c55_425, %c0_426] : memref<64x64xf32, #tpu.memory_space<vmem>>, vector<1x64xf32>
    tpu.vector_store %arg10[%c55_425, %c0_426], %251 {strides = array<i32>} : memref<64x64xf32, #tpu.memory_space<vmem>>, vector<1x64xf32>,
    %c1_427 = arith.constant 1 : index
    %c56_428 = arith.constant 56 : index
    %253 = vector.load %arg0[%c1_427, %c56_428] : memref<2x127xf32, #tpu.memory_space<vmem>>, vector<1x64xf32>
    %c56_429 = arith.constant 56 : index
    %c0_430 = arith.constant 0 : index
    %254 = vector.load %arg10[%c56_429, %c0_430] : memref<64x64xf32, #tpu.memory_space<vmem>>, vector<1x64xf32>
    tpu.vector_store %arg10[%c56_429, %c0_430], %253 {strides = array<i32>} : memref<64x64xf32, #tpu.memory_space<vmem>>, vector<1x64xf32>,
    %c1_431 = arith.constant 1 : index
    %c57_432 = arith.constant 57 : index
    %255 = vector.load %arg0[%c1_431, %c57_432] : memref<2x127xf32, #tpu.memory_space<vmem>>, vector<1x64xf32>
    %c57_433 = arith.constant 57 : index
    %c0_434 = arith.constant 0 : index
    %256 = vector.load %arg10[%c57_433, %c0_434] : memref<64x64xf32, #tpu.memory_space<vmem>>, vector<1x64xf32>
    tpu.vector_store %arg10[%c57_433, %c0_434], %255 {strides = array<i32>} : memref<64x64xf32, #tpu.memory_space<vmem>>, vector<1x64xf32>,
    %c1_435 = arith.constant 1 : index
    %c58_436 = arith.constant 58 : index
    %257 = vector.load %arg0[%c1_435, %c58_436] : memref<2x127xf32, #tpu.memory_space<vmem>>, vector<1x64xf32>
    %c58_437 = arith.constant 58 : index
    %c0_438 = arith.constant 0 : index
    %258 = vector.load %arg10[%c58_437, %c0_438] : memref<64x64xf32, #tpu.memory_space<vmem>>, vector<1x64xf32>
    tpu.vector_store %arg10[%c58_437, %c0_438], %257 {strides = array<i32>} : memref<64x64xf32, #tpu.memory_space<vmem>>, vector<1x64xf32>,
    %c1_439 = arith.constant 1 : index
    %c59_440 = arith.constant 59 : index
    %259 = vector.load %arg0[%c1_439, %c59_440] : memref<2x127xf32, #tpu.memory_space<vmem>>, vector<1x64xf32>
    %c59_441 = arith.constant 59 : index
    %c0_442 = arith.constant 0 : index
    %260 = vector.load %arg10[%c59_441, %c0_442] : memref<64x64xf32, #tpu.memory_space<vmem>>, vector<1x64xf32>
    tpu.vector_store %arg10[%c59_441, %c0_442], %259 {strides = array<i32>} : memref<64x64xf32, #tpu.memory_space<vmem>>, vector<1x64xf32>,
    %c1_443 = arith.constant 1 : index
    %c60_444 = arith.constant 60 : index
    %261 = vector.load %arg0[%c1_443, %c60_444] : memref<2x127xf32, #tpu.memory_space<vmem>>, vector<1x64xf32>
    %c60_445 = arith.constant 60 : index
    %c0_446 = arith.constant 0 : index
    %262 = vector.load %arg10[%c60_445, %c0_446] : memref<64x64xf32, #tpu.memory_space<vmem>>, vector<1x64xf32>
    tpu.vector_store %arg10[%c60_445, %c0_446], %261 {strides = array<i32>} : memref<64x64xf32, #tpu.memory_space<vmem>>, vector<1x64xf32>,
    %c1_447 = arith.constant 1 : index
    %c61_448 = arith.constant 61 : index
    %263 = vector.load %arg0[%c1_447, %c61_448] : memref<2x127xf32, #tpu.memory_space<vmem>>, vector<1x64xf32>
    %c61_449 = arith.constant 61 : index
    %c0_450 = arith.constant 0 : index
    %264 = vector.load %arg10[%c61_449, %c0_450] : memref<64x64xf32, #tpu.memory_space<vmem>>, vector<1x64xf32>
    tpu.vector_store %arg10[%c61_449, %c0_450], %263 {strides = array<i32>} : memref<64x64xf32, #tpu.memory_space<vmem>>, vector<1x64xf32>,
    %c1_451 = arith.constant 1 : index
    %c62_452 = arith.constant 62 : index
    %265 = vector.load %arg0[%c1_451, %c62_452] : memref<2x127xf32, #tpu.memory_space<vmem>>, vector<1x64xf32>
    %c62_453 = arith.constant 62 : index
    %c0_454 = arith.constant 0 : index
    %266 = vector.load %arg10[%c62_453, %c0_454] : memref<64x64xf32, #tpu.memory_space<vmem>>, vector<1x64xf32>
    tpu.vector_store %arg10[%c62_453, %c0_454], %265 {strides = array<i32>} : memref<64x64xf32, #tpu.memory_space<vmem>>, vector<1x64xf32>,
    %c1_455 = arith.constant 1 : index
    %c63_456 = arith.constant 63 : index
    %267 = vector.load %arg0[%c1_455, %c63_456] : memref<2x127xf32, #tpu.memory_space<vmem>>, vector<1x64xf32>
    %c63_457 = arith.constant 63 : index
    %c0_458 = arith.constant 0 : index
    %268 = vector.load %arg10[%c63_457, %c0_458] : memref<64x64xf32, #tpu.memory_space<vmem>>, vector<1x64xf32>
    tpu.vector_store %arg10[%c63_457, %c0_458], %267 {strides = array<i32>} : memref<64x64xf32, #tpu.memory_space<vmem>>, vector<1x64xf32>,
    %c0_459 = arith.constant 0 : index
    %c0_460 = arith.constant 0 : index
    %269 = vector.load %arg10[%c0_459, %c0_460] : memref<64x64xf32, #tpu.memory_space<vmem>>, vector<64x64xf32>
    %cst_461 = arith.constant dense<0.000000e+00> : vector<32x64xf32>
    %270 = tpu.matmul %0, %269, %cst_461 {dimension_numbers = #tpu.dot_dimension_numbers<[1], [0], [0], [1], [0, 0, 1, 1], [], []>} : vector<32x64xf32>, vector<64x64xf32>, vector<32x64xf32> -> vector<32x64xf32>
    %271 = vector.broadcast %1 : vector<32x1xf32> to vector<32x64xf32>
    %272 = arith.addf %270, %271 : vector<32x64xf32>
    %c1_462 = arith.constant 1 : index
    %c0_463 = arith.constant 0 : index
    %c0_464 = arith.constant 0 : index
    %273 = vector.load %arg11[%c1_462, %c0_463, %c0_464] : memref<2x32x64xf32, #tpu.memory_space<vmem>>, vector<1x32x64xf32>
    %274 = vector.shape_cast %273 : vector<1x32x64xf32> to vector<32x64xf32>
    %275 = vector.shape_cast %272 : vector<32x64xf32> to vector<1x32x64xf32>
    tpu.vector_store %arg11[%c1_462, %c0_463, %c0_464], %275 {strides = array<i32>} : memref<2x32x64xf32, #tpu.memory_space<vmem>>, vector<1x32x64xf32>,
    %cst_465 = arith.constant dense<0.000000e+00> : vector<32xf32>
    %276 = vector.multi_reduction <add>, %272, %cst_465 [1] : vector<32x64xf32> to vector<32xf32>
    %277 = vector.shape_cast %276 : vector<32xf32> to vector<32x1xf32>
    %278 = arith.addf %140, %277 : vector<32x1xf32>
    %cst_466 = arith.constant 1.280000e+02 : f32
    %279 = vector.broadcast %cst_466 : f32 to vector<32x1xf32>
    %280 = arith.divf %278, %279 : vector<32x1xf32>
    %cst_467 = arith.constant 0.000000e+00 : f32
    %281 = vector.broadcast %cst_467 : f32 to vector<32x1xf32>
    %c0_468 = arith.constant 0 : index
    %c0_469 = arith.constant 0 : index
    %c0_470 = arith.constant 0 : index
    %282 = vector.load %arg11[%c0_468, %c0_469, %c0_470] : memref<2x32x64xf32, #tpu.memory_space<vmem>>, vector<1x32x64xf32>
    %283 = vector.shape_cast %282 : vector<1x32x64xf32> to vector<32x64xf32>
    %284 = vector.broadcast %280 : vector<32x1xf32> to vector<32x64xf32>
    %285 = arith.subf %283, %284 : vector<32x64xf32>
    %c0_471 = arith.constant 0 : index
    %c0_472 = arith.constant 0 : index
    %c0_473 = arith.constant 0 : index
    %286 = vector.load %arg11[%c0_471, %c0_472, %c0_473] : memref<2x32x64xf32, #tpu.memory_space<vmem>>, vector<1x32x64xf32>
    %287 = vector.shape_cast %286 : vector<1x32x64xf32> to vector<32x64xf32>
    %288 = vector.shape_cast %285 : vector<32x64xf32> to vector<1x32x64xf32>
    tpu.vector_store %arg11[%c0_471, %c0_472, %c0_473], %288 {strides = array<i32>} : memref<2x32x64xf32, #tpu.memory_space<vmem>>, vector<1x32x64xf32>,
    %289 = arith.mulf %285, %285 : vector<32x64xf32>
    %cst_474 = arith.constant dense<0.000000e+00> : vector<32xf32>
    %290 = vector.multi_reduction <add>, %289, %cst_474 [1] : vector<32x64xf32> to vector<32xf32>
    %291 = vector.shape_cast %290 : vector<32xf32> to vector<32x1xf32>
    %292 = arith.addf %281, %291 : vector<32x1xf32>
    %c1_475 = arith.constant 1 : index
    %c0_476 = arith.constant 0 : index
    %c0_477 = arith.constant 0 : index
    %293 = vector.load %arg11[%c1_475, %c0_476, %c0_477] : memref<2x32x64xf32, #tpu.memory_space<vmem>>, vector<1x32x64xf32>
    %294 = vector.shape_cast %293 : vector<1x32x64xf32> to vector<32x64xf32>
    %295 = vector.broadcast %280 : vector<32x1xf32> to vector<32x64xf32>
    %296 = arith.subf %294, %295 : vector<32x64xf32>
    %c1_478 = arith.constant 1 : index
    %c0_479 = arith.constant 0 : index
    %c0_480 = arith.constant 0 : index
    %297 = vector.load %arg11[%c1_478, %c0_479, %c0_480] : memref<2x32x64xf32, #tpu.memory_space<vmem>>, vector<1x32x64xf32>
    %298 = vector.shape_cast %297 : vector<1x32x64xf32> to vector<32x64xf32>
    %299 = vector.shape_cast %296 : vector<32x64xf32> to vector<1x32x64xf32>
    tpu.vector_store %arg11[%c1_478, %c0_479, %c0_480], %299 {strides = array<i32>} : memref<2x32x64xf32, #tpu.memory_space<vmem>>, vector<1x32x64xf32>,
    %300 = arith.mulf %296, %296 : vector<32x64xf32>
    %cst_481 = arith.constant dense<0.000000e+00> : vector<32xf32>
    %301 = vector.multi_reduction <add>, %300, %cst_481 [1] : vector<32x64xf32> to vector<32xf32>
    %302 = vector.shape_cast %301 : vector<32xf32> to vector<32x1xf32>
    %303 = arith.addf %292, %302 : vector<32x1xf32>
    %cst_482 = arith.constant 1.280000e+02 : f32
    %304 = vector.broadcast %cst_482 : f32 to vector<32x1xf32>
    %305 = arith.divf %303, %304 : vector<32x1xf32>
    %c0_483 = arith.constant 0 : index
    %c0_484 = arith.constant 0 : index
    %306 = vector.load %arg3[%c0_483, %c0_484] : memref<32x1xf32, #tpu.memory_space<vmem>>, vector<32x1xf32>
    %cst_485 = arith.constant 9.99999974E-6 : f32
    %307 = vector.broadcast %cst_485 : f32 to vector<32x1xf32>
    %308 = arith.addf %305, %307 : vector<32x1xf32>
    %309 = math.rsqrt %308 : vector<32x1xf32>
    %310 = arith.mulf %306, %309 : vector<32x1xf32>
    %c0_486 = arith.constant 0 : index
    %c0_487 = arith.constant 0 : index
    %311 = vector.load %arg4[%c0_486, %c0_487] : memref<32x1xf32, #tpu.memory_space<vmem>>, vector<32x1xf32>
    %c0_488 = arith.constant 0 : index
    %c0_489 = arith.constant 0 : index
    %312 = vector.load %arg5[%c0_488, %c0_489] : memref<8x32xf32, #tpu.memory_space<vmem>>, vector<8x32xf32>
    %c0_490 = arith.constant 0 : index
    %c0_491 = arith.constant 0 : index
    %313 = vector.load %arg8[%c0_490, %c0_491] : memref<64x8xf32, #tpu.memory_space<vmem>>, vector<64x8xf32>
    %c0_492 = arith.constant 0 : index
    %c0_493 = arith.constant 0 : index
    %314 = vector.load %arg7[%c0_492, %c0_493] : memref<8x1xf32, #tpu.memory_space<vmem>>, vector<8x1xf32>
    %c0_494 = arith.constant 0 : index
    %c0_495 = arith.constant 0 : index
    %c0_496 = arith.constant 0 : index
    %315 = vector.load %arg11[%c0_494, %c0_495, %c0_496] : memref<2x32x64xf32, #tpu.memory_space<vmem>>, vector<1x32x64xf32>
    %316 = vector.shape_cast %315 : vector<1x32x64xf32> to vector<32x64xf32>
    %317 = vector.broadcast %310 : vector<32x1xf32> to vector<32x64xf32>
    %318 = arith.mulf %316, %317 : vector<32x64xf32>
    %319 = vector.broadcast %311 : vector<32x1xf32> to vector<32x64xf32>
    %320 = arith.addf %318, %319 : vector<32x64xf32>
    %cst_497 = arith.constant 0.000000e+00 : f32
    %321 = vector.broadcast %cst_497 : f32 to vector<32x64xf32>
    %322 = arith.cmpf ogt, %320, %321 : vector<32x64xf32>
    %cst_498 = arith.constant 0.000000e+00 : f32
    %323 = vector.broadcast %cst_498 : f32 to vector<32x64xf32>
    %324 = arith.minimumf %320, %323 : vector<32x64xf32>
    %325 = math.exp %324 : vector<32x64xf32>
    %cst_499 = arith.constant 1.000000e+00 : f32
    %326 = vector.broadcast %cst_499 : f32 to vector<32x64xf32>
    %327 = arith.subf %325, %326 : vector<32x64xf32>
    %328 = arith.select %322, %320, %327 : vector<32x64xi1>, vector<32x64xf32>
    %cst_500 = arith.constant dense<0.000000e+00> : vector<8x64xf32>
    %329 = tpu.matmul %312, %328, %cst_500 {dimension_numbers = #tpu.dot_dimension_numbers<[1], [0], [0], [1], [0, 0, 1, 1], [], []>} : vector<8x32xf32>, vector<32x64xf32>, vector<8x64xf32> -> vector<8x64xf32>
    %cst_501 = arith.constant dense<0.000000e+00> : vector<8x8xf32>
    %330 = tpu.matmul %329, %313, %cst_501 {dimension_numbers = #tpu.dot_dimension_numbers<[1], [0], [0], [1], [0, 0, 1, 1], [], []>} : vector<8x64xf32>, vector<64x8xf32>, vector<8x8xf32> -> vector<8x8xf32>
    %331 = vector.broadcast %314 : vector<8x1xf32> to vector<8x8xf32>
    %332 = arith.addf %330, %331 : vector<8x8xf32>
    %c1_502 = arith.constant 1 : index
    %c0_503 = arith.constant 0 : index
    %c0_504 = arith.constant 0 : index
    %333 = vector.load %arg11[%c1_502, %c0_503, %c0_504] : memref<2x32x64xf32, #tpu.memory_space<vmem>>, vector<1x32x64xf32>
    %334 = vector.shape_cast %333 : vector<1x32x64xf32> to vector<32x64xf32>
    %335 = vector.broadcast %310 : vector<32x1xf32> to vector<32x64xf32>
    %336 = arith.mulf %334, %335 : vector<32x64xf32>
    %337 = vector.broadcast %311 : vector<32x1xf32> to vector<32x64xf32>
    %338 = arith.addf %336, %337 : vector<32x64xf32>
    %cst_505 = arith.constant 0.000000e+00 : f32
    %339 = vector.broadcast %cst_505 : f32 to vector<32x64xf32>
    %340 = arith.cmpf ogt, %338, %339 : vector<32x64xf32>
    %cst_506 = arith.constant 0.000000e+00 : f32
    %341 = vector.broadcast %cst_506 : f32 to vector<32x64xf32>
    %342 = arith.minimumf %338, %341 : vector<32x64xf32>
    %343 = math.exp %342 : vector<32x64xf32>
    %cst_507 = arith.constant 1.000000e+00 : f32
    %344 = vector.broadcast %cst_507 : f32 to vector<32x64xf32>
    %345 = arith.subf %343, %344 : vector<32x64xf32>
    %346 = arith.select %340, %338, %345 : vector<32x64xi1>, vector<32x64xf32>
    %cst_508 = arith.constant dense<0.000000e+00> : vector<8x64xf32>
    %347 = tpu.matmul %312, %346, %cst_508 {dimension_numbers = #tpu.dot_dimension_numbers<[1], [0], [0], [1], [0, 0, 1, 1], [], []>} : vector<8x32xf32>, vector<32x64xf32>, vector<8x64xf32> -> vector<8x64xf32>
    %cst_509 = arith.constant dense<0.000000e+00> : vector<8x8xf32>
    %348 = tpu.matmul %347, %313, %cst_509 {dimension_numbers = #tpu.dot_dimension_numbers<[1], [0], [0], [1], [0, 0, 1, 1], [], []>} : vector<8x64xf32>, vector<64x8xf32>, vector<8x8xf32> -> vector<8x8xf32>
    %349 = vector.broadcast %314 : vector<8x1xf32> to vector<8x8xf32>
    %350 = arith.addf %348, %349 : vector<8x8xf32>
    %351 = vector.extract_strided_slice %332 {offsets = [0, 0], sizes = [8, 1], strides = [1, 1]} : vector<8x8xf32> to vector<8x1xf32>
    %352 = vector.extract_strided_slice %350 {offsets = [0, 0], sizes = [8, 1], strides = [1, 1]} : vector<8x8xf32> to vector<8x1xf32>
    %353 = tpu.concatenate %351, %352 in 1 : vector<8x1xf32>, vector<8x1xf32> -> vector<8x2xf32>
    %c0_510 = arith.constant 0 : index
    %c0_511 = arith.constant 0 : index
    %c0_512 = arith.constant 0 : index
    %354 = vector.load %arg12[%c0_510, %c0_511, %c0_512] : memref<8x8x2xf32, #tpu.memory_space<vmem>>, vector<1x8x2xf32>
    %355 = vector.shape_cast %354 : vector<1x8x2xf32> to vector<8x2xf32>
    %356 = vector.shape_cast %353 : vector<8x2xf32> to vector<1x8x2xf32>
    tpu.vector_store %arg12[%c0_510, %c0_511, %c0_512], %356 {strides = array<i32>} : memref<8x8x2xf32, #tpu.memory_space<vmem>>, vector<1x8x2xf32>,
    %357 = vector.extract_strided_slice %332 {offsets = [0, 1], sizes = [8, 1], strides = [1, 1]} : vector<8x8xf32> to vector<8x1xf32>
    %358 = vector.extract_strided_slice %350 {offsets = [0, 1], sizes = [8, 1], strides = [1, 1]} : vector<8x8xf32> to vector<8x1xf32>
    %359 = tpu.concatenate %357, %358 in 1 : vector<8x1xf32>, vector<8x1xf32> -> vector<8x2xf32>
    %c1_513 = arith.constant 1 : index
    %c0_514 = arith.constant 0 : index
    %c0_515 = arith.constant 0 : index
    %360 = vector.load %arg12[%c1_513, %c0_514, %c0_515] : memref<8x8x2xf32, #tpu.memory_space<vmem>>, vector<1x8x2xf32>
    %361 = vector.shape_cast %360 : vector<1x8x2xf32> to vector<8x2xf32>
    %362 = vector.shape_cast %359 : vector<8x2xf32> to vector<1x8x2xf32>
    tpu.vector_store %arg12[%c1_513, %c0_514, %c0_515], %362 {strides = array<i32>} : memref<8x8x2xf32, #tpu.memory_space<vmem>>, vector<1x8x2xf32>,
    %363 = vector.extract_strided_slice %332 {offsets = [0, 2], sizes = [8, 1], strides = [1, 1]} : vector<8x8xf32> to vector<8x1xf32>
    %364 = vector.extract_strided_slice %350 {offsets = [0, 2], sizes = [8, 1], strides = [1, 1]} : vector<8x8xf32> to vector<8x1xf32>
    %365 = tpu.concatenate %363, %364 in 1 : vector<8x1xf32>, vector<8x1xf32> -> vector<8x2xf32>
    %c2_516 = arith.constant 2 : index
    %c0_517 = arith.constant 0 : index
    %c0_518 = arith.constant 0 : index
    %366 = vector.load %arg12[%c2_516, %c0_517, %c0_518] : memref<8x8x2xf32, #tpu.memory_space<vmem>>, vector<1x8x2xf32>
    %367 = vector.shape_cast %366 : vector<1x8x2xf32> to vector<8x2xf32>
    %368 = vector.shape_cast %365 : vector<8x2xf32> to vector<1x8x2xf32>
    tpu.vector_store %arg12[%c2_516, %c0_517, %c0_518], %368 {strides = array<i32>} : memref<8x8x2xf32, #tpu.memory_space<vmem>>, vector<1x8x2xf32>,
    %369 = vector.extract_strided_slice %332 {offsets = [0, 3], sizes = [8, 1], strides = [1, 1]} : vector<8x8xf32> to vector<8x1xf32>
    %370 = vector.extract_strided_slice %350 {offsets = [0, 3], sizes = [8, 1], strides = [1, 1]} : vector<8x8xf32> to vector<8x1xf32>
    %371 = tpu.concatenate %369, %370 in 1 : vector<8x1xf32>, vector<8x1xf32> -> vector<8x2xf32>
    %c3_519 = arith.constant 3 : index
    %c0_520 = arith.constant 0 : index
    %c0_521 = arith.constant 0 : index
    %372 = vector.load %arg12[%c3_519, %c0_520, %c0_521] : memref<8x8x2xf32, #tpu.memory_space<vmem>>, vector<1x8x2xf32>
    %373 = vector.shape_cast %372 : vector<1x8x2xf32> to vector<8x2xf32>
    %374 = vector.shape_cast %371 : vector<8x2xf32> to vector<1x8x2xf32>
    tpu.vector_store %arg12[%c3_519, %c0_520, %c0_521], %374 {strides = array<i32>} : memref<8x8x2xf32, #tpu.memory_space<vmem>>, vector<1x8x2xf32>,
    %375 = vector.extract_strided_slice %332 {offsets = [0, 4], sizes = [8, 1], strides = [1, 1]} : vector<8x8xf32> to vector<8x1xf32>
    %376 = vector.extract_strided_slice %350 {offsets = [0, 4], sizes = [8, 1], strides = [1, 1]} : vector<8x8xf32> to vector<8x1xf32>
    %377 = tpu.concatenate %375, %376 in 1 : vector<8x1xf32>, vector<8x1xf32> -> vector<8x2xf32>
    %c4_522 = arith.constant 4 : index
    %c0_523 = arith.constant 0 : index
    %c0_524 = arith.constant 0 : index
    %378 = vector.load %arg12[%c4_522, %c0_523, %c0_524] : memref<8x8x2xf32, #tpu.memory_space<vmem>>, vector<1x8x2xf32>
    %379 = vector.shape_cast %378 : vector<1x8x2xf32> to vector<8x2xf32>
    %380 = vector.shape_cast %377 : vector<8x2xf32> to vector<1x8x2xf32>
    tpu.vector_store %arg12[%c4_522, %c0_523, %c0_524], %380 {strides = array<i32>} : memref<8x8x2xf32, #tpu.memory_space<vmem>>, vector<1x8x2xf32>,
    %381 = vector.extract_strided_slice %332 {offsets = [0, 5], sizes = [8, 1], strides = [1, 1]} : vector<8x8xf32> to vector<8x1xf32>
    %382 = vector.extract_strided_slice %350 {offsets = [0, 5], sizes = [8, 1], strides = [1, 1]} : vector<8x8xf32> to vector<8x1xf32>
    %383 = tpu.concatenate %381, %382 in 1 : vector<8x1xf32>, vector<8x1xf32> -> vector<8x2xf32>
    %c5_525 = arith.constant 5 : index
    %c0_526 = arith.constant 0 : index
    %c0_527 = arith.constant 0 : index
    %384 = vector.load %arg12[%c5_525, %c0_526, %c0_527] : memref<8x8x2xf32, #tpu.memory_space<vmem>>, vector<1x8x2xf32>
    %385 = vector.shape_cast %384 : vector<1x8x2xf32> to vector<8x2xf32>
    %386 = vector.shape_cast %383 : vector<8x2xf32> to vector<1x8x2xf32>
    tpu.vector_store %arg12[%c5_525, %c0_526, %c0_527], %386 {strides = array<i32>} : memref<8x8x2xf32, #tpu.memory_space<vmem>>, vector<1x8x2xf32>,
    %387 = vector.extract_strided_slice %332 {offsets = [0, 6], sizes = [8, 1], strides = [1, 1]} : vector<8x8xf32> to vector<8x1xf32>
    %388 = vector.extract_strided_slice %350 {offsets = [0, 6], sizes = [8, 1], strides = [1, 1]} : vector<8x8xf32> to vector<8x1xf32>
    %389 = tpu.concatenate %387, %388 in 1 : vector<8x1xf32>, vector<8x1xf32> -> vector<8x2xf32>
    %c6_528 = arith.constant 6 : index
    %c0_529 = arith.constant 0 : index
    %c0_530 = arith.constant 0 : index
    %390 = vector.load %arg12[%c6_528, %c0_529, %c0_530] : memref<8x8x2xf32, #tpu.memory_space<vmem>>, vector<1x8x2xf32>
    %391 = vector.shape_cast %390 : vector<1x8x2xf32> to vector<8x2xf32>
    %392 = vector.shape_cast %389 : vector<8x2xf32> to vector<1x8x2xf32>
    tpu.vector_store %arg12[%c6_528, %c0_529, %c0_530], %392 {strides = array<i32>} : memref<8x8x2xf32, #tpu.memory_space<vmem>>, vector<1x8x2xf32>,
    %393 = vector.extract_strided_slice %332 {offsets = [0, 7], sizes = [8, 1], strides = [1, 1]} : vector<8x8xf32> to vector<8x1xf32>
    %394 = vector.extract_strided_slice %350 {offsets = [0, 7], sizes = [8, 1], strides = [1, 1]} : vector<8x8xf32> to vector<8x1xf32>
    %395 = tpu.concatenate %393, %394 in 1 : vector<8x1xf32>, vector<8x1xf32> -> vector<8x2xf32>
    %c7_531 = arith.constant 7 : index
    %c0_532 = arith.constant 0 : index
    %c0_533 = arith.constant 0 : index
    %396 = vector.load %arg12[%c7_531, %c0_532, %c0_533] : memref<8x8x2xf32, #tpu.memory_space<vmem>>, vector<1x8x2xf32>
    %397 = vector.shape_cast %396 : vector<1x8x2xf32> to vector<8x2xf32>
    %398 = vector.shape_cast %395 : vector<8x2xf32> to vector<1x8x2xf32>
    tpu.vector_store %arg12[%c7_531, %c0_532, %c0_533], %398 {strides = array<i32>} : memref<8x8x2xf32, #tpu.memory_space<vmem>>, vector<1x8x2xf32>,
    %c0_534 = arith.constant 0 : index
    %c0_535 = arith.constant 0 : index
    %399 = vector.load %arg6[%c0_534, %c0_535] : memref<8x2xf32, #tpu.memory_space<vmem>>, vector<8x2xf32>
    %400 = vector.extract_strided_slice %399 {offsets = [0, 0], sizes = [8, 1], strides = [1, 1]} : vector<8x2xf32> to vector<8x1xf32>
    %401 = vector.shape_cast %400 : vector<8x1xf32> to vector<8x1xf32>
    %402 = vector.broadcast %401 : vector<8x1xf32> to vector<8x2xf32>
    %403 = vector.extract_strided_slice %399 {offsets = [0, 1], sizes = [8, 1], strides = [1, 1]} : vector<8x2xf32> to vector<8x1xf32>
    %404 = vector.shape_cast %403 : vector<8x1xf32> to vector<8x1xf32>
    %405 = vector.broadcast %404 : vector<8x1xf32> to vector<8x2xf32>
    %cst_536 = arith.constant 0.000000e+00 : f32
    %406 = vector.broadcast %cst_536 : f32 to vector<2x2xf32>
    %cst_537 = arith.constant 0.000000e+00 : f32
    %407 = vector.broadcast %cst_537 : f32 to vector<2x2xf32>
    %c0_i32 = arith.constant 0 : i32
    %408 = arith.index_cast %c0_i32 : i32 to index
    %c0_538 = arith.constant 0 : index
    %c0_539 = arith.constant 0 : index
    %409 = vector.load %arg12[%408, %c0_538, %c0_539] : memref<8x8x2xf32, #tpu.memory_space<vmem>>, vector<1x8x2xf32>
    %410 = vector.shape_cast %409 : vector<1x8x2xf32> to vector<8x2xf32>
    %411 = vector.extract_strided_slice %406 {offsets = [0, 0], sizes = [1, 2], strides = [1, 1]} : vector<2x2xf32> to vector<1x2xf32>
    %412 = vector.broadcast %411 : vector<1x2xf32> to vector<8x2xf32>
    %413 = arith.mulf %402, %412 : vector<8x2xf32>
    %414 = arith.addf %410, %413 : vector<8x2xf32>
    %415 = vector.extract_strided_slice %406 {offsets = [1, 0], sizes = [1, 2], strides = [1, 1]} : vector<2x2xf32> to vector<1x2xf32>
    %416 = vector.broadcast %415 : vector<1x2xf32> to vector<8x2xf32>
    %417 = arith.mulf %405, %416 : vector<8x2xf32>
    %418 = arith.addf %414, %417 : vector<8x2xf32>
    %cst_540 = arith.constant 5.000000e-01 : f32
    %419 = vector.broadcast %cst_540 : f32 to vector<8x2xf32>
    %420 = arith.mulf %419, %418 : vector<8x2xf32>
    %421 = math.tanh %420 : vector<8x2xf32>
    %422 = vector.extract_strided_slice %421 {offsets = [0, 0], sizes = [2, 2], strides = [1, 1]} : vector<8x2xf32> to vector<2x2xf32>
    %cst_541 = arith.constant 1.000000e+00 : f32
    %423 = vector.broadcast %cst_541 : f32 to vector<2x2xf32>
    %424 = arith.addf %422, %423 : vector<2x2xf32>
    %cst_542 = arith.constant 5.000000e-01 : f32
    %425 = vector.broadcast %cst_542 : f32 to vector<2x2xf32>
    %426 = arith.mulf %425, %424 : vector<2x2xf32>
    %427 = vector.extract_strided_slice %421 {offsets = [2, 0], sizes = [2, 2], strides = [1, 1]} : vector<8x2xf32> to vector<2x2xf32>
    %cst_543 = arith.constant 1.000000e+00 : f32
    %428 = vector.broadcast %cst_543 : f32 to vector<2x2xf32>
    %429 = arith.addf %427, %428 : vector<2x2xf32>
    %cst_544 = arith.constant 5.000000e-01 : f32
    %430 = vector.broadcast %cst_544 : f32 to vector<2x2xf32>
    %431 = arith.mulf %430, %429 : vector<2x2xf32>
    %432 = vector.extract_strided_slice %421 {offsets = [4, 0], sizes = [2, 2], strides = [1, 1]} : vector<8x2xf32> to vector<2x2xf32>
    %433 = vector.extract_strided_slice %421 {offsets = [6, 0], sizes = [2, 2], strides = [1, 1]} : vector<8x2xf32> to vector<2x2xf32>
    %cst_545 = arith.constant 1.000000e+00 : f32
    %434 = vector.broadcast %cst_545 : f32 to vector<2x2xf32>
    %435 = arith.addf %433, %434 : vector<2x2xf32>
    %cst_546 = arith.constant 5.000000e-01 : f32
    %436 = vector.broadcast %cst_546 : f32 to vector<2x2xf32>
    %437 = arith.mulf %436, %435 : vector<2x2xf32>
    %438 = arith.mulf %431, %407 : vector<2x2xf32>
    %439 = arith.mulf %426, %432 : vector<2x2xf32>
    %440 = arith.addf %438, %439 : vector<2x2xf32>
    %441 = math.tanh %440 : vector<2x2xf32>
    %442 = arith.mulf %437, %441 : vector<2x2xf32>
    %c1_i32 = arith.constant 1 : i32
    %443 = arith.index_cast %c1_i32 : i32 to index
    %c0_547 = arith.constant 0 : index
    %c0_548 = arith.constant 0 : index
    %444 = vector.load %arg12[%443, %c0_547, %c0_548] : memref<8x8x2xf32, #tpu.memory_space<vmem>>, vector<1x8x2xf32>
    %445 = vector.shape_cast %444 : vector<1x8x2xf32> to vector<8x2xf32>
    %446 = vector.extract_strided_slice %442 {offsets = [0, 0], sizes = [1, 2], strides = [1, 1]} : vector<2x2xf32> to vector<1x2xf32>
    %447 = vector.broadcast %446 : vector<1x2xf32> to vector<8x2xf32>
    %448 = arith.mulf %402, %447 : vector<8x2xf32>
    %449 = arith.addf %445, %448 : vector<8x2xf32>
    %450 = vector.extract_strided_slice %442 {offsets = [1, 0], sizes = [1, 2], strides = [1, 1]} : vector<2x2xf32> to vector<1x2xf32>
    %451 = vector.broadcast %450 : vector<1x2xf32> to vector<8x2xf32>
    %452 = arith.mulf %405, %451 : vector<8x2xf32>
    %453 = arith.addf %449, %452 : vector<8x2xf32>
    %cst_549 = arith.constant 5.000000e-01 : f32
    %454 = vector.broadcast %cst_549 : f32 to vector<8x2xf32>
    %455 = arith.mulf %454, %453 : vector<8x2xf32>
    %456 = math.tanh %455 : vector<8x2xf32>
    %457 = vector.extract_strided_slice %456 {offsets = [0, 0], sizes = [2, 2], strides = [1, 1]} : vector<8x2xf32> to vector<2x2xf32>
    %cst_550 = arith.constant 1.000000e+00 : f32
    %458 = vector.broadcast %cst_550 : f32 to vector<2x2xf32>
    %459 = arith.addf %457, %458 : vector<2x2xf32>
    %cst_551 = arith.constant 5.000000e-01 : f32
    %460 = vector.broadcast %cst_551 : f32 to vector<2x2xf32>
    %461 = arith.mulf %460, %459 : vector<2x2xf32>
    %462 = vector.extract_strided_slice %456 {offsets = [2, 0], sizes = [2, 2], strides = [1, 1]} : vector<8x2xf32> to vector<2x2xf32>
    %cst_552 = arith.constant 1.000000e+00 : f32
    %463 = vector.broadcast %cst_552 : f32 to vector<2x2xf32>
    %464 = arith.addf %462, %463 : vector<2x2xf32>
    %cst_553 = arith.constant 5.000000e-01 : f32
    %465 = vector.broadcast %cst_553 : f32 to vector<2x2xf32>
    %466 = arith.mulf %465, %464 : vector<2x2xf32>
    %467 = vector.extract_strided_slice %456 {offsets = [4, 0], sizes = [2, 2], strides = [1, 1]} : vector<8x2xf32> to vector<2x2xf32>
    %468 = vector.extract_strided_slice %456 {offsets = [6, 0], sizes = [2, 2], strides = [1, 1]} : vector<8x2xf32> to vector<2x2xf32>
    %cst_554 = arith.constant 1.000000e+00 : f32
    %469 = vector.broadcast %cst_554 : f32 to vector<2x2xf32>
    %470 = arith.addf %468, %469 : vector<2x2xf32>
    %cst_555 = arith.constant 5.000000e-01 : f32
    %471 = vector.broadcast %cst_555 : f32 to vector<2x2xf32>
    %472 = arith.mulf %471, %470 : vector<2x2xf32>
    %473 = arith.mulf %466, %440 : vector<2x2xf32>
    %474 = arith.mulf %461, %467 : vector<2x2xf32>
    %475 = arith.addf %473, %474 : vector<2x2xf32>
    %476 = math.tanh %475 : vector<2x2xf32>
    %477 = arith.mulf %472, %476 : vector<2x2xf32>
    %c2_i32 = arith.constant 2 : i32
    %478 = arith.index_cast %c2_i32 : i32 to index
    %c0_556 = arith.constant 0 : index
    %c0_557 = arith.constant 0 : index
    %479 = vector.load %arg12[%478, %c0_556, %c0_557] : memref<8x8x2xf32, #tpu.memory_space<vmem>>, vector<1x8x2xf32>
    %480 = vector.shape_cast %479 : vector<1x8x2xf32> to vector<8x2xf32>
    %481 = vector.extract_strided_slice %477 {offsets = [0, 0], sizes = [1, 2], strides = [1, 1]} : vector<2x2xf32> to vector<1x2xf32>
    %482 = vector.broadcast %481 : vector<1x2xf32> to vector<8x2xf32>
    %483 = arith.mulf %402, %482 : vector<8x2xf32>
    %484 = arith.addf %480, %483 : vector<8x2xf32>
    %485 = vector.extract_strided_slice %477 {offsets = [1, 0], sizes = [1, 2], strides = [1, 1]} : vector<2x2xf32> to vector<1x2xf32>
    %486 = vector.broadcast %485 : vector<1x2xf32> to vector<8x2xf32>
    %487 = arith.mulf %405, %486 : vector<8x2xf32>
    %488 = arith.addf %484, %487 : vector<8x2xf32>
    %cst_558 = arith.constant 5.000000e-01 : f32
    %489 = vector.broadcast %cst_558 : f32 to vector<8x2xf32>
    %490 = arith.mulf %489, %488 : vector<8x2xf32>
    %491 = math.tanh %490 : vector<8x2xf32>
    %492 = vector.extract_strided_slice %491 {offsets = [0, 0], sizes = [2, 2], strides = [1, 1]} : vector<8x2xf32> to vector<2x2xf32>
    %cst_559 = arith.constant 1.000000e+00 : f32
    %493 = vector.broadcast %cst_559 : f32 to vector<2x2xf32>
    %494 = arith.addf %492, %493 : vector<2x2xf32>
    %cst_560 = arith.constant 5.000000e-01 : f32
    %495 = vector.broadcast %cst_560 : f32 to vector<2x2xf32>
    %496 = arith.mulf %495, %494 : vector<2x2xf32>
    %497 = vector.extract_strided_slice %491 {offsets = [2, 0], sizes = [2, 2], strides = [1, 1]} : vector<8x2xf32> to vector<2x2xf32>
    %cst_561 = arith.constant 1.000000e+00 : f32
    %498 = vector.broadcast %cst_561 : f32 to vector<2x2xf32>
    %499 = arith.addf %497, %498 : vector<2x2xf32>
    %cst_562 = arith.constant 5.000000e-01 : f32
    %500 = vector.broadcast %cst_562 : f32 to vector<2x2xf32>
    %501 = arith.mulf %500, %499 : vector<2x2xf32>
    %502 = vector.extract_strided_slice %491 {offsets = [4, 0], sizes = [2, 2], strides = [1, 1]} : vector<8x2xf32> to vector<2x2xf32>
    %503 = vector.extract_strided_slice %491 {offsets = [6, 0], sizes = [2, 2], strides = [1, 1]} : vector<8x2xf32> to vector<2x2xf32>
    %cst_563 = arith.constant 1.000000e+00 : f32
    %504 = vector.broadcast %cst_563 : f32 to vector<2x2xf32>
    %505 = arith.addf %503, %504 : vector<2x2xf32>
    %cst_564 = arith.constant 5.000000e-01 : f32
    %506 = vector.broadcast %cst_564 : f32 to vector<2x2xf32>
    %507 = arith.mulf %506, %505 : vector<2x2xf32>
    %508 = arith.mulf %501, %475 : vector<2x2xf32>
    %509 = arith.mulf %496, %502 : vector<2x2xf32>
    %510 = arith.addf %508, %509 : vector<2x2xf32>
    %511 = math.tanh %510 : vector<2x2xf32>
    %512 = arith.mulf %507, %511 : vector<2x2xf32>
    %c3_i32 = arith.constant 3 : i32
    %513 = arith.index_cast %c3_i32 : i32 to index
    %c0_565 = arith.constant 0 : index
    %c0_566 = arith.constant 0 : index
    %514 = vector.load %arg12[%513, %c0_565, %c0_566] : memref<8x8x2xf32, #tpu.memory_space<vmem>>, vector<1x8x2xf32>
    %515 = vector.shape_cast %514 : vector<1x8x2xf32> to vector<8x2xf32>
    %516 = vector.extract_strided_slice %512 {offsets = [0, 0], sizes = [1, 2], strides = [1, 1]} : vector<2x2xf32> to vector<1x2xf32>
    %517 = vector.broadcast %516 : vector<1x2xf32> to vector<8x2xf32>
    %518 = arith.mulf %402, %517 : vector<8x2xf32>
    %519 = arith.addf %515, %518 : vector<8x2xf32>
    %520 = vector.extract_strided_slice %512 {offsets = [1, 0], sizes = [1, 2], strides = [1, 1]} : vector<2x2xf32> to vector<1x2xf32>
    %521 = vector.broadcast %520 : vector<1x2xf32> to vector<8x2xf32>
    %522 = arith.mulf %405, %521 : vector<8x2xf32>
    %523 = arith.addf %519, %522 : vector<8x2xf32>
    %cst_567 = arith.constant 5.000000e-01 : f32
    %524 = vector.broadcast %cst_567 : f32 to vector<8x2xf32>
    %525 = arith.mulf %524, %523 : vector<8x2xf32>
    %526 = math.tanh %525 : vector<8x2xf32>
    %527 = vector.extract_strided_slice %526 {offsets = [0, 0], sizes = [2, 2], strides = [1, 1]} : vector<8x2xf32> to vector<2x2xf32>
    %cst_568 = arith.constant 1.000000e+00 : f32
    %528 = vector.broadcast %cst_568 : f32 to vector<2x2xf32>
    %529 = arith.addf %527, %528 : vector<2x2xf32>
    %cst_569 = arith.constant 5.000000e-01 : f32
    %530 = vector.broadcast %cst_569 : f32 to vector<2x2xf32>
    %531 = arith.mulf %530, %529 : vector<2x2xf32>
    %532 = vector.extract_strided_slice %526 {offsets = [2, 0], sizes = [2, 2], strides = [1, 1]} : vector<8x2xf32> to vector<2x2xf32>
    %cst_570 = arith.constant 1.000000e+00 : f32
    %533 = vector.broadcast %cst_570 : f32 to vector<2x2xf32>
    %534 = arith.addf %532, %533 : vector<2x2xf32>
    %cst_571 = arith.constant 5.000000e-01 : f32
    %535 = vector.broadcast %cst_571 : f32 to vector<2x2xf32>
    %536 = arith.mulf %535, %534 : vector<2x2xf32>
    %537 = vector.extract_strided_slice %526 {offsets = [4, 0], sizes = [2, 2], strides = [1, 1]} : vector<8x2xf32> to vector<2x2xf32>
    %538 = vector.extract_strided_slice %526 {offsets = [6, 0], sizes = [2, 2], strides = [1, 1]} : vector<8x2xf32> to vector<2x2xf32>
    %cst_572 = arith.constant 1.000000e+00 : f32
    %539 = vector.broadcast %cst_572 : f32 to vector<2x2xf32>
    %540 = arith.addf %538, %539 : vector<2x2xf32>
    %cst_573 = arith.constant 5.000000e-01 : f32
    %541 = vector.broadcast %cst_573 : f32 to vector<2x2xf32>
    %542 = arith.mulf %541, %540 : vector<2x2xf32>
    %543 = arith.mulf %536, %510 : vector<2x2xf32>
    %544 = arith.mulf %531, %537 : vector<2x2xf32>
    %545 = arith.addf %543, %544 : vector<2x2xf32>
    %546 = math.tanh %545 : vector<2x2xf32>
    %547 = arith.mulf %542, %546 : vector<2x2xf32>
    %c4_i32 = arith.constant 4 : i32
    %548 = arith.index_cast %c4_i32 : i32 to index
    %c0_574 = arith.constant 0 : index
    %c0_575 = arith.constant 0 : index
    %549 = vector.load %arg12[%548, %c0_574, %c0_575] : memref<8x8x2xf32, #tpu.memory_space<vmem>>, vector<1x8x2xf32>
    %550 = vector.shape_cast %549 : vector<1x8x2xf32> to vector<8x2xf32>
    %551 = vector.extract_strided_slice %547 {offsets = [0, 0], sizes = [1, 2], strides = [1, 1]} : vector<2x2xf32> to vector<1x2xf32>
    %552 = vector.broadcast %551 : vector<1x2xf32> to vector<8x2xf32>
    %553 = arith.mulf %402, %552 : vector<8x2xf32>
    %554 = arith.addf %550, %553 : vector<8x2xf32>
    %555 = vector.extract_strided_slice %547 {offsets = [1, 0], sizes = [1, 2], strides = [1, 1]} : vector<2x2xf32> to vector<1x2xf32>
    %556 = vector.broadcast %555 : vector<1x2xf32> to vector<8x2xf32>
    %557 = arith.mulf %405, %556 : vector<8x2xf32>
    %558 = arith.addf %554, %557 : vector<8x2xf32>
    %cst_576 = arith.constant 5.000000e-01 : f32
    %559 = vector.broadcast %cst_576 : f32 to vector<8x2xf32>
    %560 = arith.mulf %559, %558 : vector<8x2xf32>
    %561 = math.tanh %560 : vector<8x2xf32>
    %562 = vector.extract_strided_slice %561 {offsets = [0, 0], sizes = [2, 2], strides = [1, 1]} : vector<8x2xf32> to vector<2x2xf32>
    %cst_577 = arith.constant 1.000000e+00 : f32
    %563 = vector.broadcast %cst_577 : f32 to vector<2x2xf32>
    %564 = arith.addf %562, %563 : vector<2x2xf32>
    %cst_578 = arith.constant 5.000000e-01 : f32
    %565 = vector.broadcast %cst_578 : f32 to vector<2x2xf32>
    %566 = arith.mulf %565, %564 : vector<2x2xf32>
    %567 = vector.extract_strided_slice %561 {offsets = [2, 0], sizes = [2, 2], strides = [1, 1]} : vector<8x2xf32> to vector<2x2xf32>
    %cst_579 = arith.constant 1.000000e+00 : f32
    %568 = vector.broadcast %cst_579 : f32 to vector<2x2xf32>
    %569 = arith.addf %567, %568 : vector<2x2xf32>
    %cst_580 = arith.constant 5.000000e-01 : f32
    %570 = vector.broadcast %cst_580 : f32 to vector<2x2xf32>
    %571 = arith.mulf %570, %569 : vector<2x2xf32>
    %572 = vector.extract_strided_slice %561 {offsets = [4, 0], sizes = [2, 2], strides = [1, 1]} : vector<8x2xf32> to vector<2x2xf32>
    %573 = vector.extract_strided_slice %561 {offsets = [6, 0], sizes = [2, 2], strides = [1, 1]} : vector<8x2xf32> to vector<2x2xf32>
    %cst_581 = arith.constant 1.000000e+00 : f32
    %574 = vector.broadcast %cst_581 : f32 to vector<2x2xf32>
    %575 = arith.addf %573, %574 : vector<2x2xf32>
    %cst_582 = arith.constant 5.000000e-01 : f32
    %576 = vector.broadcast %cst_582 : f32 to vector<2x2xf32>
    %577 = arith.mulf %576, %575 : vector<2x2xf32>
    %578 = arith.mulf %571, %545 : vector<2x2xf32>
    %579 = arith.mulf %566, %572 : vector<2x2xf32>
    %580 = arith.addf %578, %579 : vector<2x2xf32>
    %581 = math.tanh %580 : vector<2x2xf32>
    %582 = arith.mulf %577, %581 : vector<2x2xf32>
    %c5_i32 = arith.constant 5 : i32
    %583 = arith.index_cast %c5_i32 : i32 to index
    %c0_583 = arith.constant 0 : index
    %c0_584 = arith.constant 0 : index
    %584 = vector.load %arg12[%583, %c0_583, %c0_584] : memref<8x8x2xf32, #tpu.memory_space<vmem>>, vector<1x8x2xf32>
    %585 = vector.shape_cast %584 : vector<1x8x2xf32> to vector<8x2xf32>
    %586 = vector.extract_strided_slice %582 {offsets = [0, 0], sizes = [1, 2], strides = [1, 1]} : vector<2x2xf32> to vector<1x2xf32>
    %587 = vector.broadcast %586 : vector<1x2xf32> to vector<8x2xf32>
    %588 = arith.mulf %402, %587 : vector<8x2xf32>
    %589 = arith.addf %585, %588 : vector<8x2xf32>
    %590 = vector.extract_strided_slice %582 {offsets = [1, 0], sizes = [1, 2], strides = [1, 1]} : vector<2x2xf32> to vector<1x2xf32>
    %591 = vector.broadcast %590 : vector<1x2xf32> to vector<8x2xf32>
    %592 = arith.mulf %405, %591 : vector<8x2xf32>
    %593 = arith.addf %589, %592 : vector<8x2xf32>
    %cst_585 = arith.constant 5.000000e-01 : f32
    %594 = vector.broadcast %cst_585 : f32 to vector<8x2xf32>
    %595 = arith.mulf %594, %593 : vector<8x2xf32>
    %596 = math.tanh %595 : vector<8x2xf32>
    %597 = vector.extract_strided_slice %596 {offsets = [0, 0], sizes = [2, 2], strides = [1, 1]} : vector<8x2xf32> to vector<2x2xf32>
    %cst_586 = arith.constant 1.000000e+00 : f32
    %598 = vector.broadcast %cst_586 : f32 to vector<2x2xf32>
    %599 = arith.addf %597, %598 : vector<2x2xf32>
    %cst_587 = arith.constant 5.000000e-01 : f32
    %600 = vector.broadcast %cst_587 : f32 to vector<2x2xf32>
    %601 = arith.mulf %600, %599 : vector<2x2xf32>
    %602 = vector.extract_strided_slice %596 {offsets = [2, 0], sizes = [2, 2], strides = [1, 1]} : vector<8x2xf32> to vector<2x2xf32>
    %cst_588 = arith.constant 1.000000e+00 : f32
    %603 = vector.broadcast %cst_588 : f32 to vector<2x2xf32>
    %604 = arith.addf %602, %603 : vector<2x2xf32>
    %cst_589 = arith.constant 5.000000e-01 : f32
    %605 = vector.broadcast %cst_589 : f32 to vector<2x2xf32>
    %606 = arith.mulf %605, %604 : vector<2x2xf32>
    %607 = vector.extract_strided_slice %596 {offsets = [4, 0], sizes = [2, 2], strides = [1, 1]} : vector<8x2xf32> to vector<2x2xf32>
    %608 = vector.extract_strided_slice %596 {offsets = [6, 0], sizes = [2, 2], strides = [1, 1]} : vector<8x2xf32> to vector<2x2xf32>
    %cst_590 = arith.constant 1.000000e+00 : f32
    %609 = vector.broadcast %cst_590 : f32 to vector<2x2xf32>
    %610 = arith.addf %608, %609 : vector<2x2xf32>
    %cst_591 = arith.constant 5.000000e-01 : f32
    %611 = vector.broadcast %cst_591 : f32 to vector<2x2xf32>
    %612 = arith.mulf %611, %610 : vector<2x2xf32>
    %613 = arith.mulf %606, %580 : vector<2x2xf32>
    %614 = arith.mulf %601, %607 : vector<2x2xf32>
    %615 = arith.addf %613, %614 : vector<2x2xf32>
    %616 = math.tanh %615 : vector<2x2xf32>
    %617 = arith.mulf %612, %616 : vector<2x2xf32>
    %c6_i32 = arith.constant 6 : i32
    %618 = arith.index_cast %c6_i32 : i32 to index
    %c0_592 = arith.constant 0 : index
    %c0_593 = arith.constant 0 : index
    %619 = vector.load %arg12[%618, %c0_592, %c0_593] : memref<8x8x2xf32, #tpu.memory_space<vmem>>, vector<1x8x2xf32>
    %620 = vector.shape_cast %619 : vector<1x8x2xf32> to vector<8x2xf32>
    %621 = vector.extract_strided_slice %617 {offsets = [0, 0], sizes = [1, 2], strides = [1, 1]} : vector<2x2xf32> to vector<1x2xf32>
    %622 = vector.broadcast %621 : vector<1x2xf32> to vector<8x2xf32>
    %623 = arith.mulf %402, %622 : vector<8x2xf32>
    %624 = arith.addf %620, %623 : vector<8x2xf32>
    %625 = vector.extract_strided_slice %617 {offsets = [1, 0], sizes = [1, 2], strides = [1, 1]} : vector<2x2xf32> to vector<1x2xf32>
    %626 = vector.broadcast %625 : vector<1x2xf32> to vector<8x2xf32>
    %627 = arith.mulf %405, %626 : vector<8x2xf32>
    %628 = arith.addf %624, %627 : vector<8x2xf32>
    %cst_594 = arith.constant 5.000000e-01 : f32
    %629 = vector.broadcast %cst_594 : f32 to vector<8x2xf32>
    %630 = arith.mulf %629, %628 : vector<8x2xf32>
    %631 = math.tanh %630 : vector<8x2xf32>
    %632 = vector.extract_strided_slice %631 {offsets = [0, 0], sizes = [2, 2], strides = [1, 1]} : vector<8x2xf32> to vector<2x2xf32>
    %cst_595 = arith.constant 1.000000e+00 : f32
    %633 = vector.broadcast %cst_595 : f32 to vector<2x2xf32>
    %634 = arith.addf %632, %633 : vector<2x2xf32>
    %cst_596 = arith.constant 5.000000e-01 : f32
    %635 = vector.broadcast %cst_596 : f32 to vector<2x2xf32>
    %636 = arith.mulf %635, %634 : vector<2x2xf32>
    %637 = vector.extract_strided_slice %631 {offsets = [2, 0], sizes = [2, 2], strides = [1, 1]} : vector<8x2xf32> to vector<2x2xf32>
    %cst_597 = arith.constant 1.000000e+00 : f32
    %638 = vector.broadcast %cst_597 : f32 to vector<2x2xf32>
    %639 = arith.addf %637, %638 : vector<2x2xf32>
    %cst_598 = arith.constant 5.000000e-01 : f32
    %640 = vector.broadcast %cst_598 : f32 to vector<2x2xf32>
    %641 = arith.mulf %640, %639 : vector<2x2xf32>
    %642 = vector.extract_strided_slice %631 {offsets = [4, 0], sizes = [2, 2], strides = [1, 1]} : vector<8x2xf32> to vector<2x2xf32>
    %643 = vector.extract_strided_slice %631 {offsets = [6, 0], sizes = [2, 2], strides = [1, 1]} : vector<8x2xf32> to vector<2x2xf32>
    %cst_599 = arith.constant 1.000000e+00 : f32
    %644 = vector.broadcast %cst_599 : f32 to vector<2x2xf32>
    %645 = arith.addf %643, %644 : vector<2x2xf32>
    %cst_600 = arith.constant 5.000000e-01 : f32
    %646 = vector.broadcast %cst_600 : f32 to vector<2x2xf32>
    %647 = arith.mulf %646, %645 : vector<2x2xf32>
    %648 = arith.mulf %641, %615 : vector<2x2xf32>
    %649 = arith.mulf %636, %642 : vector<2x2xf32>
    %650 = arith.addf %648, %649 : vector<2x2xf32>
    %651 = math.tanh %650 : vector<2x2xf32>
    %652 = arith.mulf %647, %651 : vector<2x2xf32>
    %c7_i32 = arith.constant 7 : i32
    %653 = arith.index_cast %c7_i32 : i32 to index
    %c0_601 = arith.constant 0 : index
    %c0_602 = arith.constant 0 : index
    %654 = vector.load %arg12[%653, %c0_601, %c0_602] : memref<8x8x2xf32, #tpu.memory_space<vmem>>, vector<1x8x2xf32>
    %655 = vector.shape_cast %654 : vector<1x8x2xf32> to vector<8x2xf32>
    %656 = vector.extract_strided_slice %652 {offsets = [0, 0], sizes = [1, 2], strides = [1, 1]} : vector<2x2xf32> to vector<1x2xf32>
    %657 = vector.broadcast %656 : vector<1x2xf32> to vector<8x2xf32>
    %658 = arith.mulf %402, %657 : vector<8x2xf32>
    %659 = arith.addf %655, %658 : vector<8x2xf32>
    %660 = vector.extract_strided_slice %652 {offsets = [1, 0], sizes = [1, 2], strides = [1, 1]} : vector<2x2xf32> to vector<1x2xf32>
    %661 = vector.broadcast %660 : vector<1x2xf32> to vector<8x2xf32>
    %662 = arith.mulf %405, %661 : vector<8x2xf32>
    %663 = arith.addf %659, %662 : vector<8x2xf32>
    %cst_603 = arith.constant 5.000000e-01 : f32
    %664 = vector.broadcast %cst_603 : f32 to vector<8x2xf32>
    %665 = arith.mulf %664, %663 : vector<8x2xf32>
    %666 = math.tanh %665 : vector<8x2xf32>
    %667 = vector.extract_strided_slice %666 {offsets = [0, 0], sizes = [2, 2], strides = [1, 1]} : vector<8x2xf32> to vector<2x2xf32>
    %cst_604 = arith.constant 1.000000e+00 : f32
    %668 = vector.broadcast %cst_604 : f32 to vector<2x2xf32>
    %669 = arith.addf %667, %668 : vector<2x2xf32>
    %cst_605 = arith.constant 5.000000e-01 : f32
    %670 = vector.broadcast %cst_605 : f32 to vector<2x2xf32>
    %671 = arith.mulf %670, %669 : vector<2x2xf32>
    %672 = vector.extract_strided_slice %666 {offsets = [2, 0], sizes = [2, 2], strides = [1, 1]} : vector<8x2xf32> to vector<2x2xf32>
    %cst_606 = arith.constant 1.000000e+00 : f32
    %673 = vector.broadcast %cst_606 : f32 to vector<2x2xf32>
    %674 = arith.addf %672, %673 : vector<2x2xf32>
    %cst_607 = arith.constant 5.000000e-01 : f32
    %675 = vector.broadcast %cst_607 : f32 to vector<2x2xf32>
    %676 = arith.mulf %675, %674 : vector<2x2xf32>
    %677 = vector.extract_strided_slice %666 {offsets = [4, 0], sizes = [2, 2], strides = [1, 1]} : vector<8x2xf32> to vector<2x2xf32>
    %678 = vector.extract_strided_slice %666 {offsets = [6, 0], sizes = [2, 2], strides = [1, 1]} : vector<8x2xf32> to vector<2x2xf32>
    %cst_608 = arith.constant 1.000000e+00 : f32
    %679 = vector.broadcast %cst_608 : f32 to vector<2x2xf32>
    %680 = arith.addf %678, %679 : vector<2x2xf32>
    %cst_609 = arith.constant 5.000000e-01 : f32
    %681 = vector.broadcast %cst_609 : f32 to vector<2x2xf32>
    %682 = arith.mulf %681, %680 : vector<2x2xf32>
    %683 = arith.mulf %676, %650 : vector<2x2xf32>
    %684 = arith.mulf %671, %677 : vector<2x2xf32>
    %685 = arith.addf %683, %684 : vector<2x2xf32>
    %686 = math.tanh %685 : vector<2x2xf32>
    %687 = arith.mulf %682, %686 : vector<2x2xf32>
    %c8_i32 = arith.constant 8 : i32
    %cst_610 = arith.constant dense<0xFF800000> : vector<2xf32>
    %688 = vector.multi_reduction <maximumf>, %687, %cst_610 [0] : vector<2x2xf32> to vector<2xf32>
    %689 = vector.shape_cast %688 : vector<2xf32> to vector<1x2xf32>
    %690 = vector.broadcast %689 : vector<1x2xf32> to vector<2x2xf32>
    %691 = arith.subf %687, %690 : vector<2x2xf32>
    %692 = math.exp %691 : vector<2x2xf32>
    %cst_611 = arith.constant dense<0.000000e+00> : vector<2xf32>
    %693 = vector.multi_reduction <add>, %692, %cst_611 [0] : vector<2x2xf32> to vector<2xf32>
    %694 = vector.shape_cast %693 : vector<2xf32> to vector<1x2xf32>
    %695 = math.log %694 : vector<1x2xf32>
    %696 = arith.addf %689, %695 : vector<1x2xf32>
    %697 = vector.broadcast %696 : vector<1x2xf32> to vector<2x2xf32>
    %698 = arith.subf %687, %697 : vector<2x2xf32>
    %c0_612 = arith.constant 0 : index
    %c0_613 = arith.constant 0 : index
    %699 = vector.load %arg9[%c0_612, %c0_613] : memref<2x2xf32, #tpu.memory_space<vmem>>, vector<2x2xf32>
    tpu.vector_store %arg9[%c0_612, %c0_613], %698 {strides = array<i32>} : memref<2x2xf32, #tpu.memory_space<vmem>>, vector<2x2xf32>,
    return
  }
}

</mosaic_0001>

<bundles_post_ra>
// kernel: tpu_custom_call.1
= control target key start
LH: loop header
LB: loop body
LE: loop exit
PB: predicated region body
PF: predicated region fallthrough
CT: control target
= control target key end

     0   :  { %s1803_s13 = smov 70   ;;  %s1804_s14 = smov 72   ;;  %s2791_s0 = inlined_call_operand.vmem [shape: f32[2,127], index: 0, kind: input, shape index: {}]   ;;  %s2792_s1 = inlined_call_operand.vmem [shape: f32[32,64], index: 1, kind: input, shape index: {}]   ;;  %s2793_s2 = inlined_call_operand.vmem [shape: f32[32,1], index: 2, kind: input, shape index: {}]   ;;  %s2794_s3 = inlined_call_operand.vmem [shape: f32[32,1], index: 3, kind: input, shape index: {}]   ;;  %s2795_s4 = inlined_call_operand.vmem [shape: f32[32,1], index: 4, kind: input, shape index: {}]   ;;  %s2796_s5 = inlined_call_operand.vmem [shape: f32[8,32], index: 5, kind: input, shape index: {}]   ;;  %s2797_s6 = inlined_call_operand.vmem [shape: f32[8,2], index: 6, kind: input, shape index: {}]   ;;  %s2798_s7 = inlined_call_operand.vmem [shape: f32[8,1], index: 7, kind: input, shape index: {}]   ;;  %s2799_s8 = inlined_call_operand.vmem [shape: f32[64,8], index: 8, kind: input, shape index: {}]   ;;  %s2800_s9 = inlined_call_operand.hbm [shape: f32[2,2], index: 9, kind: output, shape index: {}]  }
   0x1   :  { %v386_v0 = vld [vmem:[%s2791_s0] sm:$0x1]  ;;  %s1805_s17 = smov 68  }
   0x2   :  { %v374_v1 = vld [vmem:[%s2791_s0] sm:$0x1]  ;;  %388 = vrot.lane.b32.xlu1 %v386_v0, %s1803_s13 }
   0x3   :  { %376 = vrot.lane.b32.xlu0 %v374_v1, %s1804_s14  ;;  %v398_v2 = vld [vmem:[%s2791_s0] sm:$0x1] }
   0x4   :  { %400 = vrot.lane.b32.xlu2 %v398_v2, %s1805_s17  ;;  %v392_v3 = vld [vmem:[%s2791_s0] sm:$0x1] }
   0x5   :  { %v380_v4 = vld [vmem:[%s2791_s0] sm:$0x1] }
   0x6   :  { %14 = vsyncpa [#allocation6], 0  ;;  %s1806_s22 = smov 69   ;;  %s1807_s23 = smov 71   ;;  %v404_v5 = vld [vmem:[%s2791_s0] sm:$0x1] }
   0x7   :  { %s1808_s26 = smov 67   ;;  %v416_v6 = vld [vmem:[%s2791_s0] sm:$0x1]  ;;  %s1809_s10 = smov 65   ;;  %vm42_vm0 = vcmask 516096   ;;  %vm450_vm1 = vcmask 523264  }
   0x8   :  { %v410_v7 = vld [vmem:[%s2791_s0] sm:$0x1]  ;;  %s1810_s11 = smov 66   ;;  %s1811_s16 = smov 80   ;;  %v844_v40 = vld [vmem:[%s2791_s0 + $0x1] sm:$0x1] }
   0x9   :  { %v326_v8 = vld [vmem:[%s2791_s0] sm:$0x1]  ;;  %s1812_s24 = smov 78   ;;  %s1813_s25 = smov 79   ;;  %v850_v43 = vld [vmem:[%s2791_s0 + $0x1] sm:$0x1] }
   0xa   :  { %394 = vrot.lane.b32.xlu1 %v392_v3, %s1806_s22  ;;  %v338_v9 = vld [vmem:[%s2791_s0] sm:$0x1]  ;;  %s2801_s29 = smov 77   ;;  %s2802_s19 = smov 75   ;;  %v862_v44 = vld [vmem:[%s2791_s0 + $0x1] sm:$0x1] }
   0xb   :  { %382 = vrot.lane.b32.xlu0 %v380_v4, %s1807_s23  ;;  %v332_v10 = vld [vmem:[%s2791_s0] sm:$0x1]  ;;  %s2803_s20 = smov 76   ;;  %s2804_s28 = smov 74   ;;  %v856_v45 = vld [vmem:[%s2791_s0 + $0x1] sm:$0x1] }
   0xc   :  { %406 = vrot.lane.b32.xlu2 %v404_v5, %s1808_s26  ;;  %v344_v11 = vld [vmem:[%s2791_s0] sm:$0x1]  ;;  %s2805_s18 = smov 73   ;;  %s2807_s27 = smov 87   ;;  %v868_v47 = vld [vmem:[%s2791_s0 + $0x1] sm:$0x1] }
   0xd   :  { %v356_v12 = vld [vmem:[%s2791_s0] sm:$0x1]  ;;  %s2808_s15 = smov 86   ;;  %s2810_s21 = smov 84   ;;  %v880_v50 = vld [vmem:[%s2791_s0 + $0x1] sm:$0x1] }
   0xe   :  { %v350_v13 = vld [vmem:[%s2791_s0] sm:$0x1]  ;;  %s2811_s12 = smov 83   ;;  %s2814_s30 = smov 95   ;;  %v874_v51 = vld [vmem:[%s2791_s0 + $0x1] sm:$0x1] }
   0xf   :  { %v362_v14 = vld [vmem:[%s2791_s0] sm:$0x1]  ;;  %v886_v53 = vld [vmem:[%s2791_s0 + $0x1] sm:$0x1] }
  0x10   :  { %v368_v15 = vld [vmem:[%s2791_s0] sm:$0x1] }
  0x11   :  { %v278_v16 = vld [vmem:[%s2791_s0] sm:$0x1] }
  0x12   :  { %418 = vrot.lane.b32.xlu1 %v416_v6, %s1809_s10  ;;  %v284_v17 = vld [vmem:[%s2791_s0] sm:$0x1] }
  0x13   :  { %412 = vrot.lane.b32.xlu0 %v410_v7, %s1810_s11  ;;  %v290_v18 = vld [vmem:[%s2791_s0] sm:$0x1] }
  0x14   :  { %328 = vrot.lane.b32.xlu2 %v326_v8, %s1811_s16  ;;  %v296_v19 = vld [vmem:[%s2791_s0] sm:$0x1]  ;;  %v796_v8 = vld [vmem:[%s2791_s0 + $0x1] sm:$0x1] }
  0x15   :  { %v302_v20 = vld [vmem:[%s2791_s0] sm:$0x1] }
  0x16   :  { %v308_v21 = vld [vmem:[%s2791_s0] sm:$0x1] }
  0x17   :  { %v314_v22 = vld [vmem:[%s2791_s0] sm:$0x1] }
  0x18   :  { %v320_v23 = vld [vmem:[%s2791_s0] sm:$0x1] }
  0x19   :  { %v236_v24 = vld [vmem:[%s2791_s0] sm:$0x1] }
  0x1a   :  { %340 = vrot.lane.b32.xlu1 %v338_v9, %s1812_s24  ;;  %v230_v25 = vld [vmem:[%s2791_s0] sm:$0x1] }
  0x1b   :  { %334 = vrot.lane.b32.xlu0 %v332_v10, %s1813_s25  ;;  %v242_v26 = vld [vmem:[%s2791_s0] sm:$0x1] }
  0x1c   :  { %346 = vrot.lane.b32.xlu2 %v344_v11, %s2801_s29  ;;  %v254_v27 = vld [vmem:[%s2791_s0] sm:$0x1]  ;;  %s2817_s29 = smov 92   ;;  %v808_v11 = vld [vmem:[%s2791_s0 + $0x1] sm:$0x1] }
  0x1d   :  { %v248_v28 = vld [vmem:[%s2791_s0] sm:$0x1] }
  0x1e   :  { %v260_v29 = vld [vmem:[%s2791_s0] sm:$0x1] }
  0x1f   :  { %v272_v30 = vld [vmem:[%s2791_s0] sm:$0x1] }
  0x20   :  { %v266_v31 = vld [vmem:[%s2791_s0] sm:$0x1] }
  0x21   :  { %v182_v32 = vld [vmem:[%s2791_s0] sm:$0x1] }
  0x22   :  { %358 = vrot.lane.b32.xlu1 %v356_v12, %s2802_s19  ;;  %s2806_s19 = smov 88   ;;  %v194_v33 = vld [vmem:[%s2791_s0] sm:$0x1]  ;;  %v802_v12 = vld [vmem:[%s2791_s0 + $0x1] sm:$0x1] }
  0x23   :  { %352 = vrot.lane.b32.xlu0 %v350_v13, %s2803_s20  ;;  %s2813_s20 = smov 81   ;;  %v188_v34 = vld [vmem:[%s2791_s0] sm:$0x1] }
  0x24   :  { %364 = vrot.lane.b32.xlu2 %v362_v14, %s2804_s28  ;;  %s2820_s28 = smov 89   ;;  %v200_v35 = vld [vmem:[%s2791_s0] sm:$0x1]  ;;  %v814_v14 = vld [vmem:[%s2791_s0 + $0x1] sm:$0x1] }
  0x25   :  { %v212_v36 = vld [vmem:[%s2791_s0] sm:$0x1] }
  0x26   :  { %v206_v37 = vld [vmem:[%s2791_s0] sm:$0x1] }
  0x27   :  { %v218_v39 = vld [vmem:[%s2791_s0] sm:$0x1] }
  0x28   :  { %v224_v41 = vld [vmem:[%s2791_s0] sm:$0x1] }
  0x29   :  { %v140_v56 = vld [vmem:[%s2791_s0] sm:$0x1] }
  0x2a   :  { %280 = vrot.lane.b32.xlu1 %v278_v16, %s2806_s19  ;;  %s2816_s19 = smov 94   ;;  %v134_v57 = vld [vmem:[%s2791_s0] sm:$0x1] }
  0x2b   :  { %370 = vrot.lane.b32.xlu0 %v368_v15, %s2805_s18  ;;  %s2809_s18 = smov 85   ;;  %v146_v59 = vld [vmem:[%s2791_s0] sm:$0x1] }
  0x2c   :  { %286 = vrot.lane.b32.xlu2 %v284_v17, %s2807_s27  ;;  %s2824_s27 = smov 102   ;;  %v158_v62 = vld [vmem:[%s2791_s0] sm:$0x1]  ;;  %v826_v17 = vld [vmem:[%s2791_s0 + $0x1] sm:$0x1] }
  0x2d   :  { %v152_v63 = vld [vmem:[%s2791_s0] sm:$0x1] }
  0x2e   :  { %v164_v1 = vld [vmem:[%s2791_s0] sm:$0x1] }
  0x2f   :  { %v176_v5 = vld [vmem:[%s2791_s0] sm:$0x1] }
  0x30   :  { %v170_v6 = vld [vmem:[%s2791_s0] sm:$0x1] }
  0x32   :  { %298 = vrot.lane.b32.xlu1 %v296_v19, %s2809_s18  ;;  %s2819_s18 = smov 91  }
  0x33   :  { %292 = vrot.lane.b32.xlu0 %v290_v18, %s2808_s15  ;;  %s2812_s15 = smov 82   ;;  %v820_v18 = vld [vmem:[%s2791_s0 + $0x1] sm:$0x1] }
  0x34   :  { %304 = vrot.lane.b32.xlu2 %v302_v20, %s2810_s21  ;;  %v832_v20 = vld [vmem:[%s2791_s0 + $0x1] sm:$0x1]  ;;  %s2831_s21 = smov 114  }
  0x3a   :  { %316 = vrot.lane.b32.xlu1 %v314_v22, %s2812_s15  ;;  %s1835_s15 = smov 104  }
  0x3b   :  { %310 = vrot.lane.b32.xlu0 %v308_v21, %s2811_s12  ;;  %s2815_s12 = smov 96  }
  0x3c   :  { %322 = vrot.lane.b32.xlu2 %v320_v23, %s2813_s20  ;;  %s2827_s20 = smov 117  }
  0x42   :  { %238 = vrot.lane.b32.xlu1 %v236_v24, %s2814_s30  ;;  %s2818_s30 = smov 93   ;;  %v838_v24 = vld [vmem:[%s2791_s0 + $0x1] sm:$0x1] }
  0x43   :  { %232 = vrot.lane.b32.xlu0 %v230_v25, %s2815_s12  ;;  %s2823_s12 = smov 101   ;;  %v86_v25 = vld [vmem:[%s2791_s0] sm:$0x1] }
  0x44   :  { %244 = vrot.lane.b32.xlu2 %v242_v26, %s2816_s19  ;;  %s1846_s19 = smov 108  }
  0x4a   :  { %256 = vrot.lane.b32.xlu1 %v254_v27, %s2817_s29  ;;  %s2821_s29 = smov 90   ;;  %v92_v27 = vld [vmem:[%s2791_s0] sm:$0x1] }
  0x4b   :  { %250 = vrot.lane.b32.xlu0 %v248_v28, %s2818_s30  ;;  %s2863_s30 = smov 94  }
  0x4c   :  { %262 = vrot.lane.b32.xlu2 %v260_v29, %s2819_s18  ;;  %s2850_s18 = smov 76  }
  0x52   :  { %274 = vrot.lane.b32.xlu1 %v272_v30, %s2820_s28  ;;  %s2822_s28 = smov 103   ;;  %v98_v30 = vld [vmem:[%s2791_s0] sm:$0x1] }
  0x53   :  { %268 = vrot.lane.b32.xlu0 %v266_v31, %s2821_s29  ;;  %s2825_s29 = smov 100   ;;  %v104_v31 = vld [vmem:[%s2791_s0] sm:$0x1] }
  0x54   :  { %184 = vrot.lane.b32.xlu2 %v182_v32, %s1835_s15 }
  0x5a   :  { %196 = vrot.lane.b32.xlu1 %v194_v33, %s2824_s27  ;;  %s1841_s27 = smov 98   ;;  %v110_v33 = vld [vmem:[%s2791_s0] sm:$0x1] }
  0x5b   :  { %190 = vrot.lane.b32.xlu0 %v188_v34, %s2822_s28  ;;  %s1839_s28 = smov 99  }
  0x5c   :  { %202 = vrot.lane.b32.xlu2 %v200_v35, %s2823_s12  ;;  %s2833_s12 = smov 113  }
  0x5e   :  { %v401_v38 = vpop.permute.xlu2 %400 }
  0x5f   :  { %403 = vst.msk [vmem:[#allocation2 + $0x3c] sm:$0x1] %vm42_vm0, %v401_v38  ;;  %v122_v38 = vld [vmem:[%s2791_s0] sm:$0x1] }
  0x62   :  { %214 = vrot.lane.b32.xlu1 %v212_v36, %s1839_s28 }
  0x63   :  { %208 = vrot.lane.b32.xlu0 %v206_v37, %s2825_s29  ;;  %s1842_s29 = smov 97   ;;  %v116_v37 = vld [vmem:[%s2791_s0] sm:$0x1] }
  0x64   :  { %220 = vrot.lane.b32.xlu2 %v218_v39, %s1841_s27 }
  0x66   :  { %v407_v42 = vpop.permute.xlu2 %406 }
  0x67   :  { %409 = vst.msk [vmem:[#allocation2 + $0x3d] sm:$0x1] %vm42_vm0, %v407_v42 }
  0x6a   :  { %846 = vrot.lane.b32.xlu1 %v844_v40, %s1804_s14  ;;  %s1844_s14 = smov 112   ;;  %v128_v40 = vld [vmem:[%s2791_s0] sm:$0x1] }
  0x6b   :  { %226 = vrot.lane.b32.xlu0 %v224_v41, %s1842_s29 }
  0x6c   :  { %852 = vrot.lane.b32.xlu2 %v850_v43, %s1807_s23  ;;  %s1845_s23 = smov 110   ;;  %v748_v43 = vld [vmem:[%s2791_s0 + $0x1] sm:$0x1] }
  0x6e   :  { %v329_v46 = vpop.permute.xlu2 %328 }
  0x6f   :  { %331 = vst.msk [vmem:[#allocation2 + $0x30] sm:$0x1] %vm42_vm0, %v329_v46  ;;  %v760_v46 = vld [vmem:[%s2791_s0 + $0x1] sm:$0x1] }
  0x72   :  { %864 = vrot.lane.b32.xlu1 %v862_v44, %s1806_s22  ;;  %s1849_s22 = smov 105   ;;  %v754_v44 = vld [vmem:[%s2791_s0 + $0x1] sm:$0x1] }
  0x73   :  { %858 = vrot.lane.b32.xlu0 %v856_v45, %s1803_s13  ;;  %s1850_s13 = smov 106  }
  0x74   :  { %v389_v48 = vpop.permute.xlu1 %388  ;;  %870 = vrot.lane.b32.xlu2 %v868_v47, %s1805_s17  ;;  %s1847_s17 = smov 109  }
  0x75   :  { %v377_v49 = vpop.permute.xlu0 %376  ;;  %391 = vst.msk [vmem:[#allocation2 + $0x3a] sm:$0x1] %vm42_vm0, %v389_v48 }
  0x76   :  { %379 = vst.msk [vmem:[#allocation2 + $0x38] sm:$0x1] %vm42_vm0, %v377_v49  ;;  %v347_v52 = vpop.permute.xlu2 %346  ;;  %v766_v49 = vld [vmem:[%s2791_s0 + $0x1] sm:$0x1] }
  0x77   :  { %349 = vst.msk [vmem:[#allocation2 + $0x33] sm:$0x1] %vm42_vm0, %v347_v52  ;;  %v778_v52 = vld [vmem:[%s2791_s0 + $0x1] sm:$0x1] }
  0x7a   :  { %882 = vrot.lane.b32.xlu1 %v880_v50, %s1810_s11  ;;  %s1848_s11 = smov 107   ;;  %v772_v50 = vld [vmem:[%s2791_s0 + $0x1] sm:$0x1] }
  0x7b   :  { %876 = vrot.lane.b32.xlu0 %v874_v51, %s1808_s26  ;;  %s1843_s26 = smov 111  }
  0x7c   :  { %v395_v54 = vpop.permute.xlu1 %394  ;;  %888 = vrot.lane.b32.xlu2 %v886_v53, %s1809_s10  ;;  %s2828_s10 = smov 116  }
  0x7d   :  { %v383_v55 = vpop.permute.xlu0 %382  ;;  %397 = vst.msk [vmem:[#allocation2 + $0x3b] sm:$0x1] %vm42_vm0, %v395_v54 }
  0x7e   :  { %385 = vst.msk [vmem:[#allocation2 + $0x39] sm:$0x1] %vm42_vm0, %v383_v55  ;;  %v365_v58 = vpop.permute.xlu2 %364 }
  0x7f   :  { %367 = vst.msk [vmem:[#allocation2 + $0x36] sm:$0x1] %vm42_vm0, %v365_v58 }
  0x82   :  { %142 = vrot.lane.b32.xlu1 %v140_v56, %s1843_s26  ;;  %v784_v56 = vld [vmem:[%s2791_s0 + $0x1] sm:$0x1] }
  0x83   :  { %136 = vrot.lane.b32.xlu0 %v134_v57, %s1844_s14  ;;  %v790_v57 = vld [vmem:[%s2791_s0 + $0x1] sm:$0x1] }
  0x84   :  { %v419_v60 = vpop.permute.xlu1 %418  ;;  %148 = vrot.lane.b32.xlu2 %v146_v59, %s1845_s23  ;;  %v44_v59 = vld [vmem:[%s2791_s0] sm:$0x1] }
  0x85   :  { %v413_v61 = vpop.permute.xlu0 %412  ;;  %421 = vst.msk [vmem:[#allocation2 + $0x3f] sm:$0x1] %vm42_vm0, %v419_v60 }
  0x86   :  { %415 = vst.msk [vmem:[#allocation2 + $0x3e] sm:$0x1] %vm42_vm0, %v413_v61  ;;  %v287_v0 = vpop.permute.xlu2 %286 }
  0x87   :  { %289 = vst.msk [vmem:[#allocation2 + $0x29] sm:$0x1] %vm42_vm0, %v287_v0 }
  0x8a   :  { %160 = vrot.lane.b32.xlu1 %v158_v62, %s1846_s19  ;;  %v56_v62 = vld [vmem:[%s2791_s0] sm:$0x1] }
  0x8b   :  { %154 = vrot.lane.b32.xlu0 %v152_v63, %s1847_s17  ;;  %v50_v63 = vld [vmem:[%s2791_s0] sm:$0x1] }
  0x8c   :  { %v341_v2 = vpop.permute.xlu1 %340  ;;  %166 = vrot.lane.b32.xlu2 %v164_v1, %s1848_s11  ;;  %v62_v1 = vld [vmem:[%s2791_s0] sm:$0x1] }
  0x8d   :  { %v335_v3 = vpop.permute.xlu0 %334  ;;  %343 = vst.msk [vmem:[#allocation2 + $0x32] sm:$0x1] %vm42_vm0, %v341_v2  ;;  %v429_v4 = vld [vmem:[#allocation2 + $0x38] sm:$0xff] }
  0x8e   :  { %337 = vst.msk [vmem:[#allocation2 + $0x31] sm:$0x1] %vm42_vm0, %v335_v3  ;;  %471 = vmatpush.msra.mxu0 %v429_v4  ;;  %v305_v7 = vpop.permute.xlu2 %304  ;;  %v74_v4 = vld [vmem:[%s2791_s0] sm:$0x1] }
  0x8f   :  { %307 = vst.msk [vmem:[#allocation2 + $0x2c] sm:$0x1] %vm42_vm0, %v305_v7  ;;  %v80_v7 = vld [vmem:[%s2791_s0] sm:$0x1] }
  0x92   :  { %178 = vrot.lane.b32.xlu1 %v176_v5, %s1849_s22  ;;  %v68_v5 = vld [vmem:[%s2791_s0] sm:$0x1] }
  0x93   :  { %172 = vrot.lane.b32.xlu0 %v170_v6, %s1850_s13 }
  0x94   :  { %v359_v9 = vpop.permute.xlu1 %358  ;;  %798 = vrot.lane.b32.xlu2 %v796_v8, %s1811_s16  ;;  %s2848_s16 = smov 77  }
  0x95   :  { %v353_v10 = vpop.permute.xlu0 %352  ;;  %361 = vst.msk [vmem:[#allocation2 + $0x35] sm:$0x1] %vm42_vm0, %v359_v9 }
  0x96   :  { %355 = vst.msk [vmem:[#allocation2 + $0x34] sm:$0x1] %vm42_vm0, %v353_v10  ;;  %v323_v13 = vpop.permute.xlu2 %322 }
  0x97   :  { %325 = vst.msk [vmem:[#allocation2 + $0x2f] sm:$0x1] %vm42_vm0, %v323_v13 }
  0x9a   :  { %810 = vrot.lane.b32.xlu1 %v808_v11, %s1812_s24  ;;  %v706_v11 = vld [vmem:[%s2791_s0 + $0x1] sm:$0x1] }
  0x9b   :  { %804 = vrot.lane.b32.xlu0 %v802_v12, %s1813_s25  ;;  %s2849_s25 = smov 75   ;;  %v700_v12 = vld [vmem:[%s2791_s0 + $0x1] sm:$0x1] }
  0x9c   :  { %v281_v16 = vpop.permute.xlu1 %280  ;;  %816 = vrot.lane.b32.xlu2 %v814_v14, %s2848_s16  ;;  %s2851_s16 = smov 74   ;;  %v712_v14 = vld [vmem:[%s2791_s0 + $0x1] sm:$0x1] }
  0x9d   :  { %v371_v15 = vpop.permute.xlu0 %370  ;;  %283 = vst.msk [vmem:[#allocation2 + $0x28] sm:$0x1] %vm42_vm0, %v281_v16 }
  0x9e   :  { %373 = vst.msk [vmem:[#allocation2 + $0x37] sm:$0x1] %vm42_vm0, %v371_v15  ;;  %v245_v19 = vpop.permute.xlu2 %244 }
  0x9f   :  { %247 = vst.msk [vmem:[#allocation2 + $0x22] sm:$0x1] %vm42_vm0, %v245_v19 }
  0xa2   :  { %828 = vrot.lane.b32.xlu1 %v826_v17, %s2849_s25  ;;  %s2852_s25 = smov 73   ;;  %v724_v17 = vld [vmem:[%s2791_s0 + $0x1] sm:$0x1] }
  0xa3   :  { %822 = vrot.lane.b32.xlu0 %v820_v18, %s2850_s18  ;;  %s2826_s18 = smov 120   ;;  %v718_v18 = vld [vmem:[%s2791_s0 + $0x1] sm:$0x1] }
  0xa4   :  { %v299_v22 = vpop.permute.xlu1 %298  ;;  %834 = vrot.lane.b32.xlu2 %v832_v20, %s2851_s16  ;;  %s2832_s16 = smov 119   ;;  %v730_v20 = vld [vmem:[%s2791_s0 + $0x1] sm:$0x1] }
  0xa5   :  { %v293_v21 = vpop.permute.xlu0 %292  ;;  %v428_v23 = vld [vmem:[#allocation2 + $0x30] sm:$0xff]  ;;  %301 = vst.msk [vmem:[#allocation2 + $0x2b] sm:$0x1] %vm42_vm0, %v299_v22 }
  0xa6   :  { %295 = vst.msk [vmem:[#allocation2 + $0x2a] sm:$0x1] %vm42_vm0, %v293_v21  ;;  %472 = vmatpush.msra.mxu0 %v428_v23  ;;  %v263_v26 = vpop.permute.xlu2 %262 }
  0xa7   :  { %265 = vst.msk [vmem:[#allocation2 + $0x25] sm:$0x1] %vm42_vm0, %v263_v26 }
  0xaa   :  { %88 = vrot.lane.b32.xlu1 %v86_v25, %s2826_s18  ;;  %s2830_s18 = smov 115   ;;  %v736_v25 = vld [vmem:[%s2791_s0 + $0x1] sm:$0x1] }
  0xab   :  { %840 = vrot.lane.b32.xlu0 %v838_v24, %s2852_s25  ;;  %s2829_s25 = smov 118   ;;  %v742_v24 = vld [vmem:[%s2791_s0 + $0x1] sm:$0x1] }
  0xac   :  { %v317_v29 = vpop.permute.xlu1 %316  ;;  %94 = vrot.lane.b32.xlu2 %v92_v27, %s2832_s16  ;;  %s2856_s16 = smov 85   ;;  %v652_v27 = vld [vmem:[%s2791_s0 + $0x1] sm:$0x1] }
  0xad   :  { %v311_v28 = vpop.permute.xlu0 %310  ;;  %319 = vst.msk [vmem:[#allocation2 + $0x2e] sm:$0x1] %vm42_vm0, %v317_v29 }
  0xae   :  { %313 = vst.msk [vmem:[#allocation2 + $0x2d] sm:$0x1] %vm42_vm0, %v311_v28  ;;  %v185_v32 = vpop.permute.xlu2 %184 }
  0xaf   :  { %187 = vst.msk [vmem:[#allocation2 + $0x18] sm:$0x1] %vm42_vm0, %v185_v32 }
  0xb2   :  { %106 = vrot.lane.b32.xlu1 %v104_v31, %s2827_s20  ;;  %s2855_s20 = smov 86   ;;  %v658_v31 = vld [vmem:[%s2791_s0 + $0x1] sm:$0x1] }
  0xb3   :  { %100 = vrot.lane.b32.xlu0 %v98_v30, %s2829_s25  ;;  %s2853_s25 = smov 88   ;;  %v664_v30 = vld [vmem:[%s2791_s0 + $0x1] sm:$0x1] }
  0xb4   :  { %v239_v34 = vpop.permute.xlu1 %238  ;;  %112 = vrot.lane.b32.xlu2 %v110_v33, %s2828_s10  ;;  %s2854_s10 = smov 87   ;;  %v670_v33 = vld [vmem:[%s2791_s0 + $0x1] sm:$0x1] }
  0xb5   :  { %v233_v35 = vpop.permute.xlu0 %232  ;;  %241 = vst.msk [vmem:[#allocation2 + $0x21] sm:$0x1] %vm42_vm0, %v239_v34  ;;  %v427_v36 = vld [vmem:[#allocation2 + $0x28] sm:$0xff] }
  0xb6   :  { %235 = vst.msk [vmem:[#allocation2 + $0x20] sm:$0x1] %vm42_vm0, %v233_v35  ;;  %473 = vmatpush.msra.mxu0 %v427_v36  ;;  %v203_v39 = vpop.permute.xlu2 %202  ;;  %v682_v36 = vld [vmem:[%s2791_s0 + $0x1] sm:$0x1] }
  0xb7   :  { %205 = vst.msk [vmem:[#allocation2 + $0x1b] sm:$0x1] %vm42_vm0, %v203_v39  ;;  %v688_v39 = vld [vmem:[%s2791_s0 + $0x1] sm:$0x1] }
  0xba   :  { %124 = vrot.lane.b32.xlu1 %v122_v38, %s2831_s21  ;;  %s2857_s21 = smov 84  }
  0xbb   :  { %118 = vrot.lane.b32.xlu0 %v116_v37, %s2830_s18  ;;  %s2836_s18 = smov 124   ;;  %v676_v37 = vld [vmem:[%s2791_s0 + $0x1] sm:$0x1] }
  0xbc   :  { %v257_v41 = vpop.permute.xlu1 %256  ;;  %130 = vrot.lane.b32.xlu2 %v128_v40, %s2833_s12  ;;  %s2859_s12 = smov 82  }
  0xbd   :  { %v251_v42 = vpop.permute.xlu0 %250  ;;  %259 = vst.msk [vmem:[#allocation2 + $0x24] sm:$0x1] %vm42_vm0, %v257_v41 }
  0xbe   :  { %253 = vst.msk [vmem:[#allocation2 + $0x23] sm:$0x1] %vm42_vm0, %v251_v42  ;;  %v221_v45 = vpop.permute.xlu2 %220 }
  0xbf   :  { %223 = vst.msk [vmem:[#allocation2 + $0x1e] sm:$0x1] %vm42_vm0, %v221_v45 }
  0xc2   :  { %756 = vrot.lane.b32.xlu1 %v754_v44, %s2854_s10  ;;  %s2840_s10 = smov 123   ;;  %v694_v44 = vld [vmem:[%s2791_s0 + $0x1] sm:$0x1] }
  0xc3   :  { %750 = vrot.lane.b32.xlu0 %v748_v43, %s2853_s25  ;;  %s2872_s25 = smov 100   ;;  %v604_v43 = vld [vmem:[%s2791_s0 + $0x1] sm:$0x1] }
  0xc4   :  { %v275_v47 = vpop.permute.xlu1 %274  ;;  %762 = vrot.lane.b32.xlu2 %v760_v46, %s2855_s20  ;;  %s2858_s20 = smov 83   ;;  %v610_v46 = vld [vmem:[%s2791_s0 + $0x1] sm:$0x1] }
  0xc5   :  { %v269_v48 = vpop.permute.xlu0 %268  ;;  %277 = vst.msk [vmem:[#allocation2 + $0x27] sm:$0x1] %vm42_vm0, %v275_v47 }
  0xc6   :  { %271 = vst.msk [vmem:[#allocation2 + $0x26] sm:$0x1] %vm42_vm0, %v269_v48  ;;  %v853_v51 = vpop.permute.xlu2 %852 }
  0xc7   :  { %855 = vst.msk [vmem:[#allocation2 + $0x39] sm:$0x1] %vm42_vm0, %v853_v51 }
  0xca   :  { %774 = vrot.lane.b32.xlu1 %v772_v50, %s2857_s21  ;;  %s2842_s21 = smov 122   ;;  %v616_v50 = vld [vmem:[%s2791_s0 + $0x1] sm:$0x1] }
  0xcb   :  { %768 = vrot.lane.b32.xlu0 %v766_v49, %s2856_s16  ;;  %s2860_s16 = smov 81   ;;  %v622_v49 = vld [vmem:[%s2791_s0 + $0x1] sm:$0x1] }
  0xcc   :  { %v197_v53 = vpop.permute.xlu1 %196  ;;  %780 = vrot.lane.b32.xlu2 %v778_v52, %s2858_s20  ;;  %s2846_s20 = smov 127   ;;  %v628_v52 = vld [vmem:[%s2791_s0 + $0x1] sm:$0x1] }
  0xcd   :  { %v191_v54 = vpop.permute.xlu0 %190  ;;  %199 = vst.msk [vmem:[#allocation2 + $0x1a] sm:$0x1] %vm42_vm0, %v197_v53  ;;  %v426_v55 = vld [vmem:[#allocation2 + $0x20] sm:$0xff] }
  0xce   :  { %193 = vst.msk [vmem:[#allocation2 + $0x19] sm:$0x1] %vm42_vm0, %v191_v54  ;;  %474 = vmatpush.msra.mxu0 %v426_v55  ;;  %v871_v58 = vpop.permute.xlu2 %870  ;;  %v640_v55 = vld [vmem:[%s2791_s0 + $0x1] sm:$0x1] }
  0xcf   :  { %873 = vst.msk [vmem:[#allocation2 + $0x3c] sm:$0x1] %vm42_vm0, %v871_v58  ;;  %v646_v58 = vld [vmem:[%s2791_s0 + $0x1] sm:$0x1] }
  0xd2   :  { %792 = vrot.lane.b32.xlu1 %v790_v57, %s2860_s16  ;;  %s2838_s16 = smov 126  }
  0xd3   :  { %786 = vrot.lane.b32.xlu0 %v784_v56, %s2859_s12  ;;  %s2834_s12 = smov 125   ;;  %v634_v56 = vld [vmem:[%s2791_s0 + $0x1] sm:$0x1] }
  0xd4   :  { %v215_v60 = vpop.permute.xlu1 %214  ;;  %46 = vrot.lane.b32.xlu2 %v44_v59, %s2846_s20  ;;  %s2867_s20 = smov 89  }
  0xd5   :  { %v209_v61 = vpop.permute.xlu0 %208  ;;  %217 = vst.msk [vmem:[#allocation2 + $0x1d] sm:$0x1] %vm42_vm0, %v215_v60 }
  0xd6   :  { %211 = vst.msk [vmem:[#allocation2 + $0x1c] sm:$0x1] %vm42_vm0, %v209_v61  ;;  %v889_v0 = vpop.permute.xlu2 %888 }
  0xd7   :  { %891 = vst.msk [vmem:[#allocation2 + $0x3f] sm:$0x1] %vm42_vm0, %v889_v0 }
  0xda   :  { %58 = vrot.lane.b32.xlu1 %v56_v62, %s2834_s12  ;;  %s2844_s12 = smov 121   ;;  %v562_v62 = vld [vmem:[%s2791_s0 + $0x1] sm:$0x1] }
  0xdb   :  { %52 = vrot.lane.b32.xlu0 %v50_v63, %s2838_s16  ;;  %s2861_s16 = smov 95   ;;  %v556_v63 = vld [vmem:[%s2791_s0 + $0x1] sm:$0x1] }
  0xdc   :  { %v847_v2 = vpop.permute.xlu1 %846  ;;  %64 = vrot.lane.b32.xlu2 %v62_v1, %s2836_s18  ;;  %s2862_s18 = smov 96   ;;  %v568_v1 = vld [vmem:[%s2791_s0 + $0x1] sm:$0x1] }
  0xdd   :  { %v227_v3 = vpop.permute.xlu0 %226  ;;  %849 = vst.msk [vmem:[#allocation2 + $0x38] sm:$0x1] %vm42_vm0, %v847_v2 }
  0xde   :  { %229 = vst.msk [vmem:[#allocation2 + $0x1f] sm:$0x1] %vm42_vm0, %v227_v3  ;;  %v149_v6 = vpop.permute.xlu2 %148 }
  0xdf   :  { %151 = vst.msk [vmem:[#allocation2 + $0x12] sm:$0x1] %vm42_vm0, %v149_v6 }
  0xe2   :  { %76 = vrot.lane.b32.xlu1 %v74_v4, %s2842_s21  ;;  %s2864_s21 = smov 92   ;;  %v580_v4 = vld [vmem:[%s2791_s0 + $0x1] sm:$0x1] }
  0xe3   :  { %70 = vrot.lane.b32.xlu0 %v68_v5, %s2840_s10  ;;  %v574_v5 = vld [vmem:[%s2791_s0 + $0x1] sm:$0x1] }
  0xe4   :  { %v865_v8 = vpop.permute.xlu1 %864  ;;  %82 = vrot.lane.b32.xlu2 %v80_v7, %s2844_s12  ;;  %s2865_s12 = smov 93   ;;  %v586_v7 = vld [vmem:[%s2791_s0 + $0x1] sm:$0x1] }
  0xe5   :  { %v859_v9 = vpop.permute.xlu0 %858  ;;  %867 = vst.msk [vmem:[#allocation2 + $0x3b] sm:$0x1] %vm42_vm0, %v865_v8  ;;  %v425_v10 = vld [vmem:[#allocation2 + $0x18] sm:$0xff] }
  0xe6   :  { %861 = vst.msk [vmem:[#allocation2 + $0x3a] sm:$0x1] %vm42_vm0, %v859_v9  ;;  %475 = vmatpush.msra.mxu0 %v425_v10  ;;  %v167_v13 = vpop.permute.xlu2 %166 }
  0xe7   :  { %169 = vst.msk [vmem:[#allocation2 + $0x15] sm:$0x1] %vm42_vm0, %v167_v13  ;;  %v592_v13 = vld [vmem:[%s2791_s0 + $0x1] sm:$0x1] }
  0xea   :  { %708 = vrot.lane.b32.xlu1 %v706_v11, %s2861_s16  ;;  %s2869_s16 = smov 102   ;;  %v41_v11 = vld [vmem:[%s2791_s0] sm:$0x1] }
  0xeb   :  { %702 = vrot.lane.b32.xlu0 %v700_v12, %s2862_s18  ;;  %v598_v12 = vld [vmem:[%s2791_s0 + $0x1] sm:$0x1]  ;;  %43 = vst.msk [vmem:[#allocation2] sm:$0x1] %vm42_vm0, %v41_v11 }
  0xec   :  { %v883_v15 = vpop.permute.xlu1 %882  ;;  %714 = vrot.lane.b32.xlu2 %v712_v14, %s2863_s30  ;;  %s2866_s30 = smov 91   ;;  %v37_v11 = vld [vmem:[%s2793_s2] sm:$0xff] }
  0xed   :  { %v877_v16 = vpop.permute.xlu0 %876  ;;  %885 = vst.msk [vmem:[#allocation2 + $0x3e] sm:$0x1] %vm42_vm0, %v883_v15  ;;  %v514_v15 = vld [vmem:[%s2791_s0 + $0x1] sm:$0x1] }
  0xee   :  { %879 = vst.msk [vmem:[#allocation2 + $0x3d] sm:$0x1] %vm42_vm0, %v877_v16  ;;  %v799_v19 = vpop.permute.xlu2 %798 }
  0xef   :  { %801 = vst.msk [vmem:[#allocation2 + $0x30] sm:$0x1] %vm42_vm0, %v799_v19  ;;  %v520_v19 = vld [vmem:[%s2791_s0 + $0x1] sm:$0x1] }
  0xf2   :  { %726 = vrot.lane.b32.xlu1 %v724_v17, %s2864_s21  ;;  %s2868_s21 = smov 90  }
  0xf3   :  { %720 = vrot.lane.b32.xlu0 %v718_v18, %s2865_s12  ;;  %v526_v18 = vld [vmem:[%s2791_s0 + $0x1] sm:$0x1]  ;;  %s2886_s12 = smov 123  }
  0xf4   :  { %v143_v21 = vpop.permute.xlu1 %142  ;;  %732 = vrot.lane.b32.xlu2 %v730_v20, %s2866_s30 }
  0xf5   :  { %v137_v22 = vpop.permute.xlu0 %136  ;;  %145 = vst.msk [vmem:[#allocation2 + $0x11] sm:$0x1] %vm42_vm0, %v143_v21  ;;  %v899_v23 = vld [vmem:[#allocation2 + $0x38] sm:$0xff]  ;;  %v532_v21 = vld [vmem:[%s2791_s0 + $0x1] sm:$0x1] }
  0xf6   :  { %139 = vst.msk [vmem:[#allocation2 + $0x10] sm:$0x1] %vm42_vm0, %v137_v22  ;;  %908 = vmatpush.msra.mxu1 %v899_v23  ;;  %v817_v26 = vpop.permute.xlu2 %816 }
  0xf7   :  { %819 = vst.msk [vmem:[#allocation2 + $0x33] sm:$0x1] %vm42_vm0, %v817_v26 }
  0xfa   :  { %744 = vrot.lane.b32.xlu1 %v742_v24, %s2867_s20  ;;  %s2870_s20 = smov 103   ;;  %v544_v24 = vld [vmem:[%s2791_s0 + $0x1] sm:$0x1] }
  0xfb   :  { %738 = vrot.lane.b32.xlu0 %v736_v25, %s2868_s21  ;;  %v538_v25 = vld [vmem:[%s2791_s0 + $0x1] sm:$0x1] }
  0xfc   :  { %v161_v28 = vpop.permute.xlu1 %160  ;;  %654 = vrot.lane.b32.xlu2 %v652_v27, %s1835_s15  ;;  %s2871_s15 = smov 101   ;;  %v550_v27 = vld [vmem:[%s2791_s0 + $0x1] sm:$0x1] }
  0xfd   :  { %v155_v29 = vpop.permute.xlu0 %154  ;;  %163 = vst.msk [vmem:[#allocation2 + $0x14] sm:$0x1] %vm42_vm0, %v161_v28 }
  0xfe   :  { %157 = vst.msk [vmem:[#allocation2 + $0x13] sm:$0x1] %vm42_vm0, %v155_v29  ;;  %v835_v32 = vpop.permute.xlu2 %834 }
  0xff   :  { %837 = vst.msk [vmem:[#allocation2 + $0x36] sm:$0x1] %vm42_vm0, %v835_v32 }
 0x102   :  { %666 = vrot.lane.b32.xlu1 %v664_v30, %s2869_s16  ;;  %s2884_s16 = smov 124  }
 0x103   :  { %660 = vrot.lane.b32.xlu0 %v658_v31, %s2870_s20  ;;  %s2878_s20 = smov 115  }
 0x104   :  { %v179_v34 = vpop.permute.xlu1 %178  ;;  %672 = vrot.lane.b32.xlu2 %v670_v33, %s2871_s15  ;;  %s2874_s15 = smov 120  }
 0x105   :  { %v173_v35 = vpop.permute.xlu0 %172  ;;  %181 = vst.msk [vmem:[#allocation2 + $0x17] sm:$0x1] %vm42_vm0, %v179_v34 }
 0x106   :  { %175 = vst.msk [vmem:[#allocation2 + $0x16] sm:$0x1] %vm42_vm0, %v173_v35  ;;  %v95_v38 = vpop.permute.xlu2 %94 }
 0x107   :  { %97 = vst.msk [vmem:[#allocation2 + $0x9] sm:$0x1] %vm42_vm0, %v95_v38 }
 0x10a   :  { %684 = vrot.lane.b32.xlu1 %v682_v36, %s1839_s28  ;;  %s2873_s28 = smov 119  }
 0x10b   :  { %678 = vrot.lane.b32.xlu0 %v676_v37, %s2872_s25  ;;  %s2877_s25 = smov 117  }
 0x10c   :  { %v811_v40 = vpop.permute.xlu1 %810  ;;  %690 = vrot.lane.b32.xlu2 %v688_v39, %s1841_s27  ;;  %s2881_s27 = smov 127  }
 0x10d   :  { %v805_v41 = vpop.permute.xlu0 %804  ;;  %813 = vst.msk [vmem:[#allocation2 + $0x32] sm:$0x1] %vm42_vm0, %v811_v40  ;;  %v424_v42 = vld [vmem:[#allocation2 + $0x10] sm:$0xff] }
 0x10e   :  { %807 = vst.msk [vmem:[#allocation2 + $0x31] sm:$0x1] %vm42_vm0, %v805_v41  ;;  %476 = vmatpush.msra.mxu0 %v424_v42  ;;  %v113_v45 = vpop.permute.xlu2 %112 }
 0x10f   :  { %115 = vst.msk [vmem:[#allocation2 + $0xc] sm:$0x1] %vm42_vm0, %v113_v45 }
 0x112   :  { %606 = vrot.lane.b32.xlu1 %v604_v43, %s1844_s14  ;;  %s2882_s14 = smov 125  }
 0x113   :  { %696 = vrot.lane.b32.xlu0 %v694_v44, %s1842_s29  ;;  %s2876_s29 = smov 116  }
 0x114   :  { %v829_v47 = vpop.permute.xlu1 %828  ;;  %612 = vrot.lane.b32.xlu2 %v610_v46, %s1843_s26 }
 0x115   :  { %v823_v48 = vpop.permute.xlu0 %822  ;;  %831 = vst.msk [vmem:[#allocation2 + $0x35] sm:$0x1] %vm42_vm0, %v829_v47 }
 0x116   :  { %825 = vst.msk [vmem:[#allocation2 + $0x34] sm:$0x1] %vm42_vm0, %v823_v48  ;;  %v131_v51 = vpop.permute.xlu2 %130 }
 0x117   :  { %133 = vst.msk [vmem:[#allocation2 + $0xf] sm:$0x1] %vm42_vm0, %v131_v51 }
 0x11a   :  { %624 = vrot.lane.b32.xlu1 %v622_v49, %s1847_s17 }
 0x11b   :  { %618 = vrot.lane.b32.xlu0 %v616_v50, %s1845_s23 }
 0x11c   :  { %v89_v54 = vpop.permute.xlu1 %88  ;;  %630 = vrot.lane.b32.xlu2 %v628_v52, %s1846_s19  ;;  %s2885_s19 = smov 122  }
 0x11d   :  { %v841_v53 = vpop.permute.xlu0 %840  ;;  %91 = vst.msk [vmem:[#allocation2 + $0x8] sm:$0x1] %vm42_vm0, %v89_v54  ;;  %v2539_v54 = vld [vmem:[%s2792_s1] sm:$0xff] }
 0x11e   :  { %843 = vst.msk [vmem:[#allocation2 + $0x37] sm:$0x1] %vm42_vm0, %v841_v53  ;;  %v763_v57 = vpop.permute.xlu2 %762 }
 0x11f   :  { %765 = vst.msk [vmem:[#allocation2 + $0x2a] sm:$0x1] %vm42_vm0, %v763_v57 }
 0x122   :  { %642 = vrot.lane.b32.xlu1 %v640_v55, %s1850_s13 }
 0x123   :  { %636 = vrot.lane.b32.xlu0 %v634_v56, %s1848_s11  ;;  %s2879_s11 = smov 113  }
 0x124   :  { %v107_v60 = vpop.permute.xlu1 %106  ;;  %648 = vrot.lane.b32.xlu2 %v646_v58, %s1849_s22  ;;  %s2875_s22 = smov 118  }
 0x125   :  { %v101_v59 = vpop.permute.xlu0 %100  ;;  %v898_v61 = vld [vmem:[#allocation2 + $0x30] sm:$0xff]  ;;  %109 = vst.msk [vmem:[#allocation2 + $0xb] sm:$0x1] %vm42_vm0, %v107_v60 }
 0x126   :  { %103 = vst.msk [vmem:[#allocation2 + $0xa] sm:$0x1] %vm42_vm0, %v101_v59  ;;  %909 = vmatpush.msra.mxu1 %v898_v61  ;;  %v781_v0 = vpop.permute.xlu2 %780  ;;  %v34_v59 = vld [vmem:[%s2792_s1 + $0x8] sm:$0xff] }
 0x127   :  { %783 = vst.msk [vmem:[#allocation2 + $0x2d] sm:$0x1] %vm42_vm0, %v781_v0 }
 0x12a   :  { %564 = vrot.lane.b32.xlu1 %v562_v62, %s2873_s28  ;;  %s2880_s28 = smov 114  }
 0x12b   :  { %558 = vrot.lane.b32.xlu0 %v556_v63, %s2874_s15  ;;  %v35_v63 = vld [vmem:[%s2792_s1 + $0x10] sm:$0xff] }
 0x12c   :  { %v125_v3 = vpop.permute.xlu1 %124  ;;  %570 = vrot.lane.b32.xlu2 %v568_v1, %s2875_s22 }
 0x12d   :  { %v119_v2 = vpop.permute.xlu0 %118  ;;  %127 = vst.msk [vmem:[#allocation2 + $0xe] sm:$0x1] %vm42_vm0, %v125_v3 }
 0x12e   :  { %121 = vst.msk [vmem:[#allocation2 + $0xd] sm:$0x1] %vm42_vm0, %v119_v2  ;;  %v47_v6 = vpop.permute.xlu2 %46 }
 0x12f   :  { %49 = vst.msk [vmem:[#allocation2 + $0x1] sm:$0x1] %vm42_vm0, %v47_v6 }
 0x132   :  { %582 = vrot.lane.b32.xlu1 %v580_v4, %s2876_s29  ;;  %s2883_s29 = smov 126   ;;  %v512_v4 = vld [vmem:[%s2791_s0 + $0x1] sm:$0x1] }
 0x133   :  { %576 = vrot.lane.b32.xlu0 %v574_v5, %s2877_s25  ;;  %v39_v5 = vld [vmem:[%s2793_s2 + $0x10] sm:$0xff] }
 0x134   :  { %v757_v9 = vpop.permute.xlu1 %756  ;;  %588 = vrot.lane.b32.xlu2 %v586_v7, %s2878_s20  ;;  %v1866_v7 = vmov 0  }
 0x135   :  { %v751_v8 = vpop.permute.xlu0 %750  ;;  %v423_v10 = vld [vmem:[#allocation2 + $0x8] sm:$0xff]  ;;  %759 = vst.msk [vmem:[#allocation2 + $0x29] sm:$0x1] %vm42_vm0, %v757_v9  ;;  %1711 = vset.pattern.permute.xlu1 %v1866_v7  ;;  %1710 = vset.pattern.permute.xlu0 %v1866_v7 }
 0x136   :  { %753 = vst.msk [vmem:[#allocation2 + $0x28] sm:$0x1] %vm42_vm0, %v751_v8  ;;  %477 = vmatpush.msra.mxu0 %v423_v10  ;;  %v65_v14 = vpop.permute.xlu2 %64  ;;  %1712 = vset.pattern.permute.xlu2 %v1866_v7 }
 0x137   :  { %67 = vst.msk [vmem:[#allocation2 + $0x4] sm:$0x1] %vm42_vm0, %v65_v14 }
 0x13a   :  { %600 = vrot.lane.b32.xlu1 %v598_v12, %s2879_s11  ;;  %v36_v12 = vld [vmem:[%s2792_s1 + $0x18] sm:$0xff] }
 0x13b   :  { %594 = vrot.lane.b32.xlu0 %v592_v13, %s2880_s28  ;;  %s2887_s28 = smov 121  }
 0x13c   :  { %v775_v17 = vpop.permute.xlu1 %774  ;;  %516 = vrot.lane.b32.xlu2 %v514_v15, %s2881_s27 }
 0x13d   :  { %v769_v16 = vpop.permute.xlu0 %768  ;;  %777 = vst.msk [vmem:[#allocation2 + $0x2c] sm:$0x1] %vm42_vm0, %v775_v17 }
 0x13e   :  { %771 = vst.msk [vmem:[#allocation2 + $0x2b] sm:$0x1] %vm42_vm0, %v769_v16  ;;  %v83_v20 = vpop.permute.xlu2 %82 }
 0x13f   :  { %85 = vst.msk [vmem:[#allocation2 + $0x7] sm:$0x1] %vm42_vm0, %v83_v20 }
 0x142   :  { %528 = vrot.lane.b32.xlu1 %v526_v18, %s2882_s14  ;;  %v40_v18 = vld [vmem:[%s2793_s2 + $0x18] sm:$0xff] }
 0x143   :  { %522 = vrot.lane.b32.xlu0 %v520_v19, %s2883_s29 }
 0x144   :  { %v793_v23 = vpop.permute.xlu1 %792  ;;  %534 = vrot.lane.b32.xlu2 %v532_v21, %s2884_s16  ;;  %v38_v21 = vld [vmem:[%s2793_s2 + $0x8] sm:$0xff] }
 0x145   :  { %v787_v22 = vpop.permute.xlu0 %786  ;;  %795 = vst.msk [vmem:[#allocation2 + $0x2f] sm:$0x1] %vm42_vm0, %v793_v23 }
 0x146   :  { %789 = vst.msk [vmem:[#allocation2 + $0x2e] sm:$0x1] %vm42_vm0, %v787_v22  ;;  %v715_v26 = vpop.permute.xlu2 %714 }
 0x147   :  { %717 = vst.msk [vmem:[#allocation2 + $0x22] sm:$0x1] %vm42_vm0, %v715_v26 }
 0x14a   :  { %546 = vrot.lane.b32.xlu1 %v544_v24, %s2885_s19 }
 0x14b   :  { %540 = vrot.lane.b32.xlu0 %v538_v25, %s2886_s12 }
 0x14c   :  { %v59_v28 = vpop.permute.xlu1 %58  ;;  %552 = vrot.lane.b32.xlu2 %v550_v27, %s2887_s28 }
 0x14d   :  { %v53_v29 = vpop.permute.xlu0 %52  ;;  %61 = vst.msk [vmem:[#allocation2 + $0x3] sm:$0x1] %vm42_vm0, %v59_v28  ;;  %v897_v30 = vld [vmem:[#allocation2 + $0x28] sm:$0xff] }
 0x14e   :  { %55 = vst.msk [vmem:[#allocation2 + $0x2] sm:$0x1] %vm42_vm0, %v53_v29  ;;  %910 = vmatpush.msra.mxu1 %v897_v30  ;;  %v733_v31 = vpop.permute.xlu2 %732 }
 0x14f   :  { %735 = vst.msk [vmem:[#allocation2 + $0x25] sm:$0x1] %vm42_vm0, %v733_v31 }
 0x152   :  { %442 = vperm.xlu1 %1711, %v39_v5  }
 0x153   :  { %447 = vperm.xlu0 %1710, %v40_v18  }
 0x154   :  { %v77_v32 = vpop.permute.xlu1 %76  ;;  %437 = vperm.xlu2 %1712, %v38_v21  }
 0x155   :  { %v71_v33 = vpop.permute.xlu0 %70  ;;  %79 = vst.msk [vmem:[#allocation2 + $0x6] sm:$0x1] %vm42_vm0, %v77_v32 }
 0x156   :  { %73 = vst.msk [vmem:[#allocation2 + $0x5] sm:$0x1] %vm42_vm0, %v71_v33  ;;  %v655_v34 = vpop.permute.xlu2 %654 }
 0x157   :  { %657 = vst.msk [vmem:[#allocation2 + $0x18] sm:$0x1] %vm42_vm0, %v655_v34 }
 0x15a   :  { %432 = vperm.xlu1 %1711, %v37_v11  }
 0x15c   :  { %v709_v35 = vpop.permute.xlu1 %708 }
 0x15d   :  { %v703_v36 = vpop.permute.xlu0 %702  ;;  %711 = vst.msk [vmem:[#allocation2 + $0x21] sm:$0x1] %vm42_vm0, %v709_v35  ;;  %v422_v37 = vld [vmem:[#allocation2] sm:$0xff] }
 0x15e   :  { %705 = vst.msk [vmem:[#allocation2 + $0x20] sm:$0x1] %vm42_vm0, %v703_v36  ;;  %478 = vmatpush.msra.mxu0 %v422_v37  ;;  %v673_v38 = vpop.permute.xlu2 %672 }
 0x15f   :  { %675 = vst.msk [vmem:[#allocation2 + $0x1b] sm:$0x1] %vm42_vm0, %v673_v38  ;;  %1622 = vmatmul.msk.f32.vlgmr.msra.gmra.mxu0 %vm450_vm1, %v2539_v54 }
 0x160   :  { %513 = vst.msk [vmem:[#allocation2] sm:$0x1] %vm42_vm0, %v512_v4 }
 0x164   :  { %v727_v39 = vpop.permute.xlu1 %726 }
 0x165   :  { %v721_v40 = vpop.permute.xlu0 %720  ;;  %729 = vst.msk [vmem:[#allocation2 + $0x24] sm:$0x1] %vm42_vm0, %v727_v39 }
 0x166   :  { %723 = vst.msk [vmem:[#allocation2 + $0x23] sm:$0x1] %vm42_vm0, %v721_v40  ;;  %v691_v41 = vpop.permute.xlu2 %690 }
 0x167   :  { %693 = vst.msk [vmem:[#allocation2 + $0x1e] sm:$0x1] %vm42_vm0, %v691_v41  ;;  %1623 = vmatmul.msk.f32.gmra.mxu0 %vm450_vm1, %v34_v59 }
 0x16c   :  { %v745_v42 = vpop.permute.xlu1 %744 }
 0x16d   :  { %v739_v43 = vpop.permute.xlu0 %738  ;;  %747 = vst.msk [vmem:[#allocation2 + $0x27] sm:$0x1] %vm42_vm0, %v745_v42 }
 0x16e   :  { %741 = vst.msk [vmem:[#allocation2 + $0x26] sm:$0x1] %vm42_vm0, %v739_v43  ;;  %v613_v44 = vpop.permute.xlu2 %612 }
 0x16f   :  { %615 = vst.msk [vmem:[#allocation2 + $0x11] sm:$0x1] %vm42_vm0, %v613_v44  ;;  %1624 = vmatmul.msk.f32.gmra.mxu0 %vm450_vm1, %v35_v63 }
 0x174   :  { %v667_v45 = vpop.permute.xlu1 %666 }
 0x175   :  { %v661_v46 = vpop.permute.xlu0 %660  ;;  %669 = vst.msk [vmem:[#allocation2 + $0x1a] sm:$0x1] %vm42_vm0, %v667_v45  ;;  %v896_v47 = vld [vmem:[#allocation2 + $0x20] sm:$0xff] }
 0x176   :  { %663 = vst.msk [vmem:[#allocation2 + $0x19] sm:$0x1] %vm42_vm0, %v661_v46  ;;  %911 = vmatpush.msra.mxu1 %v896_v47  ;;  %v631_v48 = vpop.permute.xlu2 %630 }
 0x177   :  { %633 = vst.msk [vmem:[#allocation2 + $0x14] sm:$0x1] %vm42_vm0, %v631_v48  ;;  %1625 = vmatmul.msk.f32.gmra.mxu0 %vm450_vm1, %v36_v12 }
 0x17c   :  { %v685_v49 = vpop.permute.xlu1 %684 }
 0x17d   :  { %v679_v50 = vpop.permute.xlu0 %678  ;;  %687 = vst.msk [vmem:[#allocation2 + $0x1d] sm:$0x1] %vm42_vm0, %v685_v49 }
 0x17e   :  { %681 = vst.msk [vmem:[#allocation2 + $0x1c] sm:$0x1] %vm42_vm0, %v679_v50  ;;  %v649_v51 = vpop.permute.xlu2 %648 }
 0x17f   :  { %651 = vst.msk [vmem:[#allocation2 + $0x17] sm:$0x1] %vm42_vm0, %v649_v51  ;;  %v1867_v51 = vmov 128.0  }
 0x180   :  { %1715 = vrcp.f32 %v1867_v51 }
 0x184   :  { %v607_v52 = vpop.permute.xlu1 %606 }
 0x185   :  { %v697_v53 = vpop.permute.xlu0 %696  ;;  %609 = vst.msk [vmem:[#allocation2 + $0x10] sm:$0x1] %vm42_vm0, %v607_v52 }
 0x186   :  { %699 = vst.msk [vmem:[#allocation2 + $0x1f] sm:$0x1] %vm42_vm0, %v697_v53  ;;  %v571_v55 = vpop.permute.xlu2 %570  ;;  %v1716_v52 = vpop.eup %1715 }
 0x187   :  { %573 = vst.msk [vmem:[#allocation2 + $0xa] sm:$0x1] %vm42_vm0, %v571_v55  ;;  %v951_v53 = vmul.f32 128.0, %v1716_v52  ;;  %vm955_vm2 = vweird.f32 %v1716_v52 }
 0x18c   :  { %v625_v56 = vpop.permute.xlu1 %624 }
 0x18d   :  { %v619_v57 = vpop.permute.xlu0 %618  ;;  %627 = vst.msk [vmem:[#allocation2 + $0x13] sm:$0x1] %vm42_vm0, %v625_v56  ;;  %v895_v58 = vld [vmem:[#allocation2 + $0x18] sm:$0xff] }
 0x18e   :  { %621 = vst.msk [vmem:[#allocation2 + $0x12] sm:$0x1] %vm42_vm0, %v619_v57  ;;  %912 = vmatpush.msra.mxu1 %v895_v58  ;;  %v589_v60 = vpop.permute.xlu2 %588 }
 0x18f   :  { %591 = vst.msk [vmem:[#allocation2 + $0xd] sm:$0x1] %vm42_vm0, %v589_v60 }
 0x194   :  { %v643_v61 = vpop.permute.xlu1 %642 }
 0x195   :  { %v637_v62 = vpop.permute.xlu0 %636  ;;  %645 = vst.msk [vmem:[#allocation2 + $0x16] sm:$0x1] %vm42_vm0, %v643_v61 }
 0x196   :  { %639 = vst.msk [vmem:[#allocation2 + $0x15] sm:$0x1] %vm42_vm0, %v637_v62  ;;  %v517_v0 = vpop.permute.xlu2 %516 }
 0x197   :  { %519 = vst.msk [vmem:[#allocation2 + $0x1] sm:$0x1] %vm42_vm0, %v517_v0 }
 0x19c   :  { %v565_v1 = vpop.permute.xlu1 %564 }
 0x19d   :  { %v559_v2 = vpop.permute.xlu0 %558  ;;  %567 = vst.msk [vmem:[#allocation2 + $0x9] sm:$0x1] %vm42_vm0, %v565_v1  ;;  %v894_v3 = vld [vmem:[#allocation2 + $0x10] sm:$0xff] }
 0x19e   :  { %561 = vst.msk [vmem:[#allocation2 + $0x8] sm:$0x1] %vm42_vm0, %v559_v2  ;;  %913 = vmatpush.msra.mxu1 %v894_v3  ;;  %v535_v6 = vpop.permute.xlu2 %534 }
 0x19f   :  { %537 = vst.msk [vmem:[#allocation2 + $0x4] sm:$0x1] %vm42_vm0, %v535_v6 }
 0x1a4   :  { %v583_v8 = vpop.permute.xlu1 %582 }
 0x1a5   :  { %v577_v9 = vpop.permute.xlu0 %576  ;;  %585 = vst.msk [vmem:[#allocation2 + $0xc] sm:$0x1] %vm42_vm0, %v583_v8 }
 0x1a6   :  { %579 = vst.msk [vmem:[#allocation2 + $0xb] sm:$0x1] %vm42_vm0, %v577_v9  ;;  %v553_v10 = vpop.permute.xlu2 %552 }
 0x1a7   :  { %555 = vst.msk [vmem:[#allocation2 + $0x7] sm:$0x1] %vm42_vm0, %v553_v10 }
 0x1ac   :  { %v601_v13 = vpop.permute.xlu1 %600 }
 0x1ad   :  { %v595_v14 = vpop.permute.xlu0 %594  ;;  %603 = vst.msk [vmem:[#allocation2 + $0xf] sm:$0x1] %vm42_vm0, %v601_v13 }
 0x1ae   :  { %597 = vst.msk [vmem:[#allocation2 + $0xe] sm:$0x1] %vm42_vm0, %v595_v14  ;;  %v438_v30 = vpop.permute.xlu2 %437 }
 0x1b4   :  { %v529_v15 = vpop.permute.xlu1 %528 }
 0x1b5   :  { %v523_v16 = vpop.permute.xlu0 %522  ;;  %531 = vst.msk [vmem:[#allocation2 + $0x3] sm:$0x1] %vm42_vm0, %v529_v15  ;;  %v893_v17 = vld [vmem:[#allocation2 + $0x8] sm:$0xff] }
 0x1b6   :  { %525 = vst.msk [vmem:[#allocation2 + $0x2] sm:$0x1] %vm42_vm0, %v523_v16  ;;  %914 = vmatpush.msra.mxu1 %v893_v17 }
 0x1bc   :  { %v547_v19 = vpop.permute.xlu1 %546 }
 0x1bd   :  { %v541_v20 = vpop.permute.xlu0 %540  ;;  %549 = vst.msk [vmem:[#allocation2 + $0x6] sm:$0x1] %vm42_vm0, %v547_v19 }
 0x1be   :  { %543 = vst.msk [vmem:[#allocation2 + $0x5] sm:$0x1] %vm42_vm0, %v541_v20 }
 0x1c4   :  { %v443_v25 = vpop.permute.xlu1 %442 }
 0x1c5   :  { %v892_v22 = vld [vmem:[#allocation2] sm:$0xff]  ;;  %v448_v35 = vpop.permute.xlu0 %447 }
 0x1c6   :  { %915 = vmatpush.msra.mxu1 %v892_v22 }
 0x1c7   :  { %1626 = vmatmul.msk.f32.vlgmr.msra.gmra.mxu1 %vm450_vm1, %v2539_v54  ;;  %v952_v54 = vsub.f32 1.0, %v951_v53 }
 0x1c9   :  { %v953_v56 = vmul.f32 %v1716_v52, %v952_v54 }
 0x1cb   :  { %v954_v57 = vadd.f32 %v1716_v52, %v953_v56 }
 0x1cc   :  { %v433_v29 = vpop.permute.xlu1 %432 }
 0x1cf   :  { %1627 = vmatmul.msk.f32.gmra.mxu1 %vm450_vm1, %v34_v59  ;;  %v2611_v59 = vsel %vm955_vm2, %v1716_v52, %v954_v57 }
 0x1d7   :  { %1628 = vmatmul.msk.f32.gmra.mxu1 %vm450_vm1, %v35_v63 }
 0x1dc   :  { %v480_v23 = vpop.f32.mrf.mxu0 }
 0x1dd   :  { %v481_v31 = vadd.f32 %v480_v23, %v433_v29 }
 0x1df   :  { %1629 = vmatmul.msk.f32.gmra.mxu1 %vm450_vm1, %v36_v12  ;;  %492 = vst.msk [vmem:[#allocation3] sm:$0xff] %vm450_vm1, %v481_v31  ;;  %v496_v33 = vsel %vm450_vm1, %v481_v31, 0.0 }
 0x1e4   :  { %v483_v24 = vpop.f32.mrf.mxu0 }
 0x1e5   :  { %v484_v32 = vadd.f32 %v483_v24, %v438_v30 }
 0x1e7   :  { %493 = vst.msk [vmem:[#allocation3 + $0x8] sm:$0xff] %vm450_vm1, %v484_v32  ;;  %v499_v48 = vsel %vm450_vm1, %v484_v32, 0.0 }
 0x1ec   :  { %v486_v26 = vpop.f32.mrf.mxu0 }
 0x1ed   :  { %v487_v27 = vadd.f32 %v486_v26, %v443_v25  ;;  %v961_v26 = vld [vmem:[#allocation3] sm:$0xff] }
 0x1ef   :  { %494 = vst.msk [vmem:[#allocation3 + $0x10] sm:$0xff] %vm450_vm1, %v487_v27  ;;  %v502_v28 = vsel %vm450_vm1, %v487_v27, 0.0 }
 0x1f0   :  { %503 = vadd.xlane.f32.xlu1 %v502_v28 }
 0x1f4   :  { %v489_v34 = vpop.f32.mrf.mxu0 }
 0x1f5   :  { %v490_v36 = vadd.f32 %v489_v34, %v448_v35 }
 0x1f6   :  { %v963_v0 = vld [vmem:[#allocation3 + $0x10] sm:$0xff] }
 0x1f7   :  { %495 = vst.msk [vmem:[#allocation3 + $0x18] sm:$0xff] %vm450_vm1, %v490_v36  ;;  %v505_v37 = vsel %vm450_vm1, %v490_v36, 0.0 }
 0x1f8   :  { %497 = vadd.xlane.f32.xlu1 %v496_v33  ;;  %506 = vadd.xlane.f32.xlu2 %v505_v37 }
 0x1fe   :  { %v964_v11 = vld [vmem:[#allocation3 + $0x18] sm:$0xff] }
 0x244   :  { %v917_v38 = vpop.f32.mrf.mxu1 }
 0x245   :  { %v918_v39 = vadd.f32 %v917_v38, %v433_v29 }
 0x247   :  { %930 = vst.msk [vmem:[#allocation3 + $0x20] sm:$0xff] %vm450_vm1, %v918_v39  ;;  %v934_v50 = vsel %vm450_vm1, %v918_v39, 0.0 }
 0x24c   :  { %v920_v40 = vpop.f32.mrf.mxu1 }
 0x24d   :  { %v921_v41 = vadd.f32 %v920_v40, %v438_v30 }
 0x24e   :  { %v993_v30 = vld [vmem:[#allocation3 + $0x20] sm:$0xff] }
 0x24f   :  { %931 = vst.msk [vmem:[#allocation3 + $0x28] sm:$0xff] %vm450_vm1, %v921_v41  ;;  %v937_v49 = vsel %vm450_vm1, %v921_v41, 0.0 }
 0x254   :  { %v923_v42 = vpop.f32.mrf.mxu1 }
 0x255   :  { %v924_v43 = vadd.f32 %v923_v42, %v443_v25  ;;  %v962_v25 = vld [vmem:[#allocation3 + $0x8] sm:$0xff]  ;;  %v1083_v42 = vld [vmem:[%s2795_s4 + $0x10] sm:$0xff] }
 0x256   :  { %v994_v24 = vld [vmem:[#allocation3 + $0x28] sm:$0xff] }
 0x257   :  { %932 = vst.msk [vmem:[#allocation3 + $0x30] sm:$0xff] %vm450_vm1, %v924_v43  ;;  %v940_v44 = vsel %vm450_vm1, %v924_v43, 0.0  ;;  %v1084_v43 = vld [vmem:[%s2795_s4 + $0x18] sm:$0xff] }
 0x258   :  { %941 = vadd.xlane.f32.xlu2 %v940_v44 }
 0x25c   :  { %v926_v45 = vpop.f32.mrf.mxu1 }
 0x25d   :  { %v927_v46 = vadd.f32 %v926_v45, %v448_v35 }
 0x25e   :  { %v995_v63 = vld [vmem:[#allocation3 + $0x30] sm:$0xff] }
 0x25f   :  { %933 = vst.msk [vmem:[#allocation3 + $0x38] sm:$0xff] %vm450_vm1, %v927_v46  ;;  %v943_v47 = vsel %vm450_vm1, %v927_v46, 0.0 }
 0x260   :  { %944 = vadd.xlane.f32.xlu0 %v943_v47  ;;  %500 = vadd.xlane.f32.xlu2 %v499_v48 }
 0x263   :  { %v504_v58 = vpop.xlane.xlu1 %503 }
 0x266   :  { %v996_v12 = vld [vmem:[#allocation3 + $0x38] sm:$0xff] }
 0x268   :  { %938 = vadd.xlane.f32.xlu0 %v937_v49  ;;  %935 = vadd.xlane.f32.xlu2 %v934_v50 }
 0x26b   :  { %v507_v55 = vpop.xlane.xlu2 %506  ;;  %v498_v15 = vpop.xlane.xlu1 %497 }
 0x2cb   :  { %v942_v60 = vpop.xlane.xlu2 %941 }
 0x2cc   :  { %v948_v61 = vadd.f32 %v942_v60, %v504_v58 }
 0x2ce   :  { %v959_v62 = vmul.f32 %v2611_v59, %v948_v61 }
 0x2d0   :  { %v999_v1 = vsub.f32 %v995_v63, %v959_v62  ;;  %v967_v2 = vsub.f32 %v963_v0, %v959_v62 }
 0x2d2   :  { %v1007_v3 = vmul.f32 %v999_v1, %v999_v1  ;;  %1003 = vst.msk [vmem:[#allocation3 + $0x30] sm:$0xff] %vm450_vm1, %v999_v1  ;;  %v975_v4 = vmul.f32 %v967_v2, %v967_v2 }
 0x2d3   :  { %v945_v5 = vpop.xlane.xlu0 %944  ;;  %v501_v6 = vpop.xlane.xlu2 %500  ;;  %971 = vst.msk [vmem:[#allocation3 + $0x10] sm:$0xff] %vm450_vm1, %v967_v2 }
 0x2d4   :  { %v949_v7 = vadd.f32 %v945_v5, %v507_v55  ;;  %v1015_v8 = vsel %vm450_vm1, %v1007_v3, 0.0  ;;  %v983_v9 = vsel %vm450_vm1, %v975_v4, 0.0 }
 0x2d5   :  { %1016 = vadd.xlane.f32.xlu0 %v1015_v8  ;;  %984 = vadd.xlane.f32.xlu2 %v983_v9 }
 0x2d6   :  { %v960_v10 = vmul.f32 %v2611_v59, %v949_v7 }
 0x2d8   :  { %v968_v13 = vsub.f32 %v964_v11, %v960_v10  ;;  %v1000_v14 = vsub.f32 %v996_v12, %v960_v10 }
 0x2da   :  { %972 = vst.msk [vmem:[#allocation3 + $0x18] sm:$0xff] %vm450_vm1, %v968_v13  ;;  %v976_v16 = vmul.f32 %v968_v13, %v968_v13  ;;  %v1008_v38 = vmul.f32 %v1000_v14, %v1000_v14  ;;  %v1030_v13 = vld [vmem:[%s2794_s3 + $0x8] sm:$0xff] }
 0x2db   :  { %v939_v17 = vpop.xlane.xlu0 %938  ;;  %v936_v18 = vpop.xlane.xlu2 %935  ;;  %1004 = vst.msk [vmem:[#allocation3 + $0x38] sm:$0xff] %vm450_vm1, %v1000_v14 }
 0x2dc   :  { %v947_v19 = vadd.f32 %v939_v17, %v501_v6  ;;  %v946_v20 = vadd.f32 %v936_v18, %v498_v15  ;;  %v986_v21 = vsel %vm450_vm1, %v976_v16, 0.0  ;;  %v1018_v39 = vsel %vm450_vm1, %v1008_v38, 0.0  ;;  %v2664_v38 = vld [vmem:[%s2797_s6] sm:$0xff] }
 0x2dd   :  { %987 = vadd.xlane.f32.xlu0 %v986_v21 }
 0x2de   :  { %v958_v22 = vmul.f32 %v2611_v59, %v947_v19  ;;  %v957_v23 = vmul.f32 %v2611_v59, %v946_v20 }
 0x2e0   :  { %v998_v27 = vsub.f32 %v994_v24, %v958_v22  ;;  %v966_v28 = vsub.f32 %v962_v25, %v958_v22  ;;  %v965_v29 = vsub.f32 %v961_v26, %v957_v23  ;;  %v997_v31 = vsub.f32 %v993_v30, %v957_v23  ;;  %v1032_v23 = vld [vmem:[%s2794_s3 + $0x18] sm:$0xff]  ;;  %v1031_v24 = vld [vmem:[%s2794_s3 + $0x10] sm:$0xff] }
 0x2e2   :  { %v1006_v32 = vmul.f32 %v998_v27, %v998_v27  ;;  %1002 = vst.msk [vmem:[#allocation3 + $0x28] sm:$0xff] %vm450_vm1, %v998_v27  ;;  %v974_v33 = vmul.f32 %v966_v28, %v966_v28  ;;  %v973_v34 = vmul.f32 %v965_v29, %v965_v29  ;;  %v1005_v40 = vmul.f32 %v997_v31, %v997_v31 }
 0x2e3   :  { %970 = vst.msk [vmem:[#allocation3 + $0x8] sm:$0xff] %vm450_vm1, %v966_v28 }
 0x2e4   :  { %v1012_v35 = vsel %vm450_vm1, %v1006_v32, 0.0  ;;  %v980_v36 = vsel %vm450_vm1, %v974_v33, 0.0  ;;  %v977_v37 = vsel %vm450_vm1, %v973_v34, 0.0  ;;  %969 = vst.msk [vmem:[#allocation3] sm:$0xff] %vm450_vm1, %v965_v29  ;;  %v1009_v41 = vsel %vm450_vm1, %v1005_v40, 0.0  ;;  %v1029_v33 = vld [vmem:[%s2794_s3] sm:$0xff] }
 0x2e5   :  { %1013 = vadd.xlane.f32.xlu2 %v1012_v35  ;;  %981 = vadd.xlane.f32.xlu1 %v980_v36  ;;  %1001 = vst.msk [vmem:[#allocation3 + $0x20] sm:$0xff] %vm450_vm1, %v997_v31  ;;  %v1081_v34 = vld [vmem:[%s2795_s4] sm:$0xff]  ;;  %v1082_v35 = vld [vmem:[%s2795_s4 + $0x8] sm:$0xff] }
 0x2e6   :  { %978 = vadd.xlane.f32.xlu0 %v977_v37 }
 0x2ed   :  { %1019 = vadd.xlane.f32.xlu1 %v1018_v39  ;;  %v1094_v39 = vld [vmem:[%s2798_s7] sm:$0xff] }
 0x2f5   :  { %1010 = vadd.xlane.f32.xlu1 %v1009_v41  ;;  %v1098_v41 = vld [vmem:[#allocation3 + $0x18] sm:$0xff] }
 0x2fd   :  { %1135 = vperm.xlu2 %1712, %v1083_v42  }
 0x30e   :  { %1140 = vperm.xlu1 %1711, %v1084_v43  }
 0x348   :  { %v1017_v44 = vpop.xlane.xlu0 %1016  ;;  %v985_v45 = vpop.xlane.xlu2 %984 }
 0x349   :  { %v1023_v46 = vadd.f32 %v1017_v44, %v985_v45 }
 0x34b   :  { %v1027_v47 = vmul.f32 %v1023_v46, %v2611_v59 }
 0x34d   :  { %v1035_v48 = vadd.f32 1e-05, %v1027_v47 }
 0x34f   :  { %1717 = vrsqrt.f32 %v1035_v48  ;;  %vm1063_vm7 = vweird.f32 %v1035_v48 }
 0x350   :  { %v988_v54 = vpop.xlane.xlu0 %987 }
 0x355   :  { %v1718_v55 = vpop.eup %1717 }
 0x356   :  { %v1058_v58 = vmul.f32 %v1718_v55, %v1035_v48  ;;  %vm1064_vm6 = vweird.f32 %v1718_v55 }
 0x357   :  { %vm1065_vm9 = vmor %vm1063_vm7, %vm1064_vm6 }
 0x358   :  { %v1014_v49 = vpop.xlane.xlu2 %1013  ;;  %v982_v50 = vpop.xlane.xlu1 %981  ;;  %v1059_v63 = vmul.f32 %v1718_v55, %v1058_v58 }
 0x359   :  { %v1022_v51 = vadd.f32 %v1014_v49, %v982_v50  ;;  %v979_v2 = vpop.xlane.xlu0 %978 }
 0x35a   :  { %v1060_v5 = vmul.f32 0.5, %v1059_v63 }
 0x35b   :  { %v1026_v52 = vmul.f32 %v1022_v51, %v2611_v59 }
 0x35c   :  { %v1061_v11 = vsub.f32 1.5, %v1060_v5 }
 0x35d   :  { %v1034_v53 = vadd.f32 1e-05, %v1026_v52  ;;  %v1226_v52 = vld [vmem:[#allocation3 + $0x38] sm:$0xff] }
 0x35e   :  { %v1062_v18 = vmul.f32 %v1718_v55, %v1061_v11 }
 0x35f   :  { %1719 = vrsqrt.f32 %v1034_v53  ;;  %vm1053_vm4 = vweird.f32 %v1034_v53 }
 0x360   :  { %v1020_v56 = vpop.xlane.xlu1 %1019  ;;  %v1066_v25 = vsel %vm1065_vm9, %v1718_v55, %v1062_v18  ;;  %v1136_v40 = vpop.permute.xlu2 %1135  ;;  %v1225_v55 = vld [vmem:[#allocation3 + $0x30] sm:$0xff]  ;;  %vm1308_vm9 = vcmask 15360  }
 0x361   :  { %v1024_v57 = vadd.f32 %v1020_v56, %v988_v54  ;;  %v1079_v29 = vmul.f32 %v1066_v25, %v1031_v24  ;;  %v1097_v54 = vld [vmem:[#allocation3 + $0x10] sm:$0xff] }
 0x363   :  { %v1028_v60 = vmul.f32 %v1024_v57, %v2611_v59 }
 0x365   :  { %v1720_v61 = vpop.eup %1719  ;;  %v1036_v62 = vadd.f32 1e-05, %v1028_v60 }
 0x366   :  { %v1048_v0 = vmul.f32 %v1720_v61, %v1034_v53  ;;  %vm1054_vm3 = vweird.f32 %v1720_v61 }
 0x367   :  { %1721 = vrsqrt.f32 %v1036_v62  ;;  %vm1055_vm5 = vmor %vm1053_vm4, %vm1054_vm3  ;;  %vm1073_vm10 = vweird.f32 %v1036_v62  ;;  %vm1171_vm4 = vcmask 261120  }
 0x368   :  { %v1049_v1 = vmul.f32 %v1720_v61, %v1048_v0  ;;  %v1011_v3 = vpop.xlane.xlu1 %1010  ;;  %v2677_v0 = vld [vmem:[%s2799_s8 + $0x38] sm:$0xff] }
 0x369   :  { %v1021_v4 = vadd.f32 %v1011_v3, %v979_v2  ;;  %v1096_v2 = vld [vmem:[#allocation3 + $0x8] sm:$0xff]  ;;  %1211 = vmatpush.msra.mxu3 %v2677_v0 }
 0x36a   :  { %v1050_v6 = vmul.f32 0.5, %v1049_v1  ;;  %v2682_v1 = vld [vmem:[%s2799_s8 + $0x30] sm:$0xff]  ;;  %v1224_v3 = vld [vmem:[#allocation3 + $0x28] sm:$0xff] }
 0x36b   :  { %v1025_v7 = vmul.f32 %v1021_v4, %v2611_v59  ;;  %1212 = vmatpush.msra.mxu3 %v2682_v1 }
 0x36c   :  { %v1051_v8 = vsub.f32 1.5, %v1050_v6 }
 0x36d   :  { %v1722_v9 = vpop.eup %1721  ;;  %v1033_v10 = vadd.f32 1e-05, %v1025_v7  ;;  %v2688_v7 = vld [vmem:[%s2799_s8 + $0x28] sm:$0xff] }
 0x36e   :  { %v1068_v12 = vmul.f32 %v1722_v9, %v1036_v62  ;;  %v1052_v14 = vmul.f32 %v1720_v61, %v1051_v8  ;;  %vm1074_vm8 = vweird.f32 %v1722_v9  ;;  %1213 = vmatpush.msra.mxu3 %v2688_v7 }
 0x36f   :  { %1723 = vrsqrt.f32 %v1033_v10  ;;  %vm1075_vm11 = vmor %vm1073_vm10, %vm1074_vm8  ;;  %vm1043_vm13 = vweird.f32 %v1033_v10  ;;  %vm1579_vm10 = vcmask 15366  }
 0x370   :  { %v1069_v15 = vmul.f32 %v1722_v9, %v1068_v12  ;;  %v1056_v16 = vsel %vm1055_vm5, %v1720_v61, %v1052_v14  ;;  %v1095_v12 = vld [vmem:[#allocation3] sm:$0xff] }
 0x371   :  { %v1078_v17 = vmul.f32 %v1056_v16, %v1030_v13  ;;  %v2698_v16 = vld [vmem:[%s2799_s8 + $0x20] sm:$0xff] }
 0x372   :  { %v1070_v59 = vmul.f32 0.5, %v1069_v15  ;;  %1214 = vmatpush.msra.mxu3 %v2698_v16 }
 0x373   :  { %1106 = vperm.xlu0 %1710, %v1078_v17  }
 0x374   :  { %v1071_v19 = vsub.f32 1.5, %v1070_v59 }
 0x375   :  { %v1724_v20 = vpop.eup %1723 }
 0x376   :  { %v1072_v21 = vmul.f32 %v1722_v9, %v1071_v19  ;;  %v1038_v22 = vmul.f32 %v1724_v20, %v1033_v10  ;;  %vm1044_vm12 = vweird.f32 %v1724_v20  ;;  %v1223_v10 = vld [vmem:[#allocation3 + $0x20] sm:$0xff] }
 0x377   :  { %vm1045_vm14 = vmor %vm1043_vm13, %vm1044_vm12 }
 0x378   :  { %v1039_v26 = vmul.f32 %v1724_v20, %v1038_v22  ;;  %v1076_v27 = vsel %vm1075_vm11, %v1722_v9, %v1072_v21  ;;  %vm1593_vm11 = vcmask 9216  }
 0x379   :  { %v1080_v28 = vmul.f32 %v1076_v27, %v1032_v23  ;;  %v1088_v27 = vld [vmem:[%s2799_s8 + $0x10] sm:$0xff] }
 0x37a   :  { %v1040_v30 = vmul.f32 0.5, %v1039_v26 }
 0x37b   :  { %1116 = vperm.xlu2 %1712, %v1080_v28   ;;  %1111 = vperm.xlu0 %1710, %v1079_v29  }
 0x37c   :  { %v1041_v31 = vsub.f32 1.5, %v1040_v30 }
 0x37e   :  { %v1042_v32 = vmul.f32 %v1724_v20, %v1041_v31  ;;  %v1087_v31 = vld [vmem:[%s2799_s8 + $0x8] sm:$0xff] }
 0x380   :  { %v1046_v36 = vsel %vm1045_vm14, %v1724_v20, %v1042_v32  ;;  %v1141_v44 = vpop.permute.xlu1 %1140  ;;  %v2704_v20 = vld [vmem:[%s2799_s8 + $0x18] sm:$0xff] }
 0x381   :  { %v1077_v37 = vmul.f32 %v1046_v36, %v1029_v33  ;;  %1215 = vmatpush.msra.mxu3 %v2704_v20 }
 0x383   :  { %1125 = vperm.xlu2 %1712, %v1081_v34   ;;  %1130 = vperm.xlu0 %1710, %v1082_v35  }
 0x384   :  { %1101 = vperm.xlu1 %1711, %v1077_v37   ;;  %1216 = vmatpush.msra.mxu3 %v1088_v27 }
 0x386   :  { %1217 = vmatpush.msra.mxu3 %v1087_v31 }
 0x38b   :  { %1374 = vperm.xlu2 %1712, %v2664_v38  }
 0x38c   :  { %1197 = vperm.xlu1 %1711, %v1094_v39  }
 0x3d5   :  { %v1117_v42 = vpop.permute.xlu2 %1116 }
 0x3d6   :  { %v1122_v43 = vmul.f32 %v1117_v42, %v1098_v41  ;;  %v1230_v53 = vmul.f32 %v1226_v52, %v1117_v42 }
 0x3d8   :  { %v1146_v45 = vadd.f32 %v1141_v44, %v1122_v43  ;;  %v2670_v61 = vadd.f32 %v1230_v53, %v1141_v44 }
 0x3da   :  { %v1154_v46 = vmin.f32 %v1146_v45, 0.0  ;;  %vm1150_vm15 = vcmp.gt.f32.partialorder %v1146_v45, 0.0  ;;  %v1242_v9 = vmin.f32 %v2670_v61, 0.0  ;;  %vm1238_vm5 = vcmp.gt.f32.partialorder %v2670_v61, 0.0 }
 0x3dc   :  { %v1161_v47 = vmul.f32 1.442695, %v1154_v46  ;;  %v1249_v24 = vmul.f32 1.442695, %v1242_v9 }
 0x3dd   :  { %v1126_v59 = vpop.permute.xlu2 %1125 }
 0x3de   :  { %1725 = vpow2.f32 %v1161_v47  ;;  %v1085_v47 = vld [vmem:[%s2796_s5] sm:$0xff] }
 0x3e4   :  { %v1726_v48 = vpop.eup %1725 }
 0x3e5   :  { %v1107_v49 = vpop.permute.xlu0 %1106  ;;  %v1633_v50 = vadd.f32 -1.0, %v1726_v48 }
 0x3e6   :  { %v1120_v4 = vmul.f32 %v1107_v49, %v1096_v2  ;;  %v1228_v5 = vmul.f32 %v1224_v3, %v1107_v49 }
 0x3e7   :  { %v1170_v51 = vsel %vm1150_vm15, %v1146_v45, %v1633_v50 }
 0x3e8   :  { %1187 = vmatpush.msra.mxu2 %v1170_v51 }
 0x3ed   :  { %v1112_v56 = vpop.permute.xlu0 %1111 }
 0x3ee   :  { %v1121_v57 = vmul.f32 %v1112_v56, %v1097_v54  ;;  %v1229_v58 = vmul.f32 %v1225_v55, %v1112_v56 }
 0x3f0   :  { %v1145_v60 = vadd.f32 %v1136_v40, %v1121_v57  ;;  %v2672_v62 = vadd.f32 %v1229_v58, %v1136_v40  ;;  %v1086_v57 = vld [vmem:[%s2799_s8] sm:$0xff]  ;;  %s1869_s8 = smov 1  }
 0x3f1   :  { %1218 = vmatpush.msra.mxu3 %v1086_v57 }
 0x3f2   :  { %v1153_v63 = vmin.f32 %v1145_v60, 0.0  ;;  %v1241_v15 = vmin.f32 %v2672_v62, 0.0  ;;  %vm1149_vm0 = vcmp.gt.f32.partialorder %v1145_v60, 0.0  ;;  %vm1237_vm6 = vcmp.gt.f32.partialorder %v2672_v62, 0.0 }
 0x3f4   :  { %v1159_v6 = vmul.f32 1.442695, %v1153_v63  ;;  %v1247_v26 = vmul.f32 1.442695, %v1241_v15 }
 0x3f5   :  { %v1131_v8 = vpop.permute.xlu0 %1130 }
 0x3f6   :  { %v1102_v11 = vpop.permute.xlu1 %1101  ;;  %v1144_v13 = vadd.f32 %v1131_v8, %v1120_v4  ;;  %v2692_v14 = vadd.f32 %v1228_v5, %v1131_v8  ;;  %1727 = vpow2.f32 %v1159_v6 }
 0x3f7   :  { %v1119_v17 = vmul.f32 %v1102_v11, %v1095_v12  ;;  %v1227_v18 = vmul.f32 %v1223_v10, %v1102_v11 }
 0x3f8   :  { %v1152_v19 = vmin.f32 %v1144_v13, 0.0  ;;  %v1240_v23 = vmin.f32 %v2692_v14, 0.0  ;;  %vm1148_vm2 = vcmp.gt.f32.partialorder %v1144_v13, 0.0  ;;  %vm1236_vm7 = vcmp.gt.f32.partialorder %v2692_v14, 0.0 }
 0x3f9   :  { %v1143_v21 = vadd.f32 %v1126_v59, %v1119_v17  ;;  %v1231_v22 = vadd.f32 %v1227_v18, %v1126_v59 }
 0x3fa   :  { %v1157_v25 = vmul.f32 1.442695, %v1152_v19  ;;  %v1245_v32 = vmul.f32 1.442695, %v1240_v23 }
 0x3fb   :  { %v1151_v28 = vmin.f32 %v1143_v21, 0.0  ;;  %v1239_v29 = vmin.f32 %v1231_v22, 0.0  ;;  %vm1147_vm3 = vcmp.gt.f32.partialorder %v1143_v21, 0.0  ;;  %vm1235_vm8 = vcmp.gt.f32.partialorder %v1231_v22, 0.0 }
 0x3fc   :  { %v1728_v30 = vpop.eup %1727  ;;  %1729 = vpow2.f32 %v1157_v25 }
 0x3fd   :  { %v1632_v33 = vadd.f32 -1.0, %v1728_v30  ;;  %v1155_v34 = vmul.f32 1.442695, %v1151_v28  ;;  %1731 = vpow2.f32 %v1249_v24  ;;  %v1243_v36 = vmul.f32 1.442695, %v1239_v29 }
 0x3fe   :  { %1733 = vpow2.f32 %v1247_v26 }
 0x3ff   :  { %v1169_v35 = vsel %vm1149_vm0, %v1145_v60, %v1632_v33  ;;  %1735 = vpow2.f32 %v1155_v34 }
 0x400   :  { %1188 = vmatpush.msra.mxu2 %v1169_v35  ;;  %1737 = vpow2.f32 %v1245_v32 }
 0x401   :  { %1739 = vpow2.f32 %v1243_v36 }
 0x402   :  { %v1730_v37 = vpop.eup %1729 }
 0x403   :  { %v1732_v39 = vpop.eup %1731  ;;  %v1631_v40 = vadd.f32 -1.0, %v1730_v37 }
 0x404   :  { %v1734_v41 = vpop.eup %1733  ;;  %v1639_v45 = vadd.f32 -1.0, %v1732_v39 }
 0x405   :  { %v1736_v42 = vpop.eup %1735  ;;  %v1168_v43 = vsel %vm1148_vm2, %v1144_v13, %v1631_v40  ;;  %v1638_v49 = vadd.f32 -1.0, %v1734_v41 }
 0x406   :  { %1189 = vmatpush.msra.mxu2 %v1168_v43  ;;  %v1630_v44 = vadd.f32 -1.0, %v1736_v42  ;;  %v1738_v46 = vpop.eup %1737  ;;  %v1258_v51 = vsel %vm1238_vm5, %v2670_v61, %v1639_v45  ;;  %v1868_v61 = vmov 1  }
 0x407   :  { %v1740_v50 = vpop.eup %1739  ;;  %v1637_v52 = vadd.f32 -1.0, %v1738_v46  ;;  %v1257_v53 = vsel %vm1237_vm6, %v2672_v62, %v1638_v49  ;;  %1713 = vset.pattern.permute.xlu1 %v1868_v61  ;;  %1714 = vset.pattern.permute.xlu0 %v1868_v61  ;;  %v1198_v62 = vpop.permute.xlu1 %1197 }
 0x408   :  { %v1167_v48 = vsel %vm1147_vm3, %v1143_v21, %v1630_v44  ;;  %v1636_v54 = vadd.f32 -1.0, %v1740_v50  ;;  %1378 = vperm.xlu1 %1713, %v2664_v38   ;;  %v2750_v38 = vpop.permute.xlu2 %1374 }
 0x409   :  { %1190 = vmatpush.msra.mxu2 %v1167_v48  ;;  %v1256_v55 = vsel %vm1236_vm7, %v2692_v14, %v1637_v52  ;;  %v1382_v12 = vmul.f32 0.0, %v2750_v38 }
 0x40a   :  { %1634 = vmatmul.msk.f32.vlgmr.msra.gmra.mxu2 %vm1171_vm4, %v1085_v47  ;;  %v1255_v56 = vsel %vm1235_vm8, %v1231_v22, %v1636_v54 }
 0x40b   :  { %1271 = vmatpush.msrb.mxu2 %v1258_v51 }
 0x40d   :  { %1272 = vmatpush.msrb.mxu2 %v1257_v53 }
 0x40f   :  { %1273 = vmatpush.msrb.mxu2 %v1256_v55 }
 0x411   :  { %1274 = vmatpush.msrb.mxu2 %v1255_v56 }
 0x412   :  { %1640 = vmatmul.msk.f32.vlgmr.msrb.gmra.mxu2 %vm1171_vm4, %v1085_v47 }
 0x413   :  { %1290 = vmatpush.msra.mxu2 %v2677_v0 }
 0x415   :  { %1291 = vmatpush.msra.mxu2 %v2682_v1 }
 0x417   :  { %1292 = vmatpush.msra.mxu2 %v2688_v7 }
 0x419   :  { %1293 = vmatpush.msra.mxu2 %v2698_v16 }
 0x41b   :  { %1294 = vmatpush.msra.mxu2 %v2704_v20 }
 0x41d   :  { %1295 = vmatpush.msra.mxu2 %v1088_v27 }
 0x41f   :  { %1296 = vmatpush.msra.mxu2 %v1087_v31 }
 0x421   :  { %1297 = vmatpush.msra.mxu2 %v1086_v57 }
 0x47a   :  { %v2752_v3 = vpop.permute.xlu1 %1378 }
 0x47b   :  { %v1384_v13 = vmul.f32 0.0, %v2752_v3 }
 0x48d   :  { %v1192_v58 = vpop.f32.mrf.mxu2 }
 0x48e   :  { %1635 = vmatmul.msk.f32.vlgmr.msra.gmra.mxu3 %vm450_vm1, %v1192_v58 }
 0x495   :  { %v1276_v60 = vpop.f32.mrf.mxu2 }
 0x496   :  { %1641 = vmatmul.msk.f32.vlgmr.msra.gmra.mxu2 %vm450_vm1, %v1276_v60  ;;  %vm1306_vm1 = vcmask 7168  }
 0x511   :  { %v1220_v63 = vpop.f32.mrf.mxu3 }
 0x512   :  { %v1221_v0 = vadd.f32 %v1220_v63, %v1198_v62 }
 0x514   :  { %1317 = vrot.lane.b32.xlu2 %v1221_v0, %s2883_s29 }
 0x519   :  { %v1299_v1 = vpop.f32.mrf.mxu2 }
 0x51a   :  { %v1300_v2 = vadd.f32 %v1299_v1, %v1198_v62 }
 0x51c   :  { %1320 = vrot.lane.b32.xlu1 %v1300_v2, %s2881_s27  ;;  %1303 = vrot.lane.b32.xlu0 %v1300_v2, %s1869_s8 }
 0x51d   :  { %1329 = vrot.lane.b32.xlu2 %v1300_v2, %s2883_s29 }
 0x524   :  { %1335 = vrot.lane.b32.xlu1 %v1221_v0, %s2884_s16  ;;  %1311 = vrot.lane.b32.xlu0 %v1221_v0, %s2881_s27  ;;  %s1870_s27 = smov [#allocation5]  }
 0x525   :  { %1344 = vrot.lane.b32.xlu2 %v1221_v0, %s2886_s12 }
 0x52c   :  { %1347 = vrot.lane.b32.xlu1 %v1300_v2, %s2884_s16  ;;  %1326 = vrot.lane.b32.xlu0 %v1221_v0, %s2882_s14 }
 0x52d   :  { %1356 = vrot.lane.b32.xlu2 %v1300_v2, %s2886_s12 }
 0x534   :  { %1362 = vrot.lane.b32.xlu1 %v1221_v0, %s2887_s28  ;;  %1338 = vrot.lane.b32.xlu0 %v1300_v2, %s2882_s14  ;;  %s1611_s14 = sshll.u32 %s1870_s27, 4  ;;  %s1612_s14 = int_to_ptr.vmem [resolvable:$true] %s1611_s14 }
 0x53c   :  { %1353 = vrot.lane.b32.xlu0 %v1221_v0, %s2885_s19 }
 0x544   :  { %1365 = vrot.lane.b32.xlu0 %v1300_v2, %s2885_s19  ;;  %s1613_s19 = sshll.u32 %s2800_s9, 4  ;;  %s1614_s19 = int_to_ptr.hbm [resolvable:$true] %s1613_s19 }
 0x56e   :  { %v1318_v4 = vpop.permute.xlu2 %1317 }
 0x577   :  { %v1330_v9 = vpop.permute.xlu2 %1329 }
 0x57f   :  { %v1345_v18 = vpop.permute.xlu2 %1344 }
 0x587   :  { %v1357_v32 = vpop.permute.xlu2 %1356 }
 0x58e   :  { %v1321_v5 = vpop.permute.xlu1 %1320  ;;  %v1304_v6 = vpop.permute.xlu0 %1303 }
 0x58f   :  { %v1323_v7 = vsel %vm1306_vm1, %v1318_v4, %v1321_v5  ;;  %v1307_v8 = vsel %vm1306_vm1, %v1221_v0, %v1304_v6 }
 0x590   :  { %1325 = vst.msk [vmem:[#allocation4 + $0x10] sm:$0xff] %vm1308_vm9, %v1323_v7 }
 0x591   :  { %1309 = vst.msk [vmem:[#allocation4] sm:$0xff] %vm1308_vm9, %v1307_v8 }
 0x596   :  { %v1336_v10 = vpop.permute.xlu1 %1335  ;;  %v1312_v11 = vpop.permute.xlu0 %1311 }
 0x597   :  { %v1314_v14 = vsel %vm1306_vm1, %v1312_v11, %v1300_v2  ;;  %v1429_v2 = vld [vmem:[#allocation4 + $0x10] sm:$0xff] }
 0x598   :  { %v1381_v15 = vld [vmem:[#allocation4] sm:$0xff]  ;;  %1316 = vst.msk [vmem:[#allocation4 + $0x8] sm:$0xff] %vm1308_vm9, %v1314_v14 }
 0x599   :  { %v1383_v16 = vadd.f32 %v1382_v12, %v1381_v15 }
 0x59b   :  { %v1385_v17 = vadd.f32 %v1384_v13, %v1383_v16 }
 0x59d   :  { %v1386_v59 = vmul.f32 0.5, %v1385_v17 }
 0x59e   :  { %v1348_v19 = vpop.permute.xlu1 %1347  ;;  %v1327_v20 = vpop.permute.xlu0 %1326 }
 0x59f   :  { %1741 = vtanh.f32 %v1386_v59  ;;  %v1350_v21 = vsel %vm1306_vm1, %v1345_v18, %v1348_v19  ;;  %v1332_v22 = vsel %vm1306_vm1, %v1327_v20, %v1330_v9  ;;  %v1404_v46 = vld [vmem:[#allocation4 + $0x8] sm:$0xff] }
 0x5a0   :  { %1352 = vst.msk [vmem:[#allocation4 + $0x28] sm:$0xff] %vm1308_vm9, %v1350_v21 }
 0x5a1   :  { %1334 = vst.msk [vmem:[#allocation4 + $0x18] sm:$0xff] %vm1308_vm9, %v1332_v22 }
 0x5a5   :  { %v1742_v23 = vpop.eup %1741 }
 0x5a6   :  { %v1388_v24 = vadd.f32 1.0, %v1742_v23  ;;  %v1339_v25 = vpop.permute.xlu0 %1338  ;;  %v1392_v28 = vrot.slane %v1742_v23, 4  ;;  %v1363_v37 = vpop.permute.xlu1 %1362 }
 0x5a7   :  { %v1341_v26 = vsel %vm1306_vm1, %v1336_v10, %v1339_v25 }
 0x5a8   :  { %v1389_v27 = vmul.f32 0.5, %v1388_v24  ;;  %1343 = vst.msk [vmem:[#allocation4 + $0x20] sm:$0xff] %vm1308_vm9, %v1341_v26  ;;  %v1454_v21 = vld [vmem:[#allocation4 + $0x18] sm:$0xff] }
 0x5aa   :  { %v1394_v29 = vmul.f32 %v1392_v28, %v1389_v27  ;;  %v1390_v31 = vmul.f32 0.0, %v1389_v27 }
 0x5ac   :  { %v1396_v30 = vrot.slane %v1394_v29, 6 }
 0x5ae   :  { %v1398_v33 = vadd.f32 %v1396_v30, %v1390_v31  ;;  %v1354_v34 = vpop.permute.xlu0 %1353 }
 0x5af   :  { %v1359_v35 = vsel %vm1306_vm1, %v1354_v34, %v1357_v32 }
 0x5b0   :  { %1743 = vtanh.f32 %v1398_v33  ;;  %1361 = vst.msk [vmem:[#allocation4 + $0x30] sm:$0xff] %vm1308_vm9, %v1359_v35 }
 0x5b6   :  { %v1744_v36 = vpop.eup %1743  ;;  %v1366_v39 = vpop.permute.xlu0 %1365 }
 0x5b7   :  { %v1401_v40 = vrot.slane %v1744_v36, 4  ;;  %v1368_v41 = vsel %vm1306_vm1, %v1363_v37, %v1366_v39 }
 0x5b8   :  { %1370 = vst.msk [vmem:[#allocation4 + $0x38] sm:$0xff] %vm1308_vm9, %v1368_v41  ;;  %v1479_v41 = vld [vmem:[#allocation4 + $0x20] sm:$0xff] }
 0x5b9   :  { %v1403_v42 = vmul.f32 %v1401_v40, %v1389_v27 }
 0x5bb   :  { %v1405_v43 = vperm.slane %v1403_v42, 6  ;;  %v1408_v44 = vperm.slane %v1403_v42, 7 }
 0x5bd   :  { %v1406_v45 = vmul.f32 %v1405_v43, %v2750_v38  ;;  %v1409_v48 = vmul.f32 %v1408_v44, %v2752_v3 }
 0x5bf   :  { %v1407_v47 = vadd.f32 %v1406_v45, %v1404_v46 }
 0x5c1   :  { %v1410_v49 = vadd.f32 %v1409_v48, %v1407_v47 }
 0x5c3   :  { %v1411_v50 = vmul.f32 0.5, %v1410_v49 }
 0x5c5   :  { %1745 = vtanh.f32 %v1411_v50 }
 0x5cb   :  { %v1746_v51 = vpop.eup %1745 }
 0x5cc   :  { %v1413_v52 = vadd.f32 1.0, %v1746_v51  ;;  %v1417_v54 = vrot.slane %v1746_v51, 4 }
 0x5ce   :  { %v1414_v53 = vmul.f32 0.5, %v1413_v52 }
 0x5d0   :  { %v1419_v55 = vmul.f32 %v1417_v54, %v1414_v53  ;;  %v1415_v56 = vmul.f32 %v1414_v53, %v1398_v33 }
 0x5d2   :  { %v1421_v57 = vrot.slane %v1419_v55, 6 }
 0x5d4   :  { %v1423_v58 = vadd.f32 %v1421_v57, %v1415_v56 }
 0x5d6   :  { %1747 = vtanh.f32 %v1423_v58 }
 0x5dc   :  { %v1748_v60 = vpop.eup %1747 }
 0x5dd   :  { %v1426_v61 = vrot.slane %v1748_v60, 4 }
 0x5df   :  { %v1428_v62 = vmul.f32 %v1426_v61, %v1414_v53  ;;  %v1504_v61 = vld [vmem:[#allocation4 + $0x28] sm:$0xff] }
 0x5e1   :  { %v1430_v63 = vperm.slane %v1428_v62, 6  ;;  %v1433_v0 = vperm.slane %v1428_v62, 7 }
 0x5e3   :  { %v1431_v1 = vmul.f32 %v1430_v63, %v2750_v38  ;;  %v1434_v5 = vmul.f32 %v1433_v0, %v2752_v3 }
 0x5e5   :  { %v1432_v4 = vadd.f32 %v1431_v1, %v1429_v2 }
 0x5e7   :  { %v1435_v6 = vadd.f32 %v1434_v5, %v1432_v4 }
 0x5e9   :  { %v1436_v7 = vmul.f32 0.5, %v1435_v6 }
 0x5eb   :  { %1749 = vtanh.f32 %v1436_v7 }
 0x5f1   :  { %v1750_v8 = vpop.eup %1749 }
 0x5f2   :  { %v1438_v9 = vadd.f32 1.0, %v1750_v8  ;;  %v1442_v11 = vrot.slane %v1750_v8, 4 }
 0x5f4   :  { %v1439_v10 = vmul.f32 0.5, %v1438_v9 }
 0x5f6   :  { %v1444_v12 = vmul.f32 %v1442_v11, %v1439_v10  ;;  %v1440_v13 = vmul.f32 %v1439_v10, %v1423_v58 }
 0x5f8   :  { %v1446_v14 = vrot.slane %v1444_v12, 6 }
 0x5fa   :  { %v1448_v15 = vadd.f32 %v1446_v14, %v1440_v13 }
 0x5fc   :  { %1751 = vtanh.f32 %v1448_v15 }
 0x602   :  { %v1752_v16 = vpop.eup %1751 }
 0x603   :  { %v1451_v17 = vrot.slane %v1752_v16, 4 }
 0x605   :  { %v1453_v18 = vmul.f32 %v1451_v17, %v1439_v10  ;;  %v1529_v17 = vld [vmem:[#allocation4 + $0x30] sm:$0xff] }
 0x607   :  { %v1455_v59 = vperm.slane %v1453_v18, 6  ;;  %v1458_v19 = vperm.slane %v1453_v18, 7 }
 0x609   :  { %v1456_v20 = vmul.f32 %v1455_v59, %v2750_v38  ;;  %v1459_v23 = vmul.f32 %v1458_v19, %v2752_v3 }
 0x60b   :  { %v1457_v22 = vadd.f32 %v1456_v20, %v1454_v21 }
 0x60d   :  { %v1460_v24 = vadd.f32 %v1459_v23, %v1457_v22 }
 0x60f   :  { %v1461_v25 = vmul.f32 0.5, %v1460_v24 }
 0x611   :  { %1753 = vtanh.f32 %v1461_v25 }
 0x617   :  { %v1754_v26 = vpop.eup %1753 }
 0x618   :  { %v1463_v27 = vadd.f32 1.0, %v1754_v26  ;;  %v1467_v29 = vrot.slane %v1754_v26, 4 }
 0x61a   :  { %v1464_v28 = vmul.f32 0.5, %v1463_v27 }
 0x61c   :  { %v1469_v30 = vmul.f32 %v1467_v29, %v1464_v28  ;;  %v1465_v31 = vmul.f32 %v1464_v28, %v1448_v15 }
 0x61e   :  { %v1471_v32 = vrot.slane %v1469_v30, 6 }
 0x620   :  { %v1473_v33 = vadd.f32 %v1471_v32, %v1465_v31 }
 0x622   :  { %1755 = vtanh.f32 %v1473_v33 }
 0x628   :  { %v1756_v34 = vpop.eup %1755 }
 0x629   :  { %v1476_v35 = vrot.slane %v1756_v34, 4 }
 0x62b   :  { %v1478_v36 = vmul.f32 %v1476_v35, %v1464_v28  ;;  %v1554_v35 = vld [vmem:[#allocation4 + $0x38] sm:$0xff] }
 0x62d   :  { %v1480_v37 = vperm.slane %v1478_v36, 6  ;;  %v1483_v39 = vperm.slane %v1478_v36, 7 }
 0x62f   :  { %v1481_v40 = vmul.f32 %v1480_v37, %v2750_v38  ;;  %v1484_v43 = vmul.f32 %v1483_v39, %v2752_v3 }
 0x631   :  { %v1482_v42 = vadd.f32 %v1481_v40, %v1479_v41 }
 0x633   :  { %v1485_v44 = vadd.f32 %v1484_v43, %v1482_v42 }
 0x635   :  { %v1486_v45 = vmul.f32 0.5, %v1485_v44 }
 0x637   :  { %1757 = vtanh.f32 %v1486_v45 }
 0x63d   :  { %v1758_v46 = vpop.eup %1757 }
 0x63e   :  { %v1488_v47 = vadd.f32 1.0, %v1758_v46  ;;  %v1492_v49 = vrot.slane %v1758_v46, 4 }
 0x640   :  { %v1489_v48 = vmul.f32 0.5, %v1488_v47 }
 0x642   :  { %v1494_v50 = vmul.f32 %v1492_v49, %v1489_v48  ;;  %v1490_v51 = vmul.f32 %v1489_v48, %v1473_v33 }
 0x644   :  { %v1496_v52 = vrot.slane %v1494_v50, 6 }
 0x646   :  { %v1498_v53 = vadd.f32 %v1496_v52, %v1490_v51 }
 0x648   :  { %1759 = vtanh.f32 %v1498_v53 }
 0x64e   :  { %v1760_v54 = vpop.eup %1759 }
 0x64f   :  { %v1501_v55 = vrot.slane %v1760_v54, 4 }
 0x651   :  { %v1503_v56 = vmul.f32 %v1501_v55, %v1489_v48 }
 0x653   :  { %v1505_v57 = vperm.slane %v1503_v56, 6  ;;  %v1508_v58 = vperm.slane %v1503_v56, 7 }
 0x655   :  { %v1506_v60 = vmul.f32 %v1505_v57, %v2750_v38  ;;  %v1509_v63 = vmul.f32 %v1508_v58, %v2752_v3 }
 0x657   :  { %v1507_v62 = vadd.f32 %v1506_v60, %v1504_v61 }
 0x659   :  { %v1510_v0 = vadd.f32 %v1509_v63, %v1507_v62 }
 0x65b   :  { %v1511_v1 = vmul.f32 0.5, %v1510_v0 }
 0x65d   :  { %1761 = vtanh.f32 %v1511_v1 }
 0x663   :  { %v1762_v2 = vpop.eup %1761 }
 0x664   :  { %v1513_v4 = vadd.f32 1.0, %v1762_v2  ;;  %v1517_v6 = vrot.slane %v1762_v2, 4 }
 0x666   :  { %v1514_v5 = vmul.f32 0.5, %v1513_v4 }
 0x668   :  { %v1519_v7 = vmul.f32 %v1517_v6, %v1514_v5  ;;  %v1515_v8 = vmul.f32 %v1514_v5, %v1498_v53 }
 0x66a   :  { %v1521_v9 = vrot.slane %v1519_v7, 6 }
 0x66c   :  { %v1523_v10 = vadd.f32 %v1521_v9, %v1515_v8 }
 0x66e   :  { %1763 = vtanh.f32 %v1523_v10 }
 0x674   :  { %v1764_v11 = vpop.eup %1763 }
 0x675   :  { %v1526_v12 = vrot.slane %v1764_v11, 4 }
 0x677   :  { %v1528_v13 = vmul.f32 %v1526_v12, %v1514_v5 }
 0x679   :  { %v1530_v14 = vperm.slane %v1528_v13, 6  ;;  %v1533_v15 = vperm.slane %v1528_v13, 7 }
 0x67b   :  { %v1531_v16 = vmul.f32 %v1530_v14, %v2750_v38  ;;  %v1534_v59 = vmul.f32 %v1533_v15, %v2752_v3 }
 0x67d   :  { %v1532_v18 = vadd.f32 %v1531_v16, %v1529_v17 }
 0x67f   :  { %v1535_v19 = vadd.f32 %v1534_v59, %v1532_v18 }
 0x681   :  { %v1536_v20 = vmul.f32 0.5, %v1535_v19 }
 0x683   :  { %1765 = vtanh.f32 %v1536_v20 }
 0x689   :  { %v1766_v21 = vpop.eup %1765 }
 0x68a   :  { %v1538_v22 = vadd.f32 1.0, %v1766_v21  ;;  %v1542_v24 = vrot.slane %v1766_v21, 4 }
 0x68c   :  { %v1539_v23 = vmul.f32 0.5, %v1538_v22 }
 0x68e   :  { %v1544_v25 = vmul.f32 %v1542_v24, %v1539_v23  ;;  %v1540_v26 = vmul.f32 %v1539_v23, %v1523_v10 }
 0x690   :  { %v1546_v27 = vrot.slane %v1544_v25, 6 }
 0x692   :  { %v1548_v28 = vadd.f32 %v1546_v27, %v1540_v26 }
 0x694   :  { %1767 = vtanh.f32 %v1548_v28 }
 0x69a   :  { %v1768_v29 = vpop.eup %1767 }
 0x69b   :  { %v1551_v30 = vrot.slane %v1768_v29, 4 }
 0x69d   :  { %v1553_v31 = vmul.f32 %v1551_v30, %v1539_v23 }
 0x69f   :  { %v1555_v32 = vperm.slane %v1553_v31, 6  ;;  %v1558_v33 = vperm.slane %v1553_v31, 7 }
 0x6a1   :  { %v1556_v34 = vmul.f32 %v1555_v32, %v2750_v38  ;;  %v1559_v37 = vmul.f32 %v1558_v33, %v2752_v3 }
 0x6a3   :  { %v1557_v36 = vadd.f32 %v1556_v34, %v1554_v35 }
 0x6a5   :  { %v1560_v39 = vadd.f32 %v1559_v37, %v1557_v36 }
 0x6a7   :  { %v1561_v40 = vmul.f32 0.5, %v1560_v39 }
 0x6a9   :  { %1769 = vtanh.f32 %v1561_v40 }
 0x6af   :  { %v1770_v41 = vpop.eup %1769 }
 0x6b0   :  { %v1563_v42 = vadd.f32 1.0, %v1770_v41  ;;  %v1567_v44 = vrot.slane %v1770_v41, 4 }
 0x6b2   :  { %v1564_v43 = vmul.f32 0.5, %v1563_v42 }
 0x6b4   :  { %v1569_v45 = vmul.f32 %v1567_v44, %v1564_v43  ;;  %v1565_v46 = vmul.f32 %v1564_v43, %v1548_v28 }
 0x6b6   :  { %v1571_v47 = vrot.slane %v1569_v45, 6 }
 0x6b8   :  { %v1573_v48 = vadd.f32 %v1571_v47, %v1565_v46 }
 0x6ba   :  { %1771 = vtanh.f32 %v1573_v48 }
 0x6c0   :  { %v1772_v49 = vpop.eup %1771 }
 0x6c1   :  { %v1576_v50 = vrot.slane %v1772_v49, 4 }
 0x6c3   :  { %v1578_v38 = vmul.f32 %v1576_v50, %v1564_v43 }
 0x6c5   :  { %v1580_v51 = vsel %vm1579_vm10, %v1578_v38, -inf }
 0x6c6   :  { %v1581_v52 = vrot.slane %v1580_v51, 4 }
 0x6c8   :  { %v1582_v3 = vmax.f32 %v1580_v51, %v1581_v52 }
 0x6ca   :  { %v1583_v53 = vrot.slane %v1582_v3, 2 }
 0x6cc   :  { %v1584_v54 = vmax.f32 %v1582_v3, %v1583_v53 }
 0x6ce   :  { %v1585_v55 = vrot.slane %v1584_v54, 1 }
 0x6d0   :  { %v1586_v56 = vmax.f32 %v1584_v54, %v1585_v55 }
 0x6d2   :  { %v1587_v57 = vsub.f32 %v1578_v38, %v1586_v56 }
 0x6d4   :  { %v1588_v58 = vmul.f32 1.442695, %v1587_v57 }
 0x6d6   :  { %1773 = vpow2.f32 %v1588_v58 }
 0x6dc   :  { %v1774_v60 = vpop.eup %1773 }
 0x6dd   :  { %v1591_v61 = vrot.slane %v1774_v60, 6 }
 0x6df   :  { %v1594_v62 = vsel %vm1593_vm11, %v1591_v61, 0.0 }
 0x6e0   :  { %v1595_v63 = vrot.slane %v1594_v62, 4 }
 0x6e2   :  { %v1596_v0 = vadd.f32 %v1595_v63, %v1594_v62 }
 0x6e4   :  { %v1597_v1 = vrot.slane %v1596_v0, 2 }
 0x6e6   :  { %v1598_v2 = vadd.f32 %v1597_v1, %v1596_v0 }
 0x6e8   :  { %v1599_v4 = vrot.slane %v1598_v2, 1 }
 0x6ea   :  { %v1600_v5 = vadd.f32 %v1599_v4, %v1598_v2 }
 0x6ec   :  { %1775 = vlog2.f32 %v1600_v5 }
 0x6f2   :  { %v1776_v6 = vpop.eup %1775 }
 0x6f3   :  { %v1602_v7 = vmul.f32 0.6931472, %v1776_v6 }
 0x6f5   :  { %v1603_v8 = vadd.f32 %v1602_v7, %v1586_v56 }
 0x6f7   :  { %v1604_v9 = vsub.f32 %v1578_v38, %v1603_v8 }
 0x6f9   :  { %1605 = vst.msk [vmem:[#allocation5 - $0x6] sm:$0xc0] %vm1579_vm10, %v1604_v9 }
 0x6fa   :  { %1616 = dma.vmem_to_hbm [thread:$0]  %s1612_s14, 32, %s1614_s19, [#allocation6]  }
 0x6fb   :  { %1801 = dma.done.wait [#allocation6], 32  }
 0x6fc   :  { %1802 = vsyncadd [#allocation6], 4294967264 }
 0x6fd   :  { %1621 = vsyncpa [#allocation6], 1 }

</bundles_post_ra>
